<compile_context>
chip_gen: v7x
topology: tpu7x:2x2x1
jax: 0.10.0
libtpu: 0.0.40
codegen_flags: <defaults>
</compile_context>

<pallas_src>
import functools

import jax
import jax.numpy as jnp
from jax.experimental import pallas as pl
from jax.experimental.pallas import tpu as pltpu


_SMALL_BYPASS_BYTES = 1 * 1024 * 1024  # below this, Pallas call overhead dominates


def _neg_kernel(w_ref, o_ref):
    # Elementwise negation on the VPU.
    o_ref[...] = -w_ref[...]


def _sublane(dtype) -> int:
    """Native packed sublane tile: 8 for 32-bit, 16 for 16-bit, 32 for 8-bit."""
    itemsize = jnp.dtype(dtype).itemsize
    return max(8, 32 // max(1, itemsize))


@functools.lru_cache(maxsize=None)
def _budgets():
    """Generation-aware (block_bytes, vmem_limit_bytes)."""
    try:
        vmem_cap = pltpu.get_tpu_info().vmem_capacity_bytes
    except Exception:  # unknown / query unavailable -> stay conservative
        vmem_cap = 0
    if vmem_cap >= 100 * 1024 * 1024:
        # v5e / v6e: 128 MiB VMEM -> bigger blocks amortize ~0.35us/step overhead.
        return 8 * 1024 * 1024, 48 * 1024 * 1024
    # v7x (64 MiB VMEM per TensorCore) or unknown: leave pipelining headroom.
    return 4 * 1024 * 1024, 40 * 1024 * 1024


def _pick_block_rows(rows: int, cols: int, itemsize: int, sublane: int,
                     block_bytes: int):
    """Block row count (multiple of the packed sublane tile) and grid steps."""
    if rows * cols * itemsize <= block_bytes:
        return rows, 1  # one block; block shape == full array dims is legal
    max_rows = max(sublane, block_bytes // (cols * itemsize))
    block_rows = max(sublane, (max_rows // sublane) * sublane)
    steps = pl.cdiv(rows, block_rows)
    # v7x: the "parallel" axis is sharded across 2 TensorCores; a small odd
    # step count leaves one core idle up to ~33% of the time. Prefer an even
    # count by shrinking the block slightly (harmless on 1-TC v5e/v6e).
    if 2 < steps < 8 and steps % 2 == 1:
        br = pl.cdiv(rows, steps + 1)
        br = pl.cdiv(br, sublane) * sublane
        if br >= sublane:
            block_rows = min(block_rows, br)
            steps = pl.cdiv(rows, block_rows)
    return block_rows, steps


def _launch(x2d: jnp.ndarray, block_rows: int, grid_steps: int,
            vmem_limit: int, in_place: bool) -> jnp.ndarray:
    rows, cols = x2d.shape
    return pl.pallas_call(
        _neg_kernel,
        out_shape=jax.ShapeDtypeStruct((rows, cols), x2d.dtype),
        grid_spec=pltpu.PrefetchScalarGridSpec(
            num_scalar_prefetch=0,
            grid=(grid_steps,),
            in_specs=[pl.BlockSpec((block_rows, cols), lambda i: (i, 0))],
            out_specs=pl.BlockSpec((block_rows, cols), lambda i: (i, 0)),
        ),
        compiler_params=pltpu.CompilerParams(
            dimension_semantics=("parallel",),
            vmem_limit_bytes=vmem_limit,
        ),
        input_output_aliases=({0: 0} if in_place else {}),
    )(x2d)


def polarity_inversion(wave: jnp.ndarray, *, in_place: bool = False) -> jnp.ndarray:
    """Negates all values of `wave` (PolarityInversion.forward).

    Set in_place=True only when the caller donates `wave` (jit donate_argnums);
    it aliases the input and output HBM buffers via input_output_aliases.
    """
    orig_shape = wave.shape
    dtype = wave.dtype
    itemsize = jnp.dtype(dtype).itemsize
    n = wave.size
    if n == 0:
        return wave

    total_bytes = n * itemsize
    # Tiny inputs: Pallas call + pipeline setup (multiple us) dominates; XLA's
    # fused negate is already at roofline for these.
    if total_bytes < _SMALL_BYPASS_BYTES:
        return -wave

    flat = wave.reshape(-1)
    block_bytes, vmem_limit = _budgets()
    sublane = _sublane(dtype)

    # Lane-dense 2D view: widest column count (multiple of 128) dividing n.
    for cols in (4096, 2048, 1024, 512, 256, 128):
        if n % cols == 0:
            rows = n // cols
            block_rows, steps = _pick_block_rows(rows, cols, itemsize, sublane,
                                                 block_bytes)
            out2d = _launch(flat.reshape(rows, cols), block_rows, steps,
                            vmem_limit, in_place)
            return out2d.reshape(orig_shape)

    # n is not a multiple of 128: any Pallas route needs pad+slice or a
    # prefix+concat, each adding a full extra HBM pass to a bandwidth-bound op.
    # Plain fused negation (exactly 1 read + 1 write) is already optimal.
    return -wave


if __name__ == "__main__":
    key = jax.random.PRNGKey(0)
    k1, k2, k3 = jax.random.split(key, 3)

    # Small waveform: batch=2, channels=4, samples=256 (small-input bypass).
    wave_small = jax.random.normal(k1, (2, 4, 256), dtype=jnp.float32)
    out_small = jax.block_until_ready(polarity_inversion(wave_small))
    assert out_small.shape == wave_small.shape
    assert out_small.dtype == wave_small.dtype
    assert jnp.array_equal(out_small, -wave_small), "mismatch (small path)"

    # Ragged small waveform (n not a multiple of 128).
    wave_ragged = jax.random.normal(k2, (3, 5, 101), dtype=jnp.float32)
    out_ragged = jax.block_until_ready(polarity_inversion(wave_ragged))
    assert out_ragged.shape == wave_ragged.shape
    assert jnp.array_equal(out_ragged, -wave_ragged), "mismatch (ragged path)"

    # Larger waveform (~20 MiB) exercising the Pallas path, including a
    # partial trailing block (rows not divisible by block_rows).
    wave_big = jax.random.normal(k3, (2, 4, 659456), dtype=jnp.float32)
    out_big = jax.block_until_ready(polarity_inversion(wave_big))
    assert out_big.shape == wave_big.shape
    assert out_big.dtype == wave_big.dtype
    assert jnp.array_equal(out_big, -wave_big), "mismatch (Pallas path)"

    print("KERNEL_OK")
</pallas_src>

<mosaic_0001>
module attributes {stable_mosaic.version = 11 : i64} {
  func.func @_neg_kernel(%arg0: i32, %arg1: memref<256x4096xf32, #tpu.memory_space<vmem>>, %arg2: memref<256x4096xf32, #tpu.memory_space<vmem>>) attributes {dimension_semantics = [#tpu.dimension_semantics<parallel>], iteration_bounds = array<i64: 6>, scalar_prefetch = 0 : i64, scratch_operands = 0 : i64, tpu.core_type = #tpu.core_type<tc>, window_params = [{transform_indices = @transform_0, window_bounds = array<i64: 256, 4096>}, {transform_indices = @transform_1, window_bounds = array<i64: 256, 4096>}]} {
    %c0 = arith.constant 0 : index
    %c0_0 = arith.constant 0 : index
    %0 = vector.load %arg1[%c0, %c0_0] : memref<256x4096xf32, #tpu.memory_space<vmem>>, vector<256x4096xf32>
    %cst = arith.constant 0.000000e+00 : f32
    %1 = vector.broadcast %cst : f32 to vector<256x4096xf32>
    %2 = arith.subf %1, %0 : vector<256x4096xf32>
    %c0_1 = arith.constant 0 : index
    %c0_2 = arith.constant 0 : index
    %3 = vector.load %arg2[%c0_1, %c0_2] : memref<256x4096xf32, #tpu.memory_space<vmem>>, vector<256x4096xf32>
    tpu.vector_store %arg2[%c0_1, %c0_2], %2 {strides = array<i32>} : memref<256x4096xf32, #tpu.memory_space<vmem>>, vector<256x4096xf32>,
    return
  }
  func.func @transform_0(%arg0: i32) -> (i32, i32) {
    %c0_i32 = arith.constant 0 : i32
    %c0_i32_0 = arith.constant 0 : i32
    return %arg0, %c0_i32 : i32, i32
  }
  func.func @transform_1(%arg0: i32) -> (i32, i32) {
    %c0_i32 = arith.constant 0 : i32
    %c0_i32_0 = arith.constant 0 : i32
    return %arg0, %c0_i32 : i32, i32
  }
}

</mosaic_0001>

<bundles_post_ra>
// kernel: tpu_custom_call.1
= control target key start
LH: loop header
LB: loop body
LE: loop exit
PB: predicated region body
PF: predicated region fallthrough
CT: control target
= control target key end

     0   :  { %6 = vsyncpa [#allocation3], 0  ;;  %s5729_s0 = inlined_call_operand.hbm [shape: f32[1288,4096], index: 0, kind: input, shape index: {}]   ;;  %s5730_s1 = inlined_call_operand.hbm [shape: f32[1288,4096], index: 1, kind: output, shape index: {}]  }
   0x1   :  { %8 = vsyncpa [#allocation3 + $0x1], 0 }
   0x2   :  { %9 = vsyncpa [#allocation4], 0 }
   0x3   :  { %11 = vsyncpa [#allocation4 + $0x1], 0  ;;  %s3509_s6 = smov 0   ;;  %s3511_s7 = smov 0  }
   0x4   :  { %s3513_s8 = smov 0   ;;  %s3515_s9 = smov 0  }
   0x5 LB: > { %s3530_s10 = sadd.s32 4294967295, %s3491_s9   ;;  %s3322_s11 = sadd.s32 4294967294, %s3491_s9   ;;  %s3491_s9 = sphi %s3515_s9, %s5738_s9   ;;  %s3487_s8 = sphi %s3513_s8, %s5737_s8   ;;  %s3483_s7 = sphi %s3511_s7, %s5736_s7   ;;  %s3479_s6 = sphi %s3509_s6, %s5735_s6  }
   0x6   : > { %s3534_s12 = sadd.s32 1, %s3491_s9   ;;  %s24_s13 = sadd.s32 1, %s3487_s8 }
   0x7   : > { %s21_s14 = ssub.s32 %s3491_s9, %s3534_s12  ;;  %p31_p0 = scmp.ne.s32.totalorder %s3487_s8, %s3483_s7 }
   0x8   : > { %p22_p1 = scmp.eq.s32.totalorder %s21_s14, 0  ;;  %p32_p2 = scmp.eq.s32.totalorder %s3491_s9, 0 }
   0x9   : > { %p37_p3 = scmp.ne.s32.totalorder %s3483_s7, %s3479_s6  ;;  %p38_p4 = scmp.eq.s32.totalorder %s3530_s10, 0 }
   0xa   : > { %s3546_s15 = scalar_select %p22_p1, %s3487_s8, %s24_s13  }
   0xb   : > { %p33_p5 = por %p32_p2, %p31_p0  ;;  %p3548_p6 = por %p38_p4, %p37_p3 }
   0xc   : > { %p61_p7 = scmp.eq.s32.totalorder %s3530_s10, 5  ;;  %p67_p8 = scmp.eq.s32.totalorder %s3322_s11, 5 }
   0xd   : > { %p3324_p11 = scmp.ge.s32.totalorder %s3491_s9, 6 }
   0xe   : > { %p3553_p9 = por %p61_p7, %p31_p0  ;;  %p3557_p10 = por %p67_p8, %p37_p3 }
   0xf   : > { %83 = sbr.rel (%p3324_p11) target bundleno = 57 (0x39), region = 16 }
  0x10   : > { %s5733_s18 = scalar_select %p3557_p10, 1, 0 }
  0x16   : > { %86 = sbr.rel (!%p33_p5) target bundleno = 57 (0x39), region = 20  ;;  %s87_s19 = sand.u32 (%p33_p5), 1, %s3487_s8  }
  0x17   : > { %s3326_s20 = sshll.u32 (%p33_p5), %s3491_s9, 5  ;;  %s3325_s21 = sshll.u32 (%p33_p5), %s87_s19, 13 }
  0x18   : > { %s93_s22 = ssub.s32 (%p33_p5), 161, %s3326_s20  ;;  %s3567_s25 = scalar_lea.sflag (%p33_p5), [#allocation3], %s87_s19 }
  0x19   : > { %p94_p12 = scmp.lt.s32.totalorder (%p33_p5), %s93_s22, 32  ;;  %s91_s26 = scalar_lea.vmem (%p33_p5), [#allocation2], %s3325_s21 }
  0x1d   : > { %s5740_s22 = smov (!%p94_p12, %s93_s22), 32 }
  0x1e   : > { %s3564_s23 = sshll.u32 %s5740_s22, 12 }
  0x1f   : > { %s99_s24 = ssub.s32 131072, %s3564_s23 }
  0x20   : > { %100 = vsyncadd %s3567_s25, %s99_s24  ;;  %p3329_p13 = scmp.ne.s32.totalorder %s3564_s23, 0  ;;  %s3350_s27 = sshll.u32 %s3491_s9, 17 }
  0x21   : > { %s3575_s30 = scalar_lea.hbm %s5729_s0, %s3350_s27  ;;  %s106_s2 = sshll.u32 %s91_s26, 4  ;;  %s3577_s2 = int_to_ptr.vmem [resolvable:$true] %s106_s2 }
  0x22   : > { %s3397_s3 = scalar_lea.hbm %s3575_s30, %s3564_s23  ;;  %s3401_s11 = scalar_lea.hbm %s5729_s0, 659456 }
  0x23   : > { %p3398_p0 = scmp.ne.s32.totalorder %s3575_s30, %s3397_s3  ;;  %p3402_p3 = scmp.lt.u32.totalorder %s3575_s30, %s5729_s0 }
  0x24   : > { %p3403_p4 = scmp.lt.u32.totalorder %s3401_s11, %s3397_s3  ;;  %p3405_p7 = scmp.lt.u32.totalorder %s3397_s3, %s3575_s30 }
  0x25   : > { %p3399_p1 = pnand %p3398_p0, %p3329_p13 }
  0x26   : > { %p3404_p5 = por %p3403_p4, %p3402_p3 }
  0x27   : > { %p3400_p2 = pneg %p3399_p1 }
  0x28   : > { %p3406_p8 = por %p3405_p7, %p3404_p5 }
  0x2a   : > { %p3407_p11 = pnand %p3406_p8, %p3400_p2 }
  0x2c   : > { %3410 = shalt.err (!%p3407_p11)
}
  0x2d   : > { %s3411_s19 = scalar_lea.vmem %s3577_s2, %s3564_s23  ;;  %s3493_s20 = smov [#allocation2]  }
  0x2e   : > { %p3412_p12 = scmp.ne.s32.totalorder %s3577_s2, %s3411_s19  ;;  %s3415_s21 = sshll.u32 %s3493_s20, 4  ;;  %s3416_s21 = int_to_ptr.vmem [resolvable:$false] %s3415_s21 }
  0x2f   : > { %s3417_s22 = scalar_lea.vmem %s3416_s21, 262144  ;;  %p3418_p10 = scmp.lt.s32.totalorder %s3577_s2, %s3416_s21 }
  0x30   : > { %p3413_p0 = pnand %p3412_p12, %p3329_p13  ;;  %p3419_p3 = scmp.lt.s32.totalorder %s3417_s22, %s3411_s19 }
  0x32   : > { %p3414_p1 = pneg %p3413_p0  ;;  %p3420_p4 = por %p3419_p3, %p3418_p10 }
  0x34   : > { %p3421_p5 = pnand %p3420_p4, %p3414_p1 }
  0x36   : > { %3424 = shalt.err (!%p3421_p5)
}
  0x37   : > { %s3494_s24 = smov 4096   ;;  %s3495_s26 = smov 256  }
  0x38   : > { %112 = dma.hbm_to_vmem [thread:$0]  (%p3329_p13), %s3575_s30, %s3564_s23, %s3577_s2, %s3567_s25, %s3494_s24, %s3494_s24, %s3495_s26  }
  0x39 PF: > { %p3334_p2 = scmp.ge.s32.totalorder %s3491_s9, 1  ;;  %p114_p7 = scmp.lt.s32.totalorder %s3491_s9, 7 }
  0x3b   : > { %p115_p8 = pnand %p3334_p2, %p114_p7 }
  0x3c   : > { %s3607_s27 = sand.u32 (!%p115_p8), 1, %s3483_s7  }
  0x3d   : > { %118 = sbr.rel (%p115_p8) target bundleno = 615 (0x267), region = 24  ;;  %s3335_s28 = sshll.u32 (!%p115_p8), %s3607_s27, 13 }
  0x3e   : > { %s121_s29 = scalar_lea.sflag (!%p115_p8), [#allocation3], %s3607_s27  ;;  %s3611_s3 = scalar_lea.vmem (!%p115_p8), [#allocation2], %s3335_s28 }
  0x44   : > { %3470 = dma.done.wait (%p3548_p6), %s121_s29, 131072  }
  0x45   : > { %3472 = vsyncadd (%p3548_p6), %s121_s29, 4294836224  ;;  %v155_v0 = vld [vmem:[%s3611_s3] sm:$0xff]  ;;  %v156_v1 = vld [vmem:[%s3611_s3 + $0x8] sm:$0xff]  ;;  %s3626_s16 = scalar_lea.vmem [#allocation5], %s3335_s28  ;;  %s3228_s23 = scalar_lea.sflag [#allocation4], %s3607_s27 }
  0x46   : > { %v157_v2 = vld [vmem:[%s3611_s3 + $0x10] sm:$0xff]  ;;  %v1179_v3 = vsub.f32 0.0, %v155_v0  ;;  %v1180_v4 = vsub.f32 0.0, %v156_v1  ;;  %v158_v6 = vld [vmem:[%s3611_s3 + $0x18] sm:$0xff]  ;;  %v159_v7 = vld [vmem:[%s3611_s3 + $0x20] sm:$0xff]  ;;  %s3338_s25 = sshll.u32 (%p3553_p9), %s3530_s10, 5 }
  0x47   : > { %v1181_v5 = vsub.f32 0.0, %v157_v2  ;;  %v160_v8 = vld [vmem:[%s3611_s3 + $0x28] sm:$0xff]  ;;  %v1182_v9 = vsub.f32 0.0, %v158_v6  ;;  %v1183_v10 = vsub.f32 0.0, %v159_v7  ;;  %v161_v12 = vld [vmem:[%s3611_s3 + $0x30] sm:$0xff]  ;;  %v162_v13 = vld [vmem:[%s3611_s3 + $0x38] sm:$0xff] }
  0x48   : > { %v1184_v11 = vsub.f32 0.0, %v160_v8  ;;  %v163_v14 = vld [vmem:[%s3611_s3 + $0x40] sm:$0xff]  ;;  %2203 = vst [vmem:[%s3626_s16] sm:$0xff] %v1179_v3  ;;  %2204 = vst [vmem:[%s3626_s16 + $0x8] sm:$0xff] %v1180_v4  ;;  %v1185_v15 = vsub.f32 0.0, %v161_v12  ;;  %v1186_v16 = vsub.f32 0.0, %v162_v13  ;;  %v164_v18 = vld [vmem:[%s3611_s3 + $0x48] sm:$0xff] }
  0x49   : > { %2205 = vst [vmem:[%s3626_s16 + $0x10] sm:$0xff] %v1181_v5  ;;  %v1187_v17 = vsub.f32 0.0, %v163_v14  ;;  %v165_v19 = vld [vmem:[%s3611_s3 + $0x50] sm:$0xff]  ;;  %v166_v20 = vld [vmem:[%s3611_s3 + $0x58] sm:$0xff]  ;;  %2206 = vst [vmem:[%s3626_s16 + $0x18] sm:$0xff] %v1182_v9  ;;  %v1188_v21 = vsub.f32 0.0, %v164_v18 }
  0x4a   : > { %2207 = vst [vmem:[%s3626_s16 + $0x20] sm:$0xff] %v1183_v10  ;;  %2208 = vst [vmem:[%s3626_s16 + $0x28] sm:$0xff] %v1184_v11  ;;  %v1189_v22 = vsub.f32 0.0, %v165_v19  ;;  %v1190_v23 = vsub.f32 0.0, %v166_v20  ;;  %v167_v24 = vld [vmem:[%s3611_s3 + $0x60] sm:$0xff]  ;;  %v168_v25 = vld [vmem:[%s3611_s3 + $0x68] sm:$0xff] }
  0x4b   : > { %v169_v26 = vld [vmem:[%s3611_s3 + $0x70] sm:$0xff]  ;;  %2209 = vst [vmem:[%s3626_s16 + $0x30] sm:$0xff] %v1185_v15  ;;  %2210 = vst [vmem:[%s3626_s16 + $0x38] sm:$0xff] %v1186_v16  ;;  %v1191_v27 = vsub.f32 0.0, %v167_v24  ;;  %v1192_v28 = vsub.f32 0.0, %v168_v25  ;;  %v170_v30 = vld [vmem:[%s3611_s3 + $0x78] sm:$0xff] }
  0x4c   : > { %2211 = vst [vmem:[%s3626_s16 + $0x40] sm:$0xff] %v1187_v17  ;;  %v1193_v29 = vsub.f32 0.0, %v169_v26  ;;  %v171_v31 = vld [vmem:[%s3611_s3 + $0x80] sm:$0xff]  ;;  %v172_v32 = vld [vmem:[%s3611_s3 + $0x88] sm:$0xff]  ;;  %2212 = vst [vmem:[%s3626_s16 + $0x48] sm:$0xff] %v1188_v21  ;;  %v1194_v33 = vsub.f32 0.0, %v170_v30 }
  0x4d   : > { %2213 = vst [vmem:[%s3626_s16 + $0x50] sm:$0xff] %v1189_v22  ;;  %2214 = vst [vmem:[%s3626_s16 + $0x58] sm:$0xff] %v1190_v23  ;;  %v1195_v34 = vsub.f32 0.0, %v171_v31  ;;  %v1196_v35 = vsub.f32 0.0, %v172_v32  ;;  %v173_v36 = vld [vmem:[%s3611_s3 + $0x90] sm:$0xff]  ;;  %v174_v37 = vld [vmem:[%s3611_s3 + $0x98] sm:$0xff] }
  0x4e   : > { %v175_v38 = vld [vmem:[%s3611_s3 + $0xa0] sm:$0xff]  ;;  %2215 = vst [vmem:[%s3626_s16 + $0x60] sm:$0xff] %v1191_v27  ;;  %2216 = vst [vmem:[%s3626_s16 + $0x68] sm:$0xff] %v1192_v28  ;;  %v1197_v39 = vsub.f32 0.0, %v173_v36  ;;  %v1198_v40 = vsub.f32 0.0, %v174_v37  ;;  %v176_v42 = vld [vmem:[%s3611_s3 + $0xa8] sm:$0xff] }
  0x4f   : > { %2217 = vst [vmem:[%s3626_s16 + $0x70] sm:$0xff] %v1193_v29  ;;  %v1199_v41 = vsub.f32 0.0, %v175_v38  ;;  %v177_v43 = vld [vmem:[%s3611_s3 + $0xb0] sm:$0xff]  ;;  %v178_v44 = vld [vmem:[%s3611_s3 + $0xb8] sm:$0xff]  ;;  %2218 = vst [vmem:[%s3626_s16 + $0x78] sm:$0xff] %v1194_v33  ;;  %v1200_v45 = vsub.f32 0.0, %v176_v42 }
  0x50   : > { %2219 = vst [vmem:[%s3626_s16 + $0x80] sm:$0xff] %v1195_v34  ;;  %2220 = vst [vmem:[%s3626_s16 + $0x88] sm:$0xff] %v1196_v35  ;;  %v1201_v46 = vsub.f32 0.0, %v177_v43  ;;  %v1202_v47 = vsub.f32 0.0, %v178_v44  ;;  %v179_v48 = vld [vmem:[%s3611_s3 + $0xc0] sm:$0xff]  ;;  %v180_v49 = vld [vmem:[%s3611_s3 + $0xc8] sm:$0xff] }
  0x51   : > { %v181_v50 = vld [vmem:[%s3611_s3 + $0xd0] sm:$0xff]  ;;  %2221 = vst [vmem:[%s3626_s16 + $0x90] sm:$0xff] %v1197_v39  ;;  %2222 = vst [vmem:[%s3626_s16 + $0x98] sm:$0xff] %v1198_v40  ;;  %v1203_v51 = vsub.f32 0.0, %v179_v48  ;;  %v1204_v52 = vsub.f32 0.0, %v180_v49  ;;  %v182_v54 = vld [vmem:[%s3611_s3 + $0xd8] sm:$0xff] }
  0x52   : > { %2223 = vst [vmem:[%s3626_s16 + $0xa0] sm:$0xff] %v1199_v41  ;;  %v1205_v53 = vsub.f32 0.0, %v181_v50  ;;  %v183_v55 = vld [vmem:[%s3611_s3 + $0xe0] sm:$0xff]  ;;  %v184_v56 = vld [vmem:[%s3611_s3 + $0xe8] sm:$0xff]  ;;  %2224 = vst [vmem:[%s3626_s16 + $0xa8] sm:$0xff] %v1200_v45  ;;  %v1206_v57 = vsub.f32 0.0, %v182_v54 }
  0x53   : > { %2225 = vst [vmem:[%s3626_s16 + $0xb0] sm:$0xff] %v1201_v46  ;;  %2226 = vst [vmem:[%s3626_s16 + $0xb8] sm:$0xff] %v1202_v47  ;;  %v1207_v58 = vsub.f32 0.0, %v183_v55  ;;  %v1208_v59 = vsub.f32 0.0, %v184_v56  ;;  %v185_v60 = vld [vmem:[%s3611_s3 + $0xf0] sm:$0xff]  ;;  %v186_v61 = vld [vmem:[%s3611_s3 + $0xf8] sm:$0xff] }
  0x54   : > { %v187_v62 = vld [vmem:[%s3611_s3 + $0x100] sm:$0xff]  ;;  %2227 = vst [vmem:[%s3626_s16 + $0xc0] sm:$0xff] %v1203_v51  ;;  %2228 = vst [vmem:[%s3626_s16 + $0xc8] sm:$0xff] %v1204_v52  ;;  %v1209_v63 = vsub.f32 0.0, %v185_v60  ;;  %v1210_v0 = vsub.f32 0.0, %v186_v61  ;;  %v188_v2 = vld [vmem:[%s3611_s3 + $0x108] sm:$0xff] }
  0x55   : > { %2229 = vst [vmem:[%s3626_s16 + $0xd0] sm:$0xff] %v1205_v53  ;;  %v1211_v1 = vsub.f32 0.0, %v187_v62  ;;  %v189_v3 = vld [vmem:[%s3611_s3 + $0x110] sm:$0xff]  ;;  %v190_v4 = vld [vmem:[%s3611_s3 + $0x118] sm:$0xff]  ;;  %2230 = vst [vmem:[%s3626_s16 + $0xd8] sm:$0xff] %v1206_v57  ;;  %v1212_v5 = vsub.f32 0.0, %v188_v2 }
  0x56   : > { %2231 = vst [vmem:[%s3626_s16 + $0xe0] sm:$0xff] %v1207_v58  ;;  %2232 = vst [vmem:[%s3626_s16 + $0xe8] sm:$0xff] %v1208_v59  ;;  %v1213_v6 = vsub.f32 0.0, %v189_v3  ;;  %v1214_v7 = vsub.f32 0.0, %v190_v4  ;;  %v191_v8 = vld [vmem:[%s3611_s3 + $0x120] sm:$0xff]  ;;  %v192_v9 = vld [vmem:[%s3611_s3 + $0x128] sm:$0xff] }
  0x57   : > { %v193_v10 = vld [vmem:[%s3611_s3 + $0x130] sm:$0xff]  ;;  %2233 = vst [vmem:[%s3626_s16 + $0xf0] sm:$0xff] %v1209_v63  ;;  %2234 = vst [vmem:[%s3626_s16 + $0xf8] sm:$0xff] %v1210_v0  ;;  %v1215_v11 = vsub.f32 0.0, %v191_v8  ;;  %v1216_v12 = vsub.f32 0.0, %v192_v9  ;;  %v194_v14 = vld [vmem:[%s3611_s3 + $0x138] sm:$0xff] }
  0x58   : > { %2235 = vst [vmem:[%s3626_s16 + $0x100] sm:$0xff] %v1211_v1  ;;  %v1217_v13 = vsub.f32 0.0, %v193_v10  ;;  %v195_v15 = vld [vmem:[%s3611_s3 + $0x140] sm:$0xff]  ;;  %v196_v16 = vld [vmem:[%s3611_s3 + $0x148] sm:$0xff]  ;;  %2236 = vst [vmem:[%s3626_s16 + $0x108] sm:$0xff] %v1212_v5  ;;  %v1218_v17 = vsub.f32 0.0, %v194_v14 }
  0x59   : > { %2237 = vst [vmem:[%s3626_s16 + $0x110] sm:$0xff] %v1213_v6  ;;  %2238 = vst [vmem:[%s3626_s16 + $0x118] sm:$0xff] %v1214_v7  ;;  %v1219_v18 = vsub.f32 0.0, %v195_v15  ;;  %v1220_v19 = vsub.f32 0.0, %v196_v16  ;;  %v197_v20 = vld [vmem:[%s3611_s3 + $0x150] sm:$0xff]  ;;  %v198_v21 = vld [vmem:[%s3611_s3 + $0x158] sm:$0xff] }
  0x5a   : > { %v199_v22 = vld [vmem:[%s3611_s3 + $0x160] sm:$0xff]  ;;  %2239 = vst [vmem:[%s3626_s16 + $0x120] sm:$0xff] %v1215_v11  ;;  %2240 = vst [vmem:[%s3626_s16 + $0x128] sm:$0xff] %v1216_v12  ;;  %v1221_v23 = vsub.f32 0.0, %v197_v20  ;;  %v1222_v24 = vsub.f32 0.0, %v198_v21  ;;  %v200_v26 = vld [vmem:[%s3611_s3 + $0x168] sm:$0xff] }
  0x5b   : > { %2241 = vst [vmem:[%s3626_s16 + $0x130] sm:$0xff] %v1217_v13  ;;  %v1223_v25 = vsub.f32 0.0, %v199_v22  ;;  %v201_v27 = vld [vmem:[%s3611_s3 + $0x170] sm:$0xff]  ;;  %v202_v28 = vld [vmem:[%s3611_s3 + $0x178] sm:$0xff]  ;;  %2242 = vst [vmem:[%s3626_s16 + $0x138] sm:$0xff] %v1218_v17  ;;  %v1224_v29 = vsub.f32 0.0, %v200_v26 }
  0x5c   : > { %2243 = vst [vmem:[%s3626_s16 + $0x140] sm:$0xff] %v1219_v18  ;;  %2244 = vst [vmem:[%s3626_s16 + $0x148] sm:$0xff] %v1220_v19  ;;  %v1225_v30 = vsub.f32 0.0, %v201_v27  ;;  %v1226_v31 = vsub.f32 0.0, %v202_v28  ;;  %v203_v32 = vld [vmem:[%s3611_s3 + $0x180] sm:$0xff]  ;;  %v204_v33 = vld [vmem:[%s3611_s3 + $0x188] sm:$0xff] }
  0x5d   : > { %v205_v34 = vld [vmem:[%s3611_s3 + $0x190] sm:$0xff]  ;;  %2245 = vst [vmem:[%s3626_s16 + $0x150] sm:$0xff] %v1221_v23  ;;  %2246 = vst [vmem:[%s3626_s16 + $0x158] sm:$0xff] %v1222_v24  ;;  %v1227_v35 = vsub.f32 0.0, %v203_v32  ;;  %v1228_v36 = vsub.f32 0.0, %v204_v33  ;;  %v206_v38 = vld [vmem:[%s3611_s3 + $0x198] sm:$0xff] }
  0x5e   : > { %2247 = vst [vmem:[%s3626_s16 + $0x160] sm:$0xff] %v1223_v25  ;;  %v1229_v37 = vsub.f32 0.0, %v205_v34  ;;  %v207_v39 = vld [vmem:[%s3611_s3 + $0x1a0] sm:$0xff]  ;;  %v208_v40 = vld [vmem:[%s3611_s3 + $0x1a8] sm:$0xff]  ;;  %2248 = vst [vmem:[%s3626_s16 + $0x168] sm:$0xff] %v1224_v29  ;;  %v1230_v41 = vsub.f32 0.0, %v206_v38 }
  0x5f   : > { %2249 = vst [vmem:[%s3626_s16 + $0x170] sm:$0xff] %v1225_v30  ;;  %2250 = vst [vmem:[%s3626_s16 + $0x178] sm:$0xff] %v1226_v31  ;;  %v1231_v42 = vsub.f32 0.0, %v207_v39  ;;  %v1232_v43 = vsub.f32 0.0, %v208_v40  ;;  %v209_v44 = vld [vmem:[%s3611_s3 + $0x1b0] sm:$0xff]  ;;  %v210_v45 = vld [vmem:[%s3611_s3 + $0x1b8] sm:$0xff] }
  0x60   : > { %v211_v46 = vld [vmem:[%s3611_s3 + $0x1c0] sm:$0xff]  ;;  %2251 = vst [vmem:[%s3626_s16 + $0x180] sm:$0xff] %v1227_v35  ;;  %2252 = vst [vmem:[%s3626_s16 + $0x188] sm:$0xff] %v1228_v36  ;;  %v1233_v47 = vsub.f32 0.0, %v209_v44  ;;  %v1234_v48 = vsub.f32 0.0, %v210_v45  ;;  %v212_v50 = vld [vmem:[%s3611_s3 + $0x1c8] sm:$0xff] }
  0x61   : > { %2253 = vst [vmem:[%s3626_s16 + $0x190] sm:$0xff] %v1229_v37  ;;  %v1235_v49 = vsub.f32 0.0, %v211_v46  ;;  %v213_v51 = vld [vmem:[%s3611_s3 + $0x1d0] sm:$0xff]  ;;  %v214_v52 = vld [vmem:[%s3611_s3 + $0x1d8] sm:$0xff]  ;;  %2254 = vst [vmem:[%s3626_s16 + $0x198] sm:$0xff] %v1230_v41  ;;  %v1236_v53 = vsub.f32 0.0, %v212_v50 }
  0x62   : > { %2255 = vst [vmem:[%s3626_s16 + $0x1a0] sm:$0xff] %v1231_v42  ;;  %2256 = vst [vmem:[%s3626_s16 + $0x1a8] sm:$0xff] %v1232_v43  ;;  %v1237_v54 = vsub.f32 0.0, %v213_v51  ;;  %v1238_v55 = vsub.f32 0.0, %v214_v52  ;;  %v215_v56 = vld [vmem:[%s3611_s3 + $0x1e0] sm:$0xff]  ;;  %v216_v57 = vld [vmem:[%s3611_s3 + $0x1e8] sm:$0xff] }
  0x63   : > { %v217_v58 = vld [vmem:[%s3611_s3 + $0x1f0] sm:$0xff]  ;;  %2257 = vst [vmem:[%s3626_s16 + $0x1b0] sm:$0xff] %v1233_v47  ;;  %2258 = vst [vmem:[%s3626_s16 + $0x1b8] sm:$0xff] %v1234_v48  ;;  %v1239_v59 = vsub.f32 0.0, %v215_v56  ;;  %v1240_v60 = vsub.f32 0.0, %v216_v57  ;;  %v218_v62 = vld [vmem:[%s3611_s3 + $0x1f8] sm:$0xff] }
  0x64   : > { %2259 = vst [vmem:[%s3626_s16 + $0x1c0] sm:$0xff] %v1235_v49  ;;  %v1241_v61 = vsub.f32 0.0, %v217_v58  ;;  %v219_v63 = vld [vmem:[%s3611_s3 + $0x200] sm:$0xff]  ;;  %v220_v0 = vld [vmem:[%s3611_s3 + $0x208] sm:$0xff]  ;;  %2260 = vst [vmem:[%s3626_s16 + $0x1c8] sm:$0xff] %v1236_v53  ;;  %v1242_v1 = vsub.f32 0.0, %v218_v62 }
  0x65   : > { %2261 = vst [vmem:[%s3626_s16 + $0x1d0] sm:$0xff] %v1237_v54  ;;  %2262 = vst [vmem:[%s3626_s16 + $0x1d8] sm:$0xff] %v1238_v55  ;;  %v1243_v2 = vsub.f32 0.0, %v219_v63  ;;  %v1244_v3 = vsub.f32 0.0, %v220_v0  ;;  %v221_v4 = vld [vmem:[%s3611_s3 + $0x210] sm:$0xff]  ;;  %v222_v5 = vld [vmem:[%s3611_s3 + $0x218] sm:$0xff] }
  0x66   : > { %v223_v6 = vld [vmem:[%s3611_s3 + $0x220] sm:$0xff]  ;;  %2263 = vst [vmem:[%s3626_s16 + $0x1e0] sm:$0xff] %v1239_v59  ;;  %2264 = vst [vmem:[%s3626_s16 + $0x1e8] sm:$0xff] %v1240_v60  ;;  %v1245_v7 = vsub.f32 0.0, %v221_v4  ;;  %v1246_v8 = vsub.f32 0.0, %v222_v5  ;;  %v224_v10 = vld [vmem:[%s3611_s3 + $0x228] sm:$0xff] }
  0x67   : > { %2265 = vst [vmem:[%s3626_s16 + $0x1f0] sm:$0xff] %v1241_v61  ;;  %v1247_v9 = vsub.f32 0.0, %v223_v6  ;;  %v225_v11 = vld [vmem:[%s3611_s3 + $0x230] sm:$0xff]  ;;  %v226_v12 = vld [vmem:[%s3611_s3 + $0x238] sm:$0xff]  ;;  %2266 = vst [vmem:[%s3626_s16 + $0x1f8] sm:$0xff] %v1242_v1  ;;  %v1248_v13 = vsub.f32 0.0, %v224_v10 }
  0x68   : > { %2267 = vst [vmem:[%s3626_s16 + $0x200] sm:$0xff] %v1243_v2  ;;  %2268 = vst [vmem:[%s3626_s16 + $0x208] sm:$0xff] %v1244_v3  ;;  %v1249_v14 = vsub.f32 0.0, %v225_v11  ;;  %v1250_v15 = vsub.f32 0.0, %v226_v12  ;;  %v227_v16 = vld [vmem:[%s3611_s3 + $0x240] sm:$0xff]  ;;  %v228_v17 = vld [vmem:[%s3611_s3 + $0x248] sm:$0xff] }
  0x69   : > { %v229_v18 = vld [vmem:[%s3611_s3 + $0x250] sm:$0xff]  ;;  %2269 = vst [vmem:[%s3626_s16 + $0x210] sm:$0xff] %v1245_v7  ;;  %2270 = vst [vmem:[%s3626_s16 + $0x218] sm:$0xff] %v1246_v8  ;;  %v1251_v19 = vsub.f32 0.0, %v227_v16  ;;  %v1252_v20 = vsub.f32 0.0, %v228_v17  ;;  %v230_v22 = vld [vmem:[%s3611_s3 + $0x258] sm:$0xff] }
  0x6a   : > { %2271 = vst [vmem:[%s3626_s16 + $0x220] sm:$0xff] %v1247_v9  ;;  %v1253_v21 = vsub.f32 0.0, %v229_v18  ;;  %v231_v23 = vld [vmem:[%s3611_s3 + $0x260] sm:$0xff]  ;;  %v232_v24 = vld [vmem:[%s3611_s3 + $0x268] sm:$0xff]  ;;  %2272 = vst [vmem:[%s3626_s16 + $0x228] sm:$0xff] %v1248_v13  ;;  %v1254_v25 = vsub.f32 0.0, %v230_v22 }
  0x6b   : > { %2273 = vst [vmem:[%s3626_s16 + $0x230] sm:$0xff] %v1249_v14  ;;  %2274 = vst [vmem:[%s3626_s16 + $0x238] sm:$0xff] %v1250_v15  ;;  %v1255_v26 = vsub.f32 0.0, %v231_v23  ;;  %v1256_v27 = vsub.f32 0.0, %v232_v24  ;;  %v233_v28 = vld [vmem:[%s3611_s3 + $0x270] sm:$0xff]  ;;  %v234_v29 = vld [vmem:[%s3611_s3 + $0x278] sm:$0xff] }
  0x6c   : > { %v235_v30 = vld [vmem:[%s3611_s3 + $0x280] sm:$0xff]  ;;  %2275 = vst [vmem:[%s3626_s16 + $0x240] sm:$0xff] %v1251_v19  ;;  %2276 = vst [vmem:[%s3626_s16 + $0x248] sm:$0xff] %v1252_v20  ;;  %v1257_v31 = vsub.f32 0.0, %v233_v28  ;;  %v1258_v32 = vsub.f32 0.0, %v234_v29  ;;  %v236_v34 = vld [vmem:[%s3611_s3 + $0x288] sm:$0xff] }
  0x6d   : > { %2277 = vst [vmem:[%s3626_s16 + $0x250] sm:$0xff] %v1253_v21  ;;  %v1259_v33 = vsub.f32 0.0, %v235_v30  ;;  %v237_v35 = vld [vmem:[%s3611_s3 + $0x290] sm:$0xff]  ;;  %v238_v36 = vld [vmem:[%s3611_s3 + $0x298] sm:$0xff]  ;;  %2278 = vst [vmem:[%s3626_s16 + $0x258] sm:$0xff] %v1254_v25  ;;  %v1260_v37 = vsub.f32 0.0, %v236_v34 }
  0x6e   : > { %2279 = vst [vmem:[%s3626_s16 + $0x260] sm:$0xff] %v1255_v26  ;;  %2280 = vst [vmem:[%s3626_s16 + $0x268] sm:$0xff] %v1256_v27  ;;  %v1261_v38 = vsub.f32 0.0, %v237_v35  ;;  %v1262_v39 = vsub.f32 0.0, %v238_v36  ;;  %v239_v40 = vld [vmem:[%s3611_s3 + $0x2a0] sm:$0xff]  ;;  %v240_v41 = vld [vmem:[%s3611_s3 + $0x2a8] sm:$0xff] }
  0x6f   : > { %v241_v42 = vld [vmem:[%s3611_s3 + $0x2b0] sm:$0xff]  ;;  %2281 = vst [vmem:[%s3626_s16 + $0x270] sm:$0xff] %v1257_v31  ;;  %2282 = vst [vmem:[%s3626_s16 + $0x278] sm:$0xff] %v1258_v32  ;;  %v1263_v43 = vsub.f32 0.0, %v239_v40  ;;  %v1264_v44 = vsub.f32 0.0, %v240_v41  ;;  %v242_v46 = vld [vmem:[%s3611_s3 + $0x2b8] sm:$0xff] }
  0x70   : > { %2283 = vst [vmem:[%s3626_s16 + $0x280] sm:$0xff] %v1259_v33  ;;  %v1265_v45 = vsub.f32 0.0, %v241_v42  ;;  %v243_v47 = vld [vmem:[%s3611_s3 + $0x2c0] sm:$0xff]  ;;  %v244_v48 = vld [vmem:[%s3611_s3 + $0x2c8] sm:$0xff]  ;;  %2284 = vst [vmem:[%s3626_s16 + $0x288] sm:$0xff] %v1260_v37  ;;  %v1266_v49 = vsub.f32 0.0, %v242_v46 }
  0x71   : > { %2285 = vst [vmem:[%s3626_s16 + $0x290] sm:$0xff] %v1261_v38  ;;  %2286 = vst [vmem:[%s3626_s16 + $0x298] sm:$0xff] %v1262_v39  ;;  %v1267_v50 = vsub.f32 0.0, %v243_v47  ;;  %v1268_v51 = vsub.f32 0.0, %v244_v48  ;;  %v245_v52 = vld [vmem:[%s3611_s3 + $0x2d0] sm:$0xff]  ;;  %v246_v53 = vld [vmem:[%s3611_s3 + $0x2d8] sm:$0xff] }
  0x72   : > { %v247_v54 = vld [vmem:[%s3611_s3 + $0x2e0] sm:$0xff]  ;;  %2287 = vst [vmem:[%s3626_s16 + $0x2a0] sm:$0xff] %v1263_v43  ;;  %2288 = vst [vmem:[%s3626_s16 + $0x2a8] sm:$0xff] %v1264_v44  ;;  %v1269_v55 = vsub.f32 0.0, %v245_v52  ;;  %v1270_v56 = vsub.f32 0.0, %v246_v53  ;;  %v248_v58 = vld [vmem:[%s3611_s3 + $0x2e8] sm:$0xff] }
  0x73   : > { %2289 = vst [vmem:[%s3626_s16 + $0x2b0] sm:$0xff] %v1265_v45  ;;  %v1271_v57 = vsub.f32 0.0, %v247_v54  ;;  %v249_v59 = vld [vmem:[%s3611_s3 + $0x2f0] sm:$0xff]  ;;  %v250_v60 = vld [vmem:[%s3611_s3 + $0x2f8] sm:$0xff]  ;;  %2290 = vst [vmem:[%s3626_s16 + $0x2b8] sm:$0xff] %v1266_v49  ;;  %v1272_v61 = vsub.f32 0.0, %v248_v58 }
  0x74   : > { %2291 = vst [vmem:[%s3626_s16 + $0x2c0] sm:$0xff] %v1267_v50  ;;  %2292 = vst [vmem:[%s3626_s16 + $0x2c8] sm:$0xff] %v1268_v51  ;;  %v1273_v62 = vsub.f32 0.0, %v249_v59  ;;  %v1274_v63 = vsub.f32 0.0, %v250_v60  ;;  %v251_v0 = vld [vmem:[%s3611_s3 + $0x300] sm:$0xff]  ;;  %v252_v1 = vld [vmem:[%s3611_s3 + $0x308] sm:$0xff] }
  0x75   : > { %v253_v2 = vld [vmem:[%s3611_s3 + $0x310] sm:$0xff]  ;;  %2293 = vst [vmem:[%s3626_s16 + $0x2d0] sm:$0xff] %v1269_v55  ;;  %2294 = vst [vmem:[%s3626_s16 + $0x2d8] sm:$0xff] %v1270_v56  ;;  %v1275_v3 = vsub.f32 0.0, %v251_v0  ;;  %v1276_v4 = vsub.f32 0.0, %v252_v1  ;;  %v254_v6 = vld [vmem:[%s3611_s3 + $0x318] sm:$0xff] }
  0x76   : > { %2295 = vst [vmem:[%s3626_s16 + $0x2e0] sm:$0xff] %v1271_v57  ;;  %v1277_v5 = vsub.f32 0.0, %v253_v2  ;;  %v255_v7 = vld [vmem:[%s3611_s3 + $0x320] sm:$0xff]  ;;  %v256_v8 = vld [vmem:[%s3611_s3 + $0x328] sm:$0xff]  ;;  %2296 = vst [vmem:[%s3626_s16 + $0x2e8] sm:$0xff] %v1272_v61  ;;  %v1278_v9 = vsub.f32 0.0, %v254_v6 }
  0x77   : > { %2297 = vst [vmem:[%s3626_s16 + $0x2f0] sm:$0xff] %v1273_v62  ;;  %2298 = vst [vmem:[%s3626_s16 + $0x2f8] sm:$0xff] %v1274_v63  ;;  %v1279_v10 = vsub.f32 0.0, %v255_v7  ;;  %v1280_v11 = vsub.f32 0.0, %v256_v8  ;;  %v257_v12 = vld [vmem:[%s3611_s3 + $0x330] sm:$0xff]  ;;  %v258_v13 = vld [vmem:[%s3611_s3 + $0x338] sm:$0xff] }
  0x78   : > { %v259_v14 = vld [vmem:[%s3611_s3 + $0x340] sm:$0xff]  ;;  %2299 = vst [vmem:[%s3626_s16 + $0x300] sm:$0xff] %v1275_v3  ;;  %2300 = vst [vmem:[%s3626_s16 + $0x308] sm:$0xff] %v1276_v4  ;;  %v1281_v15 = vsub.f32 0.0, %v257_v12  ;;  %v1282_v16 = vsub.f32 0.0, %v258_v13  ;;  %v260_v18 = vld [vmem:[%s3611_s3 + $0x348] sm:$0xff] }
  0x79   : > { %2301 = vst [vmem:[%s3626_s16 + $0x310] sm:$0xff] %v1277_v5  ;;  %v1283_v17 = vsub.f32 0.0, %v259_v14  ;;  %v261_v19 = vld [vmem:[%s3611_s3 + $0x350] sm:$0xff]  ;;  %v262_v20 = vld [vmem:[%s3611_s3 + $0x358] sm:$0xff]  ;;  %2302 = vst [vmem:[%s3626_s16 + $0x318] sm:$0xff] %v1278_v9  ;;  %v1284_v21 = vsub.f32 0.0, %v260_v18 }
  0x7a   : > { %2303 = vst [vmem:[%s3626_s16 + $0x320] sm:$0xff] %v1279_v10  ;;  %2304 = vst [vmem:[%s3626_s16 + $0x328] sm:$0xff] %v1280_v11  ;;  %v1285_v22 = vsub.f32 0.0, %v261_v19  ;;  %v1286_v23 = vsub.f32 0.0, %v262_v20  ;;  %v263_v24 = vld [vmem:[%s3611_s3 + $0x360] sm:$0xff]  ;;  %v264_v25 = vld [vmem:[%s3611_s3 + $0x368] sm:$0xff] }
  0x7b   : > { %v265_v26 = vld [vmem:[%s3611_s3 + $0x370] sm:$0xff]  ;;  %2305 = vst [vmem:[%s3626_s16 + $0x330] sm:$0xff] %v1281_v15  ;;  %2306 = vst [vmem:[%s3626_s16 + $0x338] sm:$0xff] %v1282_v16  ;;  %v1287_v27 = vsub.f32 0.0, %v263_v24  ;;  %v1288_v28 = vsub.f32 0.0, %v264_v25  ;;  %v266_v30 = vld [vmem:[%s3611_s3 + $0x378] sm:$0xff] }
  0x7c   : > { %2307 = vst [vmem:[%s3626_s16 + $0x340] sm:$0xff] %v1283_v17  ;;  %v1289_v29 = vsub.f32 0.0, %v265_v26  ;;  %v267_v31 = vld [vmem:[%s3611_s3 + $0x380] sm:$0xff]  ;;  %v268_v32 = vld [vmem:[%s3611_s3 + $0x388] sm:$0xff]  ;;  %2308 = vst [vmem:[%s3626_s16 + $0x348] sm:$0xff] %v1284_v21  ;;  %v1290_v33 = vsub.f32 0.0, %v266_v30 }
  0x7d   : > { %2309 = vst [vmem:[%s3626_s16 + $0x350] sm:$0xff] %v1285_v22  ;;  %2310 = vst [vmem:[%s3626_s16 + $0x358] sm:$0xff] %v1286_v23  ;;  %v1291_v34 = vsub.f32 0.0, %v267_v31  ;;  %v1292_v35 = vsub.f32 0.0, %v268_v32  ;;  %v269_v36 = vld [vmem:[%s3611_s3 + $0x390] sm:$0xff]  ;;  %v270_v37 = vld [vmem:[%s3611_s3 + $0x398] sm:$0xff] }
  0x7e   : > { %v271_v38 = vld [vmem:[%s3611_s3 + $0x3a0] sm:$0xff]  ;;  %2311 = vst [vmem:[%s3626_s16 + $0x360] sm:$0xff] %v1287_v27  ;;  %2312 = vst [vmem:[%s3626_s16 + $0x368] sm:$0xff] %v1288_v28  ;;  %v1293_v39 = vsub.f32 0.0, %v269_v36  ;;  %v1294_v40 = vsub.f32 0.0, %v270_v37  ;;  %v272_v42 = vld [vmem:[%s3611_s3 + $0x3a8] sm:$0xff] }
  0x7f   : > { %2313 = vst [vmem:[%s3626_s16 + $0x370] sm:$0xff] %v1289_v29  ;;  %v1295_v41 = vsub.f32 0.0, %v271_v38  ;;  %v273_v43 = vld [vmem:[%s3611_s3 + $0x3b0] sm:$0xff]  ;;  %v274_v44 = vld [vmem:[%s3611_s3 + $0x3b8] sm:$0xff]  ;;  %2314 = vst [vmem:[%s3626_s16 + $0x378] sm:$0xff] %v1290_v33  ;;  %v1296_v45 = vsub.f32 0.0, %v272_v42 }
  0x80   : > { %2315 = vst [vmem:[%s3626_s16 + $0x380] sm:$0xff] %v1291_v34  ;;  %2316 = vst [vmem:[%s3626_s16 + $0x388] sm:$0xff] %v1292_v35  ;;  %v1297_v46 = vsub.f32 0.0, %v273_v43  ;;  %v1298_v47 = vsub.f32 0.0, %v274_v44  ;;  %v275_v48 = vld [vmem:[%s3611_s3 + $0x3c0] sm:$0xff]  ;;  %v276_v49 = vld [vmem:[%s3611_s3 + $0x3c8] sm:$0xff] }
  0x81   : > { %v277_v50 = vld [vmem:[%s3611_s3 + $0x3d0] sm:$0xff]  ;;  %2317 = vst [vmem:[%s3626_s16 + $0x390] sm:$0xff] %v1293_v39  ;;  %2318 = vst [vmem:[%s3626_s16 + $0x398] sm:$0xff] %v1294_v40  ;;  %v1299_v51 = vsub.f32 0.0, %v275_v48  ;;  %v1300_v52 = vsub.f32 0.0, %v276_v49  ;;  %v278_v54 = vld [vmem:[%s3611_s3 + $0x3d8] sm:$0xff] }
  0x82   : > { %2319 = vst [vmem:[%s3626_s16 + $0x3a0] sm:$0xff] %v1295_v41  ;;  %v1301_v53 = vsub.f32 0.0, %v277_v50  ;;  %v279_v55 = vld [vmem:[%s3611_s3 + $0x3e0] sm:$0xff]  ;;  %v280_v56 = vld [vmem:[%s3611_s3 + $0x3e8] sm:$0xff]  ;;  %2320 = vst [vmem:[%s3626_s16 + $0x3a8] sm:$0xff] %v1296_v45  ;;  %v1302_v57 = vsub.f32 0.0, %v278_v54 }
  0x83   : > { %2321 = vst [vmem:[%s3626_s16 + $0x3b0] sm:$0xff] %v1297_v46  ;;  %2322 = vst [vmem:[%s3626_s16 + $0x3b8] sm:$0xff] %v1298_v47  ;;  %v1303_v58 = vsub.f32 0.0, %v279_v55  ;;  %v1304_v59 = vsub.f32 0.0, %v280_v56  ;;  %v281_v60 = vld [vmem:[%s3611_s3 + $0x3f0] sm:$0xff]  ;;  %v282_v61 = vld [vmem:[%s3611_s3 + $0x3f8] sm:$0xff] }
  0x84   : > { %v283_v62 = vld [vmem:[%s3611_s3 + $0x400] sm:$0xff]  ;;  %2323 = vst [vmem:[%s3626_s16 + $0x3c0] sm:$0xff] %v1299_v51  ;;  %2324 = vst [vmem:[%s3626_s16 + $0x3c8] sm:$0xff] %v1300_v52  ;;  %v1305_v63 = vsub.f32 0.0, %v281_v60  ;;  %v1306_v0 = vsub.f32 0.0, %v282_v61  ;;  %v284_v2 = vld [vmem:[%s3611_s3 + $0x408] sm:$0xff] }
  0x85   : > { %2325 = vst [vmem:[%s3626_s16 + $0x3d0] sm:$0xff] %v1301_v53  ;;  %v1307_v1 = vsub.f32 0.0, %v283_v62  ;;  %v285_v3 = vld [vmem:[%s3611_s3 + $0x410] sm:$0xff]  ;;  %v286_v4 = vld [vmem:[%s3611_s3 + $0x418] sm:$0xff]  ;;  %2326 = vst [vmem:[%s3626_s16 + $0x3d8] sm:$0xff] %v1302_v57  ;;  %v1308_v5 = vsub.f32 0.0, %v284_v2 }
  0x86   : > { %2327 = vst [vmem:[%s3626_s16 + $0x3e0] sm:$0xff] %v1303_v58  ;;  %2328 = vst [vmem:[%s3626_s16 + $0x3e8] sm:$0xff] %v1304_v59  ;;  %v1309_v6 = vsub.f32 0.0, %v285_v3  ;;  %v1310_v7 = vsub.f32 0.0, %v286_v4  ;;  %v287_v8 = vld [vmem:[%s3611_s3 + $0x420] sm:$0xff]  ;;  %v288_v9 = vld [vmem:[%s3611_s3 + $0x428] sm:$0xff] }
  0x87   : > { %v289_v10 = vld [vmem:[%s3611_s3 + $0x430] sm:$0xff]  ;;  %2329 = vst [vmem:[%s3626_s16 + $0x3f0] sm:$0xff] %v1305_v63  ;;  %2330 = vst [vmem:[%s3626_s16 + $0x3f8] sm:$0xff] %v1306_v0  ;;  %v1311_v11 = vsub.f32 0.0, %v287_v8  ;;  %v1312_v12 = vsub.f32 0.0, %v288_v9  ;;  %v290_v14 = vld [vmem:[%s3611_s3 + $0x438] sm:$0xff] }
  0x88   : > { %2331 = vst [vmem:[%s3626_s16 + $0x400] sm:$0xff] %v1307_v1  ;;  %v1313_v13 = vsub.f32 0.0, %v289_v10  ;;  %v291_v15 = vld [vmem:[%s3611_s3 + $0x440] sm:$0xff]  ;;  %v292_v16 = vld [vmem:[%s3611_s3 + $0x448] sm:$0xff]  ;;  %2332 = vst [vmem:[%s3626_s16 + $0x408] sm:$0xff] %v1308_v5  ;;  %v1314_v17 = vsub.f32 0.0, %v290_v14 }
  0x89   : > { %2333 = vst [vmem:[%s3626_s16 + $0x410] sm:$0xff] %v1309_v6  ;;  %2334 = vst [vmem:[%s3626_s16 + $0x418] sm:$0xff] %v1310_v7  ;;  %v1315_v18 = vsub.f32 0.0, %v291_v15  ;;  %v1316_v19 = vsub.f32 0.0, %v292_v16  ;;  %v293_v20 = vld [vmem:[%s3611_s3 + $0x450] sm:$0xff]  ;;  %v294_v21 = vld [vmem:[%s3611_s3 + $0x458] sm:$0xff] }
  0x8a   : > { %v295_v22 = vld [vmem:[%s3611_s3 + $0x460] sm:$0xff]  ;;  %2335 = vst [vmem:[%s3626_s16 + $0x420] sm:$0xff] %v1311_v11  ;;  %2336 = vst [vmem:[%s3626_s16 + $0x428] sm:$0xff] %v1312_v12  ;;  %v1317_v23 = vsub.f32 0.0, %v293_v20  ;;  %v1318_v24 = vsub.f32 0.0, %v294_v21  ;;  %v296_v26 = vld [vmem:[%s3611_s3 + $0x468] sm:$0xff] }
  0x8b   : > { %2337 = vst [vmem:[%s3626_s16 + $0x430] sm:$0xff] %v1313_v13  ;;  %v1319_v25 = vsub.f32 0.0, %v295_v22  ;;  %v297_v27 = vld [vmem:[%s3611_s3 + $0x470] sm:$0xff]  ;;  %v298_v28 = vld [vmem:[%s3611_s3 + $0x478] sm:$0xff]  ;;  %2338 = vst [vmem:[%s3626_s16 + $0x438] sm:$0xff] %v1314_v17  ;;  %v1320_v29 = vsub.f32 0.0, %v296_v26 }
  0x8c   : > { %2339 = vst [vmem:[%s3626_s16 + $0x440] sm:$0xff] %v1315_v18  ;;  %2340 = vst [vmem:[%s3626_s16 + $0x448] sm:$0xff] %v1316_v19  ;;  %v1321_v30 = vsub.f32 0.0, %v297_v27  ;;  %v1322_v31 = vsub.f32 0.0, %v298_v28  ;;  %v299_v32 = vld [vmem:[%s3611_s3 + $0x480] sm:$0xff]  ;;  %v300_v33 = vld [vmem:[%s3611_s3 + $0x488] sm:$0xff] }
  0x8d   : > { %v301_v34 = vld [vmem:[%s3611_s3 + $0x490] sm:$0xff]  ;;  %2341 = vst [vmem:[%s3626_s16 + $0x450] sm:$0xff] %v1317_v23  ;;  %2342 = vst [vmem:[%s3626_s16 + $0x458] sm:$0xff] %v1318_v24  ;;  %v1323_v35 = vsub.f32 0.0, %v299_v32  ;;  %v1324_v36 = vsub.f32 0.0, %v300_v33  ;;  %v302_v38 = vld [vmem:[%s3611_s3 + $0x498] sm:$0xff] }
  0x8e   : > { %2343 = vst [vmem:[%s3626_s16 + $0x460] sm:$0xff] %v1319_v25  ;;  %v1325_v37 = vsub.f32 0.0, %v301_v34  ;;  %v303_v39 = vld [vmem:[%s3611_s3 + $0x4a0] sm:$0xff]  ;;  %v304_v40 = vld [vmem:[%s3611_s3 + $0x4a8] sm:$0xff]  ;;  %2344 = vst [vmem:[%s3626_s16 + $0x468] sm:$0xff] %v1320_v29  ;;  %v1326_v41 = vsub.f32 0.0, %v302_v38 }
  0x8f   : > { %2345 = vst [vmem:[%s3626_s16 + $0x470] sm:$0xff] %v1321_v30  ;;  %2346 = vst [vmem:[%s3626_s16 + $0x478] sm:$0xff] %v1322_v31  ;;  %v1327_v42 = vsub.f32 0.0, %v303_v39  ;;  %v1328_v43 = vsub.f32 0.0, %v304_v40  ;;  %v305_v44 = vld [vmem:[%s3611_s3 + $0x4b0] sm:$0xff]  ;;  %v306_v45 = vld [vmem:[%s3611_s3 + $0x4b8] sm:$0xff] }
  0x90   : > { %v307_v46 = vld [vmem:[%s3611_s3 + $0x4c0] sm:$0xff]  ;;  %2347 = vst [vmem:[%s3626_s16 + $0x480] sm:$0xff] %v1323_v35  ;;  %2348 = vst [vmem:[%s3626_s16 + $0x488] sm:$0xff] %v1324_v36  ;;  %v1329_v47 = vsub.f32 0.0, %v305_v44  ;;  %v1330_v48 = vsub.f32 0.0, %v306_v45  ;;  %v308_v50 = vld [vmem:[%s3611_s3 + $0x4c8] sm:$0xff] }
  0x91   : > { %2349 = vst [vmem:[%s3626_s16 + $0x490] sm:$0xff] %v1325_v37  ;;  %v1331_v49 = vsub.f32 0.0, %v307_v46  ;;  %v309_v51 = vld [vmem:[%s3611_s3 + $0x4d0] sm:$0xff]  ;;  %v310_v52 = vld [vmem:[%s3611_s3 + $0x4d8] sm:$0xff]  ;;  %2350 = vst [vmem:[%s3626_s16 + $0x498] sm:$0xff] %v1326_v41  ;;  %v1332_v53 = vsub.f32 0.0, %v308_v50 }
  0x92   : > { %2351 = vst [vmem:[%s3626_s16 + $0x4a0] sm:$0xff] %v1327_v42  ;;  %2352 = vst [vmem:[%s3626_s16 + $0x4a8] sm:$0xff] %v1328_v43  ;;  %v1333_v54 = vsub.f32 0.0, %v309_v51  ;;  %v1334_v55 = vsub.f32 0.0, %v310_v52  ;;  %v311_v56 = vld [vmem:[%s3611_s3 + $0x4e0] sm:$0xff]  ;;  %v312_v57 = vld [vmem:[%s3611_s3 + $0x4e8] sm:$0xff] }
  0x93   : > { %v313_v58 = vld [vmem:[%s3611_s3 + $0x4f0] sm:$0xff]  ;;  %2353 = vst [vmem:[%s3626_s16 + $0x4b0] sm:$0xff] %v1329_v47  ;;  %2354 = vst [vmem:[%s3626_s16 + $0x4b8] sm:$0xff] %v1330_v48  ;;  %v1335_v59 = vsub.f32 0.0, %v311_v56  ;;  %v1336_v60 = vsub.f32 0.0, %v312_v57  ;;  %v314_v62 = vld [vmem:[%s3611_s3 + $0x4f8] sm:$0xff] }
  0x94   : > { %2355 = vst [vmem:[%s3626_s16 + $0x4c0] sm:$0xff] %v1331_v49  ;;  %v1337_v61 = vsub.f32 0.0, %v313_v58  ;;  %v315_v63 = vld [vmem:[%s3611_s3 + $0x500] sm:$0xff]  ;;  %v316_v0 = vld [vmem:[%s3611_s3 + $0x508] sm:$0xff]  ;;  %2356 = vst [vmem:[%s3626_s16 + $0x4c8] sm:$0xff] %v1332_v53  ;;  %v1338_v1 = vsub.f32 0.0, %v314_v62 }
  0x95   : > { %2357 = vst [vmem:[%s3626_s16 + $0x4d0] sm:$0xff] %v1333_v54  ;;  %2358 = vst [vmem:[%s3626_s16 + $0x4d8] sm:$0xff] %v1334_v55  ;;  %v1339_v2 = vsub.f32 0.0, %v315_v63  ;;  %v1340_v3 = vsub.f32 0.0, %v316_v0  ;;  %v317_v4 = vld [vmem:[%s3611_s3 + $0x510] sm:$0xff]  ;;  %v318_v5 = vld [vmem:[%s3611_s3 + $0x518] sm:$0xff] }
  0x96   : > { %v319_v6 = vld [vmem:[%s3611_s3 + $0x520] sm:$0xff]  ;;  %2359 = vst [vmem:[%s3626_s16 + $0x4e0] sm:$0xff] %v1335_v59  ;;  %2360 = vst [vmem:[%s3626_s16 + $0x4e8] sm:$0xff] %v1336_v60  ;;  %v1341_v7 = vsub.f32 0.0, %v317_v4  ;;  %v1342_v8 = vsub.f32 0.0, %v318_v5  ;;  %v320_v10 = vld [vmem:[%s3611_s3 + $0x528] sm:$0xff] }
  0x97   : > { %2361 = vst [vmem:[%s3626_s16 + $0x4f0] sm:$0xff] %v1337_v61  ;;  %v1343_v9 = vsub.f32 0.0, %v319_v6  ;;  %v321_v11 = vld [vmem:[%s3611_s3 + $0x530] sm:$0xff]  ;;  %v322_v12 = vld [vmem:[%s3611_s3 + $0x538] sm:$0xff]  ;;  %2362 = vst [vmem:[%s3626_s16 + $0x4f8] sm:$0xff] %v1338_v1  ;;  %v1344_v13 = vsub.f32 0.0, %v320_v10 }
  0x98   : > { %2363 = vst [vmem:[%s3626_s16 + $0x500] sm:$0xff] %v1339_v2  ;;  %2364 = vst [vmem:[%s3626_s16 + $0x508] sm:$0xff] %v1340_v3  ;;  %v1345_v14 = vsub.f32 0.0, %v321_v11  ;;  %v1346_v15 = vsub.f32 0.0, %v322_v12  ;;  %v323_v16 = vld [vmem:[%s3611_s3 + $0x540] sm:$0xff]  ;;  %v324_v17 = vld [vmem:[%s3611_s3 + $0x548] sm:$0xff] }
  0x99   : > { %v325_v18 = vld [vmem:[%s3611_s3 + $0x550] sm:$0xff]  ;;  %2365 = vst [vmem:[%s3626_s16 + $0x510] sm:$0xff] %v1341_v7  ;;  %2366 = vst [vmem:[%s3626_s16 + $0x518] sm:$0xff] %v1342_v8  ;;  %v1347_v19 = vsub.f32 0.0, %v323_v16  ;;  %v1348_v20 = vsub.f32 0.0, %v324_v17  ;;  %v326_v22 = vld [vmem:[%s3611_s3 + $0x558] sm:$0xff] }
  0x9a   : > { %2367 = vst [vmem:[%s3626_s16 + $0x520] sm:$0xff] %v1343_v9  ;;  %v1349_v21 = vsub.f32 0.0, %v325_v18  ;;  %v327_v23 = vld [vmem:[%s3611_s3 + $0x560] sm:$0xff]  ;;  %v328_v24 = vld [vmem:[%s3611_s3 + $0x568] sm:$0xff]  ;;  %2368 = vst [vmem:[%s3626_s16 + $0x528] sm:$0xff] %v1344_v13  ;;  %v1350_v25 = vsub.f32 0.0, %v326_v22 }
  0x9b   : > { %2369 = vst [vmem:[%s3626_s16 + $0x530] sm:$0xff] %v1345_v14  ;;  %2370 = vst [vmem:[%s3626_s16 + $0x538] sm:$0xff] %v1346_v15  ;;  %v1351_v26 = vsub.f32 0.0, %v327_v23  ;;  %v1352_v27 = vsub.f32 0.0, %v328_v24  ;;  %v329_v28 = vld [vmem:[%s3611_s3 + $0x570] sm:$0xff]  ;;  %v330_v29 = vld [vmem:[%s3611_s3 + $0x578] sm:$0xff] }
  0x9c   : > { %v331_v30 = vld [vmem:[%s3611_s3 + $0x580] sm:$0xff]  ;;  %2371 = vst [vmem:[%s3626_s16 + $0x540] sm:$0xff] %v1347_v19  ;;  %2372 = vst [vmem:[%s3626_s16 + $0x548] sm:$0xff] %v1348_v20  ;;  %v1353_v31 = vsub.f32 0.0, %v329_v28  ;;  %v1354_v32 = vsub.f32 0.0, %v330_v29  ;;  %v332_v34 = vld [vmem:[%s3611_s3 + $0x588] sm:$0xff] }
  0x9d   : > { %2373 = vst [vmem:[%s3626_s16 + $0x550] sm:$0xff] %v1349_v21  ;;  %v1355_v33 = vsub.f32 0.0, %v331_v30  ;;  %v333_v35 = vld [vmem:[%s3611_s3 + $0x590] sm:$0xff]  ;;  %v334_v36 = vld [vmem:[%s3611_s3 + $0x598] sm:$0xff]  ;;  %2374 = vst [vmem:[%s3626_s16 + $0x558] sm:$0xff] %v1350_v25  ;;  %v1356_v37 = vsub.f32 0.0, %v332_v34 }
  0x9e   : > { %2375 = vst [vmem:[%s3626_s16 + $0x560] sm:$0xff] %v1351_v26  ;;  %2376 = vst [vmem:[%s3626_s16 + $0x568] sm:$0xff] %v1352_v27  ;;  %v1357_v38 = vsub.f32 0.0, %v333_v35  ;;  %v1358_v39 = vsub.f32 0.0, %v334_v36  ;;  %v335_v40 = vld [vmem:[%s3611_s3 + $0x5a0] sm:$0xff]  ;;  %v336_v41 = vld [vmem:[%s3611_s3 + $0x5a8] sm:$0xff] }
  0x9f   : > { %v337_v42 = vld [vmem:[%s3611_s3 + $0x5b0] sm:$0xff]  ;;  %2377 = vst [vmem:[%s3626_s16 + $0x570] sm:$0xff] %v1353_v31  ;;  %2378 = vst [vmem:[%s3626_s16 + $0x578] sm:$0xff] %v1354_v32  ;;  %v1359_v43 = vsub.f32 0.0, %v335_v40  ;;  %v1360_v44 = vsub.f32 0.0, %v336_v41  ;;  %v338_v46 = vld [vmem:[%s3611_s3 + $0x5b8] sm:$0xff] }
  0xa0   : > { %2379 = vst [vmem:[%s3626_s16 + $0x580] sm:$0xff] %v1355_v33  ;;  %v1361_v45 = vsub.f32 0.0, %v337_v42  ;;  %v339_v47 = vld [vmem:[%s3611_s3 + $0x5c0] sm:$0xff]  ;;  %v340_v48 = vld [vmem:[%s3611_s3 + $0x5c8] sm:$0xff]  ;;  %2380 = vst [vmem:[%s3626_s16 + $0x588] sm:$0xff] %v1356_v37  ;;  %v1362_v49 = vsub.f32 0.0, %v338_v46 }
  0xa1   : > { %2381 = vst [vmem:[%s3626_s16 + $0x590] sm:$0xff] %v1357_v38  ;;  %2382 = vst [vmem:[%s3626_s16 + $0x598] sm:$0xff] %v1358_v39  ;;  %v1363_v50 = vsub.f32 0.0, %v339_v47  ;;  %v1364_v51 = vsub.f32 0.0, %v340_v48  ;;  %v341_v52 = vld [vmem:[%s3611_s3 + $0x5d0] sm:$0xff]  ;;  %v342_v53 = vld [vmem:[%s3611_s3 + $0x5d8] sm:$0xff] }
  0xa2   : > { %v343_v54 = vld [vmem:[%s3611_s3 + $0x5e0] sm:$0xff]  ;;  %2383 = vst [vmem:[%s3626_s16 + $0x5a0] sm:$0xff] %v1359_v43  ;;  %2384 = vst [vmem:[%s3626_s16 + $0x5a8] sm:$0xff] %v1360_v44  ;;  %v1365_v55 = vsub.f32 0.0, %v341_v52  ;;  %v1366_v56 = vsub.f32 0.0, %v342_v53  ;;  %v344_v58 = vld [vmem:[%s3611_s3 + $0x5e8] sm:$0xff] }
  0xa3   : > { %2385 = vst [vmem:[%s3626_s16 + $0x5b0] sm:$0xff] %v1361_v45  ;;  %v1367_v57 = vsub.f32 0.0, %v343_v54  ;;  %v345_v59 = vld [vmem:[%s3611_s3 + $0x5f0] sm:$0xff]  ;;  %v346_v60 = vld [vmem:[%s3611_s3 + $0x5f8] sm:$0xff]  ;;  %2386 = vst [vmem:[%s3626_s16 + $0x5b8] sm:$0xff] %v1362_v49  ;;  %v1368_v61 = vsub.f32 0.0, %v344_v58 }
  0xa4   : > { %2387 = vst [vmem:[%s3626_s16 + $0x5c0] sm:$0xff] %v1363_v50  ;;  %2388 = vst [vmem:[%s3626_s16 + $0x5c8] sm:$0xff] %v1364_v51  ;;  %v1369_v62 = vsub.f32 0.0, %v345_v59  ;;  %v1370_v63 = vsub.f32 0.0, %v346_v60  ;;  %v347_v0 = vld [vmem:[%s3611_s3 + $0x600] sm:$0xff]  ;;  %v348_v1 = vld [vmem:[%s3611_s3 + $0x608] sm:$0xff] }
  0xa5   : > { %v349_v2 = vld [vmem:[%s3611_s3 + $0x610] sm:$0xff]  ;;  %2389 = vst [vmem:[%s3626_s16 + $0x5d0] sm:$0xff] %v1365_v55  ;;  %2390 = vst [vmem:[%s3626_s16 + $0x5d8] sm:$0xff] %v1366_v56  ;;  %v1371_v3 = vsub.f32 0.0, %v347_v0  ;;  %v1372_v4 = vsub.f32 0.0, %v348_v1  ;;  %v350_v6 = vld [vmem:[%s3611_s3 + $0x618] sm:$0xff] }
  0xa6   : > { %2391 = vst [vmem:[%s3626_s16 + $0x5e0] sm:$0xff] %v1367_v57  ;;  %v1373_v5 = vsub.f32 0.0, %v349_v2  ;;  %v351_v7 = vld [vmem:[%s3611_s3 + $0x620] sm:$0xff]  ;;  %v352_v8 = vld [vmem:[%s3611_s3 + $0x628] sm:$0xff]  ;;  %2392 = vst [vmem:[%s3626_s16 + $0x5e8] sm:$0xff] %v1368_v61  ;;  %v1374_v9 = vsub.f32 0.0, %v350_v6 }
  0xa7   : > { %2393 = vst [vmem:[%s3626_s16 + $0x5f0] sm:$0xff] %v1369_v62  ;;  %2394 = vst [vmem:[%s3626_s16 + $0x5f8] sm:$0xff] %v1370_v63  ;;  %v1375_v10 = vsub.f32 0.0, %v351_v7  ;;  %v1376_v11 = vsub.f32 0.0, %v352_v8  ;;  %v353_v12 = vld [vmem:[%s3611_s3 + $0x630] sm:$0xff]  ;;  %v354_v13 = vld [vmem:[%s3611_s3 + $0x638] sm:$0xff] }
  0xa8   : > { %v355_v14 = vld [vmem:[%s3611_s3 + $0x640] sm:$0xff]  ;;  %2395 = vst [vmem:[%s3626_s16 + $0x600] sm:$0xff] %v1371_v3  ;;  %2396 = vst [vmem:[%s3626_s16 + $0x608] sm:$0xff] %v1372_v4  ;;  %v1377_v15 = vsub.f32 0.0, %v353_v12  ;;  %v1378_v16 = vsub.f32 0.0, %v354_v13  ;;  %v356_v18 = vld [vmem:[%s3611_s3 + $0x648] sm:$0xff] }
  0xa9   : > { %2397 = vst [vmem:[%s3626_s16 + $0x610] sm:$0xff] %v1373_v5  ;;  %v1379_v17 = vsub.f32 0.0, %v355_v14  ;;  %v357_v19 = vld [vmem:[%s3611_s3 + $0x650] sm:$0xff]  ;;  %v358_v20 = vld [vmem:[%s3611_s3 + $0x658] sm:$0xff]  ;;  %2398 = vst [vmem:[%s3626_s16 + $0x618] sm:$0xff] %v1374_v9  ;;  %v1380_v21 = vsub.f32 0.0, %v356_v18 }
  0xaa   : > { %2399 = vst [vmem:[%s3626_s16 + $0x620] sm:$0xff] %v1375_v10  ;;  %2400 = vst [vmem:[%s3626_s16 + $0x628] sm:$0xff] %v1376_v11  ;;  %v1381_v22 = vsub.f32 0.0, %v357_v19  ;;  %v1382_v23 = vsub.f32 0.0, %v358_v20  ;;  %v359_v24 = vld [vmem:[%s3611_s3 + $0x660] sm:$0xff]  ;;  %v360_v25 = vld [vmem:[%s3611_s3 + $0x668] sm:$0xff] }
  0xab   : > { %v361_v26 = vld [vmem:[%s3611_s3 + $0x670] sm:$0xff]  ;;  %2401 = vst [vmem:[%s3626_s16 + $0x630] sm:$0xff] %v1377_v15  ;;  %2402 = vst [vmem:[%s3626_s16 + $0x638] sm:$0xff] %v1378_v16  ;;  %v1383_v27 = vsub.f32 0.0, %v359_v24  ;;  %v1384_v28 = vsub.f32 0.0, %v360_v25  ;;  %v362_v30 = vld [vmem:[%s3611_s3 + $0x678] sm:$0xff] }
  0xac   : > { %2403 = vst [vmem:[%s3626_s16 + $0x640] sm:$0xff] %v1379_v17  ;;  %v1385_v29 = vsub.f32 0.0, %v361_v26  ;;  %v363_v31 = vld [vmem:[%s3611_s3 + $0x680] sm:$0xff]  ;;  %v364_v32 = vld [vmem:[%s3611_s3 + $0x688] sm:$0xff]  ;;  %2404 = vst [vmem:[%s3626_s16 + $0x648] sm:$0xff] %v1380_v21  ;;  %v1386_v33 = vsub.f32 0.0, %v362_v30 }
  0xad   : > { %2405 = vst [vmem:[%s3626_s16 + $0x650] sm:$0xff] %v1381_v22  ;;  %2406 = vst [vmem:[%s3626_s16 + $0x658] sm:$0xff] %v1382_v23  ;;  %v1387_v34 = vsub.f32 0.0, %v363_v31  ;;  %v1388_v35 = vsub.f32 0.0, %v364_v32  ;;  %v365_v36 = vld [vmem:[%s3611_s3 + $0x690] sm:$0xff]  ;;  %v366_v37 = vld [vmem:[%s3611_s3 + $0x698] sm:$0xff] }
  0xae   : > { %v367_v38 = vld [vmem:[%s3611_s3 + $0x6a0] sm:$0xff]  ;;  %2407 = vst [vmem:[%s3626_s16 + $0x660] sm:$0xff] %v1383_v27  ;;  %2408 = vst [vmem:[%s3626_s16 + $0x668] sm:$0xff] %v1384_v28  ;;  %v1389_v39 = vsub.f32 0.0, %v365_v36  ;;  %v1390_v40 = vsub.f32 0.0, %v366_v37  ;;  %v368_v42 = vld [vmem:[%s3611_s3 + $0x6a8] sm:$0xff] }
  0xaf   : > { %2409 = vst [vmem:[%s3626_s16 + $0x670] sm:$0xff] %v1385_v29  ;;  %v1391_v41 = vsub.f32 0.0, %v367_v38  ;;  %v369_v43 = vld [vmem:[%s3611_s3 + $0x6b0] sm:$0xff]  ;;  %v370_v44 = vld [vmem:[%s3611_s3 + $0x6b8] sm:$0xff]  ;;  %2410 = vst [vmem:[%s3626_s16 + $0x678] sm:$0xff] %v1386_v33  ;;  %v1392_v45 = vsub.f32 0.0, %v368_v42 }
  0xb0   : > { %2411 = vst [vmem:[%s3626_s16 + $0x680] sm:$0xff] %v1387_v34  ;;  %2412 = vst [vmem:[%s3626_s16 + $0x688] sm:$0xff] %v1388_v35  ;;  %v1393_v46 = vsub.f32 0.0, %v369_v43  ;;  %v1394_v47 = vsub.f32 0.0, %v370_v44  ;;  %v371_v48 = vld [vmem:[%s3611_s3 + $0x6c0] sm:$0xff]  ;;  %v372_v49 = vld [vmem:[%s3611_s3 + $0x6c8] sm:$0xff] }
  0xb1   : > { %v373_v50 = vld [vmem:[%s3611_s3 + $0x6d0] sm:$0xff]  ;;  %2413 = vst [vmem:[%s3626_s16 + $0x690] sm:$0xff] %v1389_v39  ;;  %2414 = vst [vmem:[%s3626_s16 + $0x698] sm:$0xff] %v1390_v40  ;;  %v1395_v51 = vsub.f32 0.0, %v371_v48  ;;  %v1396_v52 = vsub.f32 0.0, %v372_v49  ;;  %v374_v54 = vld [vmem:[%s3611_s3 + $0x6d8] sm:$0xff] }
  0xb2   : > { %2415 = vst [vmem:[%s3626_s16 + $0x6a0] sm:$0xff] %v1391_v41  ;;  %v1397_v53 = vsub.f32 0.0, %v373_v50  ;;  %v375_v55 = vld [vmem:[%s3611_s3 + $0x6e0] sm:$0xff]  ;;  %v376_v56 = vld [vmem:[%s3611_s3 + $0x6e8] sm:$0xff]  ;;  %2416 = vst [vmem:[%s3626_s16 + $0x6a8] sm:$0xff] %v1392_v45  ;;  %v1398_v57 = vsub.f32 0.0, %v374_v54 }
  0xb3   : > { %2417 = vst [vmem:[%s3626_s16 + $0x6b0] sm:$0xff] %v1393_v46  ;;  %2418 = vst [vmem:[%s3626_s16 + $0x6b8] sm:$0xff] %v1394_v47  ;;  %v1399_v58 = vsub.f32 0.0, %v375_v55  ;;  %v1400_v59 = vsub.f32 0.0, %v376_v56  ;;  %v377_v60 = vld [vmem:[%s3611_s3 + $0x6f0] sm:$0xff]  ;;  %v378_v61 = vld [vmem:[%s3611_s3 + $0x6f8] sm:$0xff] }
  0xb4   : > { %v379_v62 = vld [vmem:[%s3611_s3 + $0x700] sm:$0xff]  ;;  %2419 = vst [vmem:[%s3626_s16 + $0x6c0] sm:$0xff] %v1395_v51  ;;  %2420 = vst [vmem:[%s3626_s16 + $0x6c8] sm:$0xff] %v1396_v52  ;;  %v1401_v63 = vsub.f32 0.0, %v377_v60  ;;  %v1402_v0 = vsub.f32 0.0, %v378_v61  ;;  %v380_v2 = vld [vmem:[%s3611_s3 + $0x708] sm:$0xff] }
  0xb5   : > { %2421 = vst [vmem:[%s3626_s16 + $0x6d0] sm:$0xff] %v1397_v53  ;;  %v1403_v1 = vsub.f32 0.0, %v379_v62  ;;  %v381_v3 = vld [vmem:[%s3611_s3 + $0x710] sm:$0xff]  ;;  %v382_v4 = vld [vmem:[%s3611_s3 + $0x718] sm:$0xff]  ;;  %2422 = vst [vmem:[%s3626_s16 + $0x6d8] sm:$0xff] %v1398_v57  ;;  %v1404_v5 = vsub.f32 0.0, %v380_v2 }
  0xb6   : > { %2423 = vst [vmem:[%s3626_s16 + $0x6e0] sm:$0xff] %v1399_v58  ;;  %2424 = vst [vmem:[%s3626_s16 + $0x6e8] sm:$0xff] %v1400_v59  ;;  %v1405_v6 = vsub.f32 0.0, %v381_v3  ;;  %v1406_v7 = vsub.f32 0.0, %v382_v4  ;;  %v383_v8 = vld [vmem:[%s3611_s3 + $0x720] sm:$0xff]  ;;  %v384_v9 = vld [vmem:[%s3611_s3 + $0x728] sm:$0xff] }
  0xb7   : > { %v385_v10 = vld [vmem:[%s3611_s3 + $0x730] sm:$0xff]  ;;  %2425 = vst [vmem:[%s3626_s16 + $0x6f0] sm:$0xff] %v1401_v63  ;;  %2426 = vst [vmem:[%s3626_s16 + $0x6f8] sm:$0xff] %v1402_v0  ;;  %v1407_v11 = vsub.f32 0.0, %v383_v8  ;;  %v1408_v12 = vsub.f32 0.0, %v384_v9  ;;  %v386_v14 = vld [vmem:[%s3611_s3 + $0x738] sm:$0xff] }
  0xb8   : > { %2427 = vst [vmem:[%s3626_s16 + $0x700] sm:$0xff] %v1403_v1  ;;  %v1409_v13 = vsub.f32 0.0, %v385_v10  ;;  %v387_v15 = vld [vmem:[%s3611_s3 + $0x740] sm:$0xff]  ;;  %v388_v16 = vld [vmem:[%s3611_s3 + $0x748] sm:$0xff]  ;;  %2428 = vst [vmem:[%s3626_s16 + $0x708] sm:$0xff] %v1404_v5  ;;  %v1410_v17 = vsub.f32 0.0, %v386_v14 }
  0xb9   : > { %2429 = vst [vmem:[%s3626_s16 + $0x710] sm:$0xff] %v1405_v6  ;;  %2430 = vst [vmem:[%s3626_s16 + $0x718] sm:$0xff] %v1406_v7  ;;  %v1411_v18 = vsub.f32 0.0, %v387_v15  ;;  %v1412_v19 = vsub.f32 0.0, %v388_v16  ;;  %v389_v20 = vld [vmem:[%s3611_s3 + $0x750] sm:$0xff]  ;;  %v390_v21 = vld [vmem:[%s3611_s3 + $0x758] sm:$0xff] }
  0xba   : > { %v391_v22 = vld [vmem:[%s3611_s3 + $0x760] sm:$0xff]  ;;  %2431 = vst [vmem:[%s3626_s16 + $0x720] sm:$0xff] %v1407_v11  ;;  %2432 = vst [vmem:[%s3626_s16 + $0x728] sm:$0xff] %v1408_v12  ;;  %v1413_v23 = vsub.f32 0.0, %v389_v20  ;;  %v1414_v24 = vsub.f32 0.0, %v390_v21  ;;  %v392_v26 = vld [vmem:[%s3611_s3 + $0x768] sm:$0xff] }
  0xbb   : > { %2433 = vst [vmem:[%s3626_s16 + $0x730] sm:$0xff] %v1409_v13  ;;  %v1415_v25 = vsub.f32 0.0, %v391_v22  ;;  %v393_v27 = vld [vmem:[%s3611_s3 + $0x770] sm:$0xff]  ;;  %v394_v28 = vld [vmem:[%s3611_s3 + $0x778] sm:$0xff]  ;;  %2434 = vst [vmem:[%s3626_s16 + $0x738] sm:$0xff] %v1410_v17  ;;  %v1416_v29 = vsub.f32 0.0, %v392_v26 }
  0xbc   : > { %2435 = vst [vmem:[%s3626_s16 + $0x740] sm:$0xff] %v1411_v18  ;;  %2436 = vst [vmem:[%s3626_s16 + $0x748] sm:$0xff] %v1412_v19  ;;  %v1417_v30 = vsub.f32 0.0, %v393_v27  ;;  %v1418_v31 = vsub.f32 0.0, %v394_v28  ;;  %v395_v32 = vld [vmem:[%s3611_s3 + $0x780] sm:$0xff]  ;;  %v396_v33 = vld [vmem:[%s3611_s3 + $0x788] sm:$0xff] }
  0xbd   : > { %v397_v34 = vld [vmem:[%s3611_s3 + $0x790] sm:$0xff]  ;;  %2437 = vst [vmem:[%s3626_s16 + $0x750] sm:$0xff] %v1413_v23  ;;  %2438 = vst [vmem:[%s3626_s16 + $0x758] sm:$0xff] %v1414_v24  ;;  %v1419_v35 = vsub.f32 0.0, %v395_v32  ;;  %v1420_v36 = vsub.f32 0.0, %v396_v33  ;;  %v398_v38 = vld [vmem:[%s3611_s3 + $0x798] sm:$0xff] }
  0xbe   : > { %2439 = vst [vmem:[%s3626_s16 + $0x760] sm:$0xff] %v1415_v25  ;;  %v1421_v37 = vsub.f32 0.0, %v397_v34  ;;  %v399_v39 = vld [vmem:[%s3611_s3 + $0x7a0] sm:$0xff]  ;;  %v400_v40 = vld [vmem:[%s3611_s3 + $0x7a8] sm:$0xff]  ;;  %2440 = vst [vmem:[%s3626_s16 + $0x768] sm:$0xff] %v1416_v29  ;;  %v1422_v41 = vsub.f32 0.0, %v398_v38 }
  0xbf   : > { %2441 = vst [vmem:[%s3626_s16 + $0x770] sm:$0xff] %v1417_v30  ;;  %2442 = vst [vmem:[%s3626_s16 + $0x778] sm:$0xff] %v1418_v31  ;;  %v1423_v42 = vsub.f32 0.0, %v399_v39  ;;  %v1424_v43 = vsub.f32 0.0, %v400_v40  ;;  %v401_v44 = vld [vmem:[%s3611_s3 + $0x7b0] sm:$0xff]  ;;  %v402_v45 = vld [vmem:[%s3611_s3 + $0x7b8] sm:$0xff] }
  0xc0   : > { %v403_v46 = vld [vmem:[%s3611_s3 + $0x7c0] sm:$0xff]  ;;  %2443 = vst [vmem:[%s3626_s16 + $0x780] sm:$0xff] %v1419_v35  ;;  %2444 = vst [vmem:[%s3626_s16 + $0x788] sm:$0xff] %v1420_v36  ;;  %v1425_v47 = vsub.f32 0.0, %v401_v44  ;;  %v1426_v48 = vsub.f32 0.0, %v402_v45  ;;  %v404_v50 = vld [vmem:[%s3611_s3 + $0x7c8] sm:$0xff] }
  0xc1   : > { %2445 = vst [vmem:[%s3626_s16 + $0x790] sm:$0xff] %v1421_v37  ;;  %v1427_v49 = vsub.f32 0.0, %v403_v46  ;;  %v405_v51 = vld [vmem:[%s3611_s3 + $0x7d0] sm:$0xff]  ;;  %v406_v52 = vld [vmem:[%s3611_s3 + $0x7d8] sm:$0xff]  ;;  %2446 = vst [vmem:[%s3626_s16 + $0x798] sm:$0xff] %v1422_v41  ;;  %v1428_v53 = vsub.f32 0.0, %v404_v50 }
  0xc2   : > { %2447 = vst [vmem:[%s3626_s16 + $0x7a0] sm:$0xff] %v1423_v42  ;;  %2448 = vst [vmem:[%s3626_s16 + $0x7a8] sm:$0xff] %v1424_v43  ;;  %v1429_v54 = vsub.f32 0.0, %v405_v51  ;;  %v1430_v55 = vsub.f32 0.0, %v406_v52  ;;  %v407_v56 = vld [vmem:[%s3611_s3 + $0x7e0] sm:$0xff]  ;;  %v408_v57 = vld [vmem:[%s3611_s3 + $0x7e8] sm:$0xff] }
  0xc3   : > { %v409_v58 = vld [vmem:[%s3611_s3 + $0x7f0] sm:$0xff]  ;;  %2449 = vst [vmem:[%s3626_s16 + $0x7b0] sm:$0xff] %v1425_v47  ;;  %2450 = vst [vmem:[%s3626_s16 + $0x7b8] sm:$0xff] %v1426_v48  ;;  %v1431_v59 = vsub.f32 0.0, %v407_v56  ;;  %v1432_v60 = vsub.f32 0.0, %v408_v57  ;;  %v410_v62 = vld [vmem:[%s3611_s3 + $0x7f8] sm:$0xff] }
  0xc4   : > { %2451 = vst [vmem:[%s3626_s16 + $0x7c0] sm:$0xff] %v1427_v49  ;;  %v1433_v61 = vsub.f32 0.0, %v409_v58  ;;  %v411_v63 = vld [vmem:[%s3611_s3 + $0x800] sm:$0xff]  ;;  %v412_v0 = vld [vmem:[%s3611_s3 + $0x808] sm:$0xff]  ;;  %2452 = vst [vmem:[%s3626_s16 + $0x7c8] sm:$0xff] %v1428_v53  ;;  %v1434_v1 = vsub.f32 0.0, %v410_v62 }
  0xc5   : > { %2453 = vst [vmem:[%s3626_s16 + $0x7d0] sm:$0xff] %v1429_v54  ;;  %2454 = vst [vmem:[%s3626_s16 + $0x7d8] sm:$0xff] %v1430_v55  ;;  %v1435_v2 = vsub.f32 0.0, %v411_v63  ;;  %v1436_v3 = vsub.f32 0.0, %v412_v0  ;;  %v413_v4 = vld [vmem:[%s3611_s3 + $0x810] sm:$0xff]  ;;  %v414_v5 = vld [vmem:[%s3611_s3 + $0x818] sm:$0xff] }
  0xc6   : > { %v415_v6 = vld [vmem:[%s3611_s3 + $0x820] sm:$0xff]  ;;  %2455 = vst [vmem:[%s3626_s16 + $0x7e0] sm:$0xff] %v1431_v59  ;;  %2456 = vst [vmem:[%s3626_s16 + $0x7e8] sm:$0xff] %v1432_v60  ;;  %v1437_v7 = vsub.f32 0.0, %v413_v4  ;;  %v1438_v8 = vsub.f32 0.0, %v414_v5  ;;  %v416_v10 = vld [vmem:[%s3611_s3 + $0x828] sm:$0xff] }
  0xc7   : > { %2457 = vst [vmem:[%s3626_s16 + $0x7f0] sm:$0xff] %v1433_v61  ;;  %v1439_v9 = vsub.f32 0.0, %v415_v6  ;;  %v417_v11 = vld [vmem:[%s3611_s3 + $0x830] sm:$0xff]  ;;  %v418_v12 = vld [vmem:[%s3611_s3 + $0x838] sm:$0xff]  ;;  %2458 = vst [vmem:[%s3626_s16 + $0x7f8] sm:$0xff] %v1434_v1  ;;  %v1440_v13 = vsub.f32 0.0, %v416_v10 }
  0xc8   : > { %2459 = vst [vmem:[%s3626_s16 + $0x800] sm:$0xff] %v1435_v2  ;;  %2460 = vst [vmem:[%s3626_s16 + $0x808] sm:$0xff] %v1436_v3  ;;  %v1441_v14 = vsub.f32 0.0, %v417_v11  ;;  %v1442_v15 = vsub.f32 0.0, %v418_v12  ;;  %v419_v16 = vld [vmem:[%s3611_s3 + $0x840] sm:$0xff]  ;;  %v420_v17 = vld [vmem:[%s3611_s3 + $0x848] sm:$0xff] }
  0xc9   : > { %v421_v18 = vld [vmem:[%s3611_s3 + $0x850] sm:$0xff]  ;;  %2461 = vst [vmem:[%s3626_s16 + $0x810] sm:$0xff] %v1437_v7  ;;  %2462 = vst [vmem:[%s3626_s16 + $0x818] sm:$0xff] %v1438_v8  ;;  %v1443_v19 = vsub.f32 0.0, %v419_v16  ;;  %v1444_v20 = vsub.f32 0.0, %v420_v17  ;;  %v422_v22 = vld [vmem:[%s3611_s3 + $0x858] sm:$0xff] }
  0xca   : > { %2463 = vst [vmem:[%s3626_s16 + $0x820] sm:$0xff] %v1439_v9  ;;  %v1445_v21 = vsub.f32 0.0, %v421_v18  ;;  %v423_v23 = vld [vmem:[%s3611_s3 + $0x860] sm:$0xff]  ;;  %v424_v24 = vld [vmem:[%s3611_s3 + $0x868] sm:$0xff]  ;;  %2464 = vst [vmem:[%s3626_s16 + $0x828] sm:$0xff] %v1440_v13  ;;  %v1446_v25 = vsub.f32 0.0, %v422_v22 }
  0xcb   : > { %2465 = vst [vmem:[%s3626_s16 + $0x830] sm:$0xff] %v1441_v14  ;;  %2466 = vst [vmem:[%s3626_s16 + $0x838] sm:$0xff] %v1442_v15  ;;  %v1447_v26 = vsub.f32 0.0, %v423_v23  ;;  %v1448_v27 = vsub.f32 0.0, %v424_v24  ;;  %v425_v28 = vld [vmem:[%s3611_s3 + $0x870] sm:$0xff]  ;;  %v426_v29 = vld [vmem:[%s3611_s3 + $0x878] sm:$0xff] }
  0xcc   : > { %v427_v30 = vld [vmem:[%s3611_s3 + $0x880] sm:$0xff]  ;;  %2467 = vst [vmem:[%s3626_s16 + $0x840] sm:$0xff] %v1443_v19  ;;  %2468 = vst [vmem:[%s3626_s16 + $0x848] sm:$0xff] %v1444_v20  ;;  %v1449_v31 = vsub.f32 0.0, %v425_v28  ;;  %v1450_v32 = vsub.f32 0.0, %v426_v29  ;;  %v428_v34 = vld [vmem:[%s3611_s3 + $0x888] sm:$0xff] }
  0xcd   : > { %2469 = vst [vmem:[%s3626_s16 + $0x850] sm:$0xff] %v1445_v21  ;;  %v1451_v33 = vsub.f32 0.0, %v427_v30  ;;  %v429_v35 = vld [vmem:[%s3611_s3 + $0x890] sm:$0xff]  ;;  %v430_v36 = vld [vmem:[%s3611_s3 + $0x898] sm:$0xff]  ;;  %2470 = vst [vmem:[%s3626_s16 + $0x858] sm:$0xff] %v1446_v25  ;;  %v1452_v37 = vsub.f32 0.0, %v428_v34 }
  0xce   : > { %2471 = vst [vmem:[%s3626_s16 + $0x860] sm:$0xff] %v1447_v26  ;;  %2472 = vst [vmem:[%s3626_s16 + $0x868] sm:$0xff] %v1448_v27  ;;  %v1453_v38 = vsub.f32 0.0, %v429_v35  ;;  %v1454_v39 = vsub.f32 0.0, %v430_v36  ;;  %v431_v40 = vld [vmem:[%s3611_s3 + $0x8a0] sm:$0xff]  ;;  %v432_v41 = vld [vmem:[%s3611_s3 + $0x8a8] sm:$0xff] }
  0xcf   : > { %v433_v42 = vld [vmem:[%s3611_s3 + $0x8b0] sm:$0xff]  ;;  %2473 = vst [vmem:[%s3626_s16 + $0x870] sm:$0xff] %v1449_v31  ;;  %2474 = vst [vmem:[%s3626_s16 + $0x878] sm:$0xff] %v1450_v32  ;;  %v1455_v43 = vsub.f32 0.0, %v431_v40  ;;  %v1456_v44 = vsub.f32 0.0, %v432_v41  ;;  %v434_v46 = vld [vmem:[%s3611_s3 + $0x8b8] sm:$0xff] }
  0xd0   : > { %2475 = vst [vmem:[%s3626_s16 + $0x880] sm:$0xff] %v1451_v33  ;;  %v1457_v45 = vsub.f32 0.0, %v433_v42  ;;  %v435_v47 = vld [vmem:[%s3611_s3 + $0x8c0] sm:$0xff]  ;;  %v436_v48 = vld [vmem:[%s3611_s3 + $0x8c8] sm:$0xff]  ;;  %2476 = vst [vmem:[%s3626_s16 + $0x888] sm:$0xff] %v1452_v37  ;;  %v1458_v49 = vsub.f32 0.0, %v434_v46 }
  0xd1   : > { %2477 = vst [vmem:[%s3626_s16 + $0x890] sm:$0xff] %v1453_v38  ;;  %2478 = vst [vmem:[%s3626_s16 + $0x898] sm:$0xff] %v1454_v39  ;;  %v1459_v50 = vsub.f32 0.0, %v435_v47  ;;  %v1460_v51 = vsub.f32 0.0, %v436_v48  ;;  %v437_v52 = vld [vmem:[%s3611_s3 + $0x8d0] sm:$0xff]  ;;  %v438_v53 = vld [vmem:[%s3611_s3 + $0x8d8] sm:$0xff] }
  0xd2   : > { %v439_v54 = vld [vmem:[%s3611_s3 + $0x8e0] sm:$0xff]  ;;  %2479 = vst [vmem:[%s3626_s16 + $0x8a0] sm:$0xff] %v1455_v43  ;;  %2480 = vst [vmem:[%s3626_s16 + $0x8a8] sm:$0xff] %v1456_v44  ;;  %v1461_v55 = vsub.f32 0.0, %v437_v52  ;;  %v1462_v56 = vsub.f32 0.0, %v438_v53  ;;  %v440_v58 = vld [vmem:[%s3611_s3 + $0x8e8] sm:$0xff] }
  0xd3   : > { %2481 = vst [vmem:[%s3626_s16 + $0x8b0] sm:$0xff] %v1457_v45  ;;  %v1463_v57 = vsub.f32 0.0, %v439_v54  ;;  %v441_v59 = vld [vmem:[%s3611_s3 + $0x8f0] sm:$0xff]  ;;  %v442_v60 = vld [vmem:[%s3611_s3 + $0x8f8] sm:$0xff]  ;;  %2482 = vst [vmem:[%s3626_s16 + $0x8b8] sm:$0xff] %v1458_v49  ;;  %v1464_v61 = vsub.f32 0.0, %v440_v58 }
  0xd4   : > { %2483 = vst [vmem:[%s3626_s16 + $0x8c0] sm:$0xff] %v1459_v50  ;;  %2484 = vst [vmem:[%s3626_s16 + $0x8c8] sm:$0xff] %v1460_v51  ;;  %v1465_v62 = vsub.f32 0.0, %v441_v59  ;;  %v1466_v63 = vsub.f32 0.0, %v442_v60  ;;  %v443_v0 = vld [vmem:[%s3611_s3 + $0x900] sm:$0xff]  ;;  %v444_v1 = vld [vmem:[%s3611_s3 + $0x908] sm:$0xff] }
  0xd5   : > { %v445_v2 = vld [vmem:[%s3611_s3 + $0x910] sm:$0xff]  ;;  %2485 = vst [vmem:[%s3626_s16 + $0x8d0] sm:$0xff] %v1461_v55  ;;  %2486 = vst [vmem:[%s3626_s16 + $0x8d8] sm:$0xff] %v1462_v56  ;;  %v1467_v3 = vsub.f32 0.0, %v443_v0  ;;  %v1468_v4 = vsub.f32 0.0, %v444_v1  ;;  %v446_v6 = vld [vmem:[%s3611_s3 + $0x918] sm:$0xff] }
  0xd6   : > { %2487 = vst [vmem:[%s3626_s16 + $0x8e0] sm:$0xff] %v1463_v57  ;;  %v1469_v5 = vsub.f32 0.0, %v445_v2  ;;  %v447_v7 = vld [vmem:[%s3611_s3 + $0x920] sm:$0xff]  ;;  %v448_v8 = vld [vmem:[%s3611_s3 + $0x928] sm:$0xff]  ;;  %2488 = vst [vmem:[%s3626_s16 + $0x8e8] sm:$0xff] %v1464_v61  ;;  %v1470_v9 = vsub.f32 0.0, %v446_v6 }
  0xd7   : > { %2489 = vst [vmem:[%s3626_s16 + $0x8f0] sm:$0xff] %v1465_v62  ;;  %2490 = vst [vmem:[%s3626_s16 + $0x8f8] sm:$0xff] %v1466_v63  ;;  %v1471_v10 = vsub.f32 0.0, %v447_v7  ;;  %v1472_v11 = vsub.f32 0.0, %v448_v8  ;;  %v449_v12 = vld [vmem:[%s3611_s3 + $0x930] sm:$0xff]  ;;  %v450_v13 = vld [vmem:[%s3611_s3 + $0x938] sm:$0xff] }
  0xd8   : > { %v451_v14 = vld [vmem:[%s3611_s3 + $0x940] sm:$0xff]  ;;  %2491 = vst [vmem:[%s3626_s16 + $0x900] sm:$0xff] %v1467_v3  ;;  %2492 = vst [vmem:[%s3626_s16 + $0x908] sm:$0xff] %v1468_v4  ;;  %v1473_v15 = vsub.f32 0.0, %v449_v12  ;;  %v1474_v16 = vsub.f32 0.0, %v450_v13  ;;  %v452_v18 = vld [vmem:[%s3611_s3 + $0x948] sm:$0xff] }
  0xd9   : > { %2493 = vst [vmem:[%s3626_s16 + $0x910] sm:$0xff] %v1469_v5  ;;  %v1475_v17 = vsub.f32 0.0, %v451_v14  ;;  %v453_v19 = vld [vmem:[%s3611_s3 + $0x950] sm:$0xff]  ;;  %v454_v20 = vld [vmem:[%s3611_s3 + $0x958] sm:$0xff]  ;;  %2494 = vst [vmem:[%s3626_s16 + $0x918] sm:$0xff] %v1470_v9  ;;  %v1476_v21 = vsub.f32 0.0, %v452_v18 }
  0xda   : > { %2495 = vst [vmem:[%s3626_s16 + $0x920] sm:$0xff] %v1471_v10  ;;  %2496 = vst [vmem:[%s3626_s16 + $0x928] sm:$0xff] %v1472_v11  ;;  %v1477_v22 = vsub.f32 0.0, %v453_v19  ;;  %v1478_v23 = vsub.f32 0.0, %v454_v20  ;;  %v455_v24 = vld [vmem:[%s3611_s3 + $0x960] sm:$0xff]  ;;  %v456_v25 = vld [vmem:[%s3611_s3 + $0x968] sm:$0xff] }
  0xdb   : > { %v457_v26 = vld [vmem:[%s3611_s3 + $0x970] sm:$0xff]  ;;  %2497 = vst [vmem:[%s3626_s16 + $0x930] sm:$0xff] %v1473_v15  ;;  %2498 = vst [vmem:[%s3626_s16 + $0x938] sm:$0xff] %v1474_v16  ;;  %v1479_v27 = vsub.f32 0.0, %v455_v24  ;;  %v1480_v28 = vsub.f32 0.0, %v456_v25  ;;  %v458_v30 = vld [vmem:[%s3611_s3 + $0x978] sm:$0xff] }
  0xdc   : > { %2499 = vst [vmem:[%s3626_s16 + $0x940] sm:$0xff] %v1475_v17  ;;  %v1481_v29 = vsub.f32 0.0, %v457_v26  ;;  %v459_v31 = vld [vmem:[%s3611_s3 + $0x980] sm:$0xff]  ;;  %v460_v32 = vld [vmem:[%s3611_s3 + $0x988] sm:$0xff]  ;;  %2500 = vst [vmem:[%s3626_s16 + $0x948] sm:$0xff] %v1476_v21  ;;  %v1482_v33 = vsub.f32 0.0, %v458_v30 }
  0xdd   : > { %2501 = vst [vmem:[%s3626_s16 + $0x950] sm:$0xff] %v1477_v22  ;;  %2502 = vst [vmem:[%s3626_s16 + $0x958] sm:$0xff] %v1478_v23  ;;  %v1483_v34 = vsub.f32 0.0, %v459_v31  ;;  %v1484_v35 = vsub.f32 0.0, %v460_v32  ;;  %v461_v36 = vld [vmem:[%s3611_s3 + $0x990] sm:$0xff]  ;;  %v462_v37 = vld [vmem:[%s3611_s3 + $0x998] sm:$0xff] }
  0xde   : > { %v463_v38 = vld [vmem:[%s3611_s3 + $0x9a0] sm:$0xff]  ;;  %2503 = vst [vmem:[%s3626_s16 + $0x960] sm:$0xff] %v1479_v27  ;;  %2504 = vst [vmem:[%s3626_s16 + $0x968] sm:$0xff] %v1480_v28  ;;  %v1485_v39 = vsub.f32 0.0, %v461_v36  ;;  %v1486_v40 = vsub.f32 0.0, %v462_v37  ;;  %v464_v42 = vld [vmem:[%s3611_s3 + $0x9a8] sm:$0xff] }
  0xdf   : > { %2505 = vst [vmem:[%s3626_s16 + $0x970] sm:$0xff] %v1481_v29  ;;  %v1487_v41 = vsub.f32 0.0, %v463_v38  ;;  %v465_v43 = vld [vmem:[%s3611_s3 + $0x9b0] sm:$0xff]  ;;  %v466_v44 = vld [vmem:[%s3611_s3 + $0x9b8] sm:$0xff]  ;;  %2506 = vst [vmem:[%s3626_s16 + $0x978] sm:$0xff] %v1482_v33  ;;  %v1488_v45 = vsub.f32 0.0, %v464_v42 }
  0xe0   : > { %2507 = vst [vmem:[%s3626_s16 + $0x980] sm:$0xff] %v1483_v34  ;;  %2508 = vst [vmem:[%s3626_s16 + $0x988] sm:$0xff] %v1484_v35  ;;  %v1489_v46 = vsub.f32 0.0, %v465_v43  ;;  %v1490_v47 = vsub.f32 0.0, %v466_v44  ;;  %v467_v48 = vld [vmem:[%s3611_s3 + $0x9c0] sm:$0xff]  ;;  %v468_v49 = vld [vmem:[%s3611_s3 + $0x9c8] sm:$0xff] }
  0xe1   : > { %v469_v50 = vld [vmem:[%s3611_s3 + $0x9d0] sm:$0xff]  ;;  %2509 = vst [vmem:[%s3626_s16 + $0x990] sm:$0xff] %v1485_v39  ;;  %2510 = vst [vmem:[%s3626_s16 + $0x998] sm:$0xff] %v1486_v40  ;;  %v1491_v51 = vsub.f32 0.0, %v467_v48  ;;  %v1492_v52 = vsub.f32 0.0, %v468_v49  ;;  %v470_v54 = vld [vmem:[%s3611_s3 + $0x9d8] sm:$0xff] }
  0xe2   : > { %2511 = vst [vmem:[%s3626_s16 + $0x9a0] sm:$0xff] %v1487_v41  ;;  %v1493_v53 = vsub.f32 0.0, %v469_v50  ;;  %v471_v55 = vld [vmem:[%s3611_s3 + $0x9e0] sm:$0xff]  ;;  %v472_v56 = vld [vmem:[%s3611_s3 + $0x9e8] sm:$0xff]  ;;  %2512 = vst [vmem:[%s3626_s16 + $0x9a8] sm:$0xff] %v1488_v45  ;;  %v1494_v57 = vsub.f32 0.0, %v470_v54 }
  0xe3   : > { %2513 = vst [vmem:[%s3626_s16 + $0x9b0] sm:$0xff] %v1489_v46  ;;  %2514 = vst [vmem:[%s3626_s16 + $0x9b8] sm:$0xff] %v1490_v47  ;;  %v1495_v58 = vsub.f32 0.0, %v471_v55  ;;  %v1496_v59 = vsub.f32 0.0, %v472_v56  ;;  %v473_v60 = vld [vmem:[%s3611_s3 + $0x9f0] sm:$0xff]  ;;  %v474_v61 = vld [vmem:[%s3611_s3 + $0x9f8] sm:$0xff] }
  0xe4   : > { %v475_v62 = vld [vmem:[%s3611_s3 + $0xa00] sm:$0xff]  ;;  %2515 = vst [vmem:[%s3626_s16 + $0x9c0] sm:$0xff] %v1491_v51  ;;  %2516 = vst [vmem:[%s3626_s16 + $0x9c8] sm:$0xff] %v1492_v52  ;;  %v1497_v63 = vsub.f32 0.0, %v473_v60  ;;  %v1498_v0 = vsub.f32 0.0, %v474_v61  ;;  %v476_v2 = vld [vmem:[%s3611_s3 + $0xa08] sm:$0xff] }
  0xe5   : > { %2517 = vst [vmem:[%s3626_s16 + $0x9d0] sm:$0xff] %v1493_v53  ;;  %v1499_v1 = vsub.f32 0.0, %v475_v62  ;;  %v477_v3 = vld [vmem:[%s3611_s3 + $0xa10] sm:$0xff]  ;;  %v478_v4 = vld [vmem:[%s3611_s3 + $0xa18] sm:$0xff]  ;;  %2518 = vst [vmem:[%s3626_s16 + $0x9d8] sm:$0xff] %v1494_v57  ;;  %v1500_v5 = vsub.f32 0.0, %v476_v2 }
  0xe6   : > { %2519 = vst [vmem:[%s3626_s16 + $0x9e0] sm:$0xff] %v1495_v58  ;;  %2520 = vst [vmem:[%s3626_s16 + $0x9e8] sm:$0xff] %v1496_v59  ;;  %v1501_v6 = vsub.f32 0.0, %v477_v3  ;;  %v1502_v7 = vsub.f32 0.0, %v478_v4  ;;  %v479_v8 = vld [vmem:[%s3611_s3 + $0xa20] sm:$0xff]  ;;  %v480_v9 = vld [vmem:[%s3611_s3 + $0xa28] sm:$0xff] }
  0xe7   : > { %v481_v10 = vld [vmem:[%s3611_s3 + $0xa30] sm:$0xff]  ;;  %2521 = vst [vmem:[%s3626_s16 + $0x9f0] sm:$0xff] %v1497_v63  ;;  %2522 = vst [vmem:[%s3626_s16 + $0x9f8] sm:$0xff] %v1498_v0  ;;  %v1503_v11 = vsub.f32 0.0, %v479_v8  ;;  %v1504_v12 = vsub.f32 0.0, %v480_v9  ;;  %v482_v14 = vld [vmem:[%s3611_s3 + $0xa38] sm:$0xff] }
  0xe8   : > { %2523 = vst [vmem:[%s3626_s16 + $0xa00] sm:$0xff] %v1499_v1  ;;  %v1505_v13 = vsub.f32 0.0, %v481_v10  ;;  %v483_v15 = vld [vmem:[%s3611_s3 + $0xa40] sm:$0xff]  ;;  %v484_v16 = vld [vmem:[%s3611_s3 + $0xa48] sm:$0xff]  ;;  %2524 = vst [vmem:[%s3626_s16 + $0xa08] sm:$0xff] %v1500_v5  ;;  %v1506_v17 = vsub.f32 0.0, %v482_v14 }
  0xe9   : > { %2525 = vst [vmem:[%s3626_s16 + $0xa10] sm:$0xff] %v1501_v6  ;;  %2526 = vst [vmem:[%s3626_s16 + $0xa18] sm:$0xff] %v1502_v7  ;;  %v1507_v18 = vsub.f32 0.0, %v483_v15  ;;  %v1508_v19 = vsub.f32 0.0, %v484_v16  ;;  %v485_v20 = vld [vmem:[%s3611_s3 + $0xa50] sm:$0xff]  ;;  %v486_v21 = vld [vmem:[%s3611_s3 + $0xa58] sm:$0xff] }
  0xea   : > { %v487_v22 = vld [vmem:[%s3611_s3 + $0xa60] sm:$0xff]  ;;  %2527 = vst [vmem:[%s3626_s16 + $0xa20] sm:$0xff] %v1503_v11  ;;  %2528 = vst [vmem:[%s3626_s16 + $0xa28] sm:$0xff] %v1504_v12  ;;  %v1509_v23 = vsub.f32 0.0, %v485_v20  ;;  %v1510_v24 = vsub.f32 0.0, %v486_v21  ;;  %v488_v26 = vld [vmem:[%s3611_s3 + $0xa68] sm:$0xff] }
  0xeb   : > { %2529 = vst [vmem:[%s3626_s16 + $0xa30] sm:$0xff] %v1505_v13  ;;  %v1511_v25 = vsub.f32 0.0, %v487_v22  ;;  %v489_v27 = vld [vmem:[%s3611_s3 + $0xa70] sm:$0xff]  ;;  %v490_v28 = vld [vmem:[%s3611_s3 + $0xa78] sm:$0xff]  ;;  %2530 = vst [vmem:[%s3626_s16 + $0xa38] sm:$0xff] %v1506_v17  ;;  %v1512_v29 = vsub.f32 0.0, %v488_v26 }
  0xec   : > { %2531 = vst [vmem:[%s3626_s16 + $0xa40] sm:$0xff] %v1507_v18  ;;  %2532 = vst [vmem:[%s3626_s16 + $0xa48] sm:$0xff] %v1508_v19  ;;  %v1513_v30 = vsub.f32 0.0, %v489_v27  ;;  %v1514_v31 = vsub.f32 0.0, %v490_v28  ;;  %v491_v32 = vld [vmem:[%s3611_s3 + $0xa80] sm:$0xff]  ;;  %v492_v33 = vld [vmem:[%s3611_s3 + $0xa88] sm:$0xff] }
  0xed   : > { %v493_v34 = vld [vmem:[%s3611_s3 + $0xa90] sm:$0xff]  ;;  %2533 = vst [vmem:[%s3626_s16 + $0xa50] sm:$0xff] %v1509_v23  ;;  %2534 = vst [vmem:[%s3626_s16 + $0xa58] sm:$0xff] %v1510_v24  ;;  %v1515_v35 = vsub.f32 0.0, %v491_v32  ;;  %v1516_v36 = vsub.f32 0.0, %v492_v33  ;;  %v494_v38 = vld [vmem:[%s3611_s3 + $0xa98] sm:$0xff] }
  0xee   : > { %2535 = vst [vmem:[%s3626_s16 + $0xa60] sm:$0xff] %v1511_v25  ;;  %v1517_v37 = vsub.f32 0.0, %v493_v34  ;;  %v495_v39 = vld [vmem:[%s3611_s3 + $0xaa0] sm:$0xff]  ;;  %v496_v40 = vld [vmem:[%s3611_s3 + $0xaa8] sm:$0xff]  ;;  %2536 = vst [vmem:[%s3626_s16 + $0xa68] sm:$0xff] %v1512_v29  ;;  %v1518_v41 = vsub.f32 0.0, %v494_v38 }
  0xef   : > { %2537 = vst [vmem:[%s3626_s16 + $0xa70] sm:$0xff] %v1513_v30  ;;  %2538 = vst [vmem:[%s3626_s16 + $0xa78] sm:$0xff] %v1514_v31  ;;  %v1519_v42 = vsub.f32 0.0, %v495_v39  ;;  %v1520_v43 = vsub.f32 0.0, %v496_v40  ;;  %v497_v44 = vld [vmem:[%s3611_s3 + $0xab0] sm:$0xff]  ;;  %v498_v45 = vld [vmem:[%s3611_s3 + $0xab8] sm:$0xff] }
  0xf0   : > { %v499_v46 = vld [vmem:[%s3611_s3 + $0xac0] sm:$0xff]  ;;  %2539 = vst [vmem:[%s3626_s16 + $0xa80] sm:$0xff] %v1515_v35  ;;  %2540 = vst [vmem:[%s3626_s16 + $0xa88] sm:$0xff] %v1516_v36  ;;  %v1521_v47 = vsub.f32 0.0, %v497_v44  ;;  %v1522_v48 = vsub.f32 0.0, %v498_v45  ;;  %v500_v50 = vld [vmem:[%s3611_s3 + $0xac8] sm:$0xff] }
  0xf1   : > { %2541 = vst [vmem:[%s3626_s16 + $0xa90] sm:$0xff] %v1517_v37  ;;  %v1523_v49 = vsub.f32 0.0, %v499_v46  ;;  %v501_v51 = vld [vmem:[%s3611_s3 + $0xad0] sm:$0xff]  ;;  %v502_v52 = vld [vmem:[%s3611_s3 + $0xad8] sm:$0xff]  ;;  %2542 = vst [vmem:[%s3626_s16 + $0xa98] sm:$0xff] %v1518_v41  ;;  %v1524_v53 = vsub.f32 0.0, %v500_v50 }
  0xf2   : > { %2543 = vst [vmem:[%s3626_s16 + $0xaa0] sm:$0xff] %v1519_v42  ;;  %2544 = vst [vmem:[%s3626_s16 + $0xaa8] sm:$0xff] %v1520_v43  ;;  %v1525_v54 = vsub.f32 0.0, %v501_v51  ;;  %v1526_v55 = vsub.f32 0.0, %v502_v52  ;;  %v503_v56 = vld [vmem:[%s3611_s3 + $0xae0] sm:$0xff]  ;;  %v504_v57 = vld [vmem:[%s3611_s3 + $0xae8] sm:$0xff] }
  0xf3   : > { %v505_v58 = vld [vmem:[%s3611_s3 + $0xaf0] sm:$0xff]  ;;  %2545 = vst [vmem:[%s3626_s16 + $0xab0] sm:$0xff] %v1521_v47  ;;  %2546 = vst [vmem:[%s3626_s16 + $0xab8] sm:$0xff] %v1522_v48  ;;  %v1527_v59 = vsub.f32 0.0, %v503_v56  ;;  %v1528_v60 = vsub.f32 0.0, %v504_v57  ;;  %v506_v62 = vld [vmem:[%s3611_s3 + $0xaf8] sm:$0xff] }
  0xf4   : > { %2547 = vst [vmem:[%s3626_s16 + $0xac0] sm:$0xff] %v1523_v49  ;;  %v1529_v61 = vsub.f32 0.0, %v505_v58  ;;  %v507_v63 = vld [vmem:[%s3611_s3 + $0xb00] sm:$0xff]  ;;  %v508_v0 = vld [vmem:[%s3611_s3 + $0xb08] sm:$0xff]  ;;  %2548 = vst [vmem:[%s3626_s16 + $0xac8] sm:$0xff] %v1524_v53  ;;  %v1530_v1 = vsub.f32 0.0, %v506_v62 }
  0xf5   : > { %2549 = vst [vmem:[%s3626_s16 + $0xad0] sm:$0xff] %v1525_v54  ;;  %2550 = vst [vmem:[%s3626_s16 + $0xad8] sm:$0xff] %v1526_v55  ;;  %v1531_v2 = vsub.f32 0.0, %v507_v63  ;;  %v1532_v3 = vsub.f32 0.0, %v508_v0  ;;  %v509_v4 = vld [vmem:[%s3611_s3 + $0xb10] sm:$0xff]  ;;  %v510_v5 = vld [vmem:[%s3611_s3 + $0xb18] sm:$0xff] }
  0xf6   : > { %v511_v6 = vld [vmem:[%s3611_s3 + $0xb20] sm:$0xff]  ;;  %2551 = vst [vmem:[%s3626_s16 + $0xae0] sm:$0xff] %v1527_v59  ;;  %2552 = vst [vmem:[%s3626_s16 + $0xae8] sm:$0xff] %v1528_v60  ;;  %v1533_v7 = vsub.f32 0.0, %v509_v4  ;;  %v1534_v8 = vsub.f32 0.0, %v510_v5  ;;  %v512_v10 = vld [vmem:[%s3611_s3 + $0xb28] sm:$0xff] }
  0xf7   : > { %2553 = vst [vmem:[%s3626_s16 + $0xaf0] sm:$0xff] %v1529_v61  ;;  %v1535_v9 = vsub.f32 0.0, %v511_v6  ;;  %v513_v11 = vld [vmem:[%s3611_s3 + $0xb30] sm:$0xff]  ;;  %v514_v12 = vld [vmem:[%s3611_s3 + $0xb38] sm:$0xff]  ;;  %2554 = vst [vmem:[%s3626_s16 + $0xaf8] sm:$0xff] %v1530_v1  ;;  %v1536_v13 = vsub.f32 0.0, %v512_v10 }
  0xf8   : > { %2555 = vst [vmem:[%s3626_s16 + $0xb00] sm:$0xff] %v1531_v2  ;;  %2556 = vst [vmem:[%s3626_s16 + $0xb08] sm:$0xff] %v1532_v3  ;;  %v1537_v14 = vsub.f32 0.0, %v513_v11  ;;  %v1538_v15 = vsub.f32 0.0, %v514_v12  ;;  %v515_v16 = vld [vmem:[%s3611_s3 + $0xb40] sm:$0xff]  ;;  %v516_v17 = vld [vmem:[%s3611_s3 + $0xb48] sm:$0xff] }
  0xf9   : > { %v517_v18 = vld [vmem:[%s3611_s3 + $0xb50] sm:$0xff]  ;;  %2557 = vst [vmem:[%s3626_s16 + $0xb10] sm:$0xff] %v1533_v7  ;;  %2558 = vst [vmem:[%s3626_s16 + $0xb18] sm:$0xff] %v1534_v8  ;;  %v1539_v19 = vsub.f32 0.0, %v515_v16  ;;  %v1540_v20 = vsub.f32 0.0, %v516_v17  ;;  %v518_v22 = vld [vmem:[%s3611_s3 + $0xb58] sm:$0xff] }
  0xfa   : > { %2559 = vst [vmem:[%s3626_s16 + $0xb20] sm:$0xff] %v1535_v9  ;;  %v1541_v21 = vsub.f32 0.0, %v517_v18  ;;  %v519_v23 = vld [vmem:[%s3611_s3 + $0xb60] sm:$0xff]  ;;  %v520_v24 = vld [vmem:[%s3611_s3 + $0xb68] sm:$0xff]  ;;  %2560 = vst [vmem:[%s3626_s16 + $0xb28] sm:$0xff] %v1536_v13  ;;  %v1542_v25 = vsub.f32 0.0, %v518_v22 }
  0xfb   : > { %2561 = vst [vmem:[%s3626_s16 + $0xb30] sm:$0xff] %v1537_v14  ;;  %2562 = vst [vmem:[%s3626_s16 + $0xb38] sm:$0xff] %v1538_v15  ;;  %v1543_v26 = vsub.f32 0.0, %v519_v23  ;;  %v1544_v27 = vsub.f32 0.0, %v520_v24  ;;  %v521_v28 = vld [vmem:[%s3611_s3 + $0xb70] sm:$0xff]  ;;  %v522_v29 = vld [vmem:[%s3611_s3 + $0xb78] sm:$0xff] }
  0xfc   : > { %v523_v30 = vld [vmem:[%s3611_s3 + $0xb80] sm:$0xff]  ;;  %2563 = vst [vmem:[%s3626_s16 + $0xb40] sm:$0xff] %v1539_v19  ;;  %2564 = vst [vmem:[%s3626_s16 + $0xb48] sm:$0xff] %v1540_v20  ;;  %v1545_v31 = vsub.f32 0.0, %v521_v28  ;;  %v1546_v32 = vsub.f32 0.0, %v522_v29  ;;  %v524_v34 = vld [vmem:[%s3611_s3 + $0xb88] sm:$0xff] }
  0xfd   : > { %2565 = vst [vmem:[%s3626_s16 + $0xb50] sm:$0xff] %v1541_v21  ;;  %v1547_v33 = vsub.f32 0.0, %v523_v30  ;;  %v525_v35 = vld [vmem:[%s3611_s3 + $0xb90] sm:$0xff]  ;;  %v526_v36 = vld [vmem:[%s3611_s3 + $0xb98] sm:$0xff]  ;;  %2566 = vst [vmem:[%s3626_s16 + $0xb58] sm:$0xff] %v1542_v25  ;;  %v1548_v37 = vsub.f32 0.0, %v524_v34 }
  0xfe   : > { %2567 = vst [vmem:[%s3626_s16 + $0xb60] sm:$0xff] %v1543_v26  ;;  %2568 = vst [vmem:[%s3626_s16 + $0xb68] sm:$0xff] %v1544_v27  ;;  %v1549_v38 = vsub.f32 0.0, %v525_v35  ;;  %v1550_v39 = vsub.f32 0.0, %v526_v36  ;;  %v527_v40 = vld [vmem:[%s3611_s3 + $0xba0] sm:$0xff]  ;;  %v528_v41 = vld [vmem:[%s3611_s3 + $0xba8] sm:$0xff] }
  0xff   : > { %v529_v42 = vld [vmem:[%s3611_s3 + $0xbb0] sm:$0xff]  ;;  %2569 = vst [vmem:[%s3626_s16 + $0xb70] sm:$0xff] %v1545_v31  ;;  %2570 = vst [vmem:[%s3626_s16 + $0xb78] sm:$0xff] %v1546_v32  ;;  %v1551_v43 = vsub.f32 0.0, %v527_v40  ;;  %v1552_v44 = vsub.f32 0.0, %v528_v41  ;;  %v530_v46 = vld [vmem:[%s3611_s3 + $0xbb8] sm:$0xff] }
 0x100   : > { %2571 = vst [vmem:[%s3626_s16 + $0xb80] sm:$0xff] %v1547_v33  ;;  %v1553_v45 = vsub.f32 0.0, %v529_v42  ;;  %v531_v47 = vld [vmem:[%s3611_s3 + $0xbc0] sm:$0xff]  ;;  %v532_v48 = vld [vmem:[%s3611_s3 + $0xbc8] sm:$0xff]  ;;  %2572 = vst [vmem:[%s3626_s16 + $0xb88] sm:$0xff] %v1548_v37  ;;  %v1554_v49 = vsub.f32 0.0, %v530_v46 }
 0x101   : > { %2573 = vst [vmem:[%s3626_s16 + $0xb90] sm:$0xff] %v1549_v38  ;;  %2574 = vst [vmem:[%s3626_s16 + $0xb98] sm:$0xff] %v1550_v39  ;;  %v1555_v50 = vsub.f32 0.0, %v531_v47  ;;  %v1556_v51 = vsub.f32 0.0, %v532_v48  ;;  %v533_v52 = vld [vmem:[%s3611_s3 + $0xbd0] sm:$0xff]  ;;  %v534_v53 = vld [vmem:[%s3611_s3 + $0xbd8] sm:$0xff] }
 0x102   : > { %v535_v54 = vld [vmem:[%s3611_s3 + $0xbe0] sm:$0xff]  ;;  %2575 = vst [vmem:[%s3626_s16 + $0xba0] sm:$0xff] %v1551_v43  ;;  %2576 = vst [vmem:[%s3626_s16 + $0xba8] sm:$0xff] %v1552_v44  ;;  %v1557_v55 = vsub.f32 0.0, %v533_v52  ;;  %v1558_v56 = vsub.f32 0.0, %v534_v53  ;;  %v536_v58 = vld [vmem:[%s3611_s3 + $0xbe8] sm:$0xff] }
 0x103   : > { %2577 = vst [vmem:[%s3626_s16 + $0xbb0] sm:$0xff] %v1553_v45  ;;  %v1559_v57 = vsub.f32 0.0, %v535_v54  ;;  %v537_v59 = vld [vmem:[%s3611_s3 + $0xbf0] sm:$0xff]  ;;  %v538_v60 = vld [vmem:[%s3611_s3 + $0xbf8] sm:$0xff]  ;;  %2578 = vst [vmem:[%s3626_s16 + $0xbb8] sm:$0xff] %v1554_v49  ;;  %v1560_v61 = vsub.f32 0.0, %v536_v58 }
 0x104   : > { %2579 = vst [vmem:[%s3626_s16 + $0xbc0] sm:$0xff] %v1555_v50  ;;  %2580 = vst [vmem:[%s3626_s16 + $0xbc8] sm:$0xff] %v1556_v51  ;;  %v1561_v62 = vsub.f32 0.0, %v537_v59  ;;  %v1562_v63 = vsub.f32 0.0, %v538_v60  ;;  %v539_v0 = vld [vmem:[%s3611_s3 + $0xc00] sm:$0xff]  ;;  %v540_v1 = vld [vmem:[%s3611_s3 + $0xc08] sm:$0xff] }
 0x105   : > { %v541_v2 = vld [vmem:[%s3611_s3 + $0xc10] sm:$0xff]  ;;  %2581 = vst [vmem:[%s3626_s16 + $0xbd0] sm:$0xff] %v1557_v55  ;;  %2582 = vst [vmem:[%s3626_s16 + $0xbd8] sm:$0xff] %v1558_v56  ;;  %v1563_v3 = vsub.f32 0.0, %v539_v0  ;;  %v1564_v4 = vsub.f32 0.0, %v540_v1  ;;  %v542_v6 = vld [vmem:[%s3611_s3 + $0xc18] sm:$0xff] }
 0x106   : > { %2583 = vst [vmem:[%s3626_s16 + $0xbe0] sm:$0xff] %v1559_v57  ;;  %v1565_v5 = vsub.f32 0.0, %v541_v2  ;;  %v543_v7 = vld [vmem:[%s3611_s3 + $0xc20] sm:$0xff]  ;;  %v544_v8 = vld [vmem:[%s3611_s3 + $0xc28] sm:$0xff]  ;;  %2584 = vst [vmem:[%s3626_s16 + $0xbe8] sm:$0xff] %v1560_v61  ;;  %v1566_v9 = vsub.f32 0.0, %v542_v6 }
 0x107   : > { %2585 = vst [vmem:[%s3626_s16 + $0xbf0] sm:$0xff] %v1561_v62  ;;  %2586 = vst [vmem:[%s3626_s16 + $0xbf8] sm:$0xff] %v1562_v63  ;;  %v1567_v10 = vsub.f32 0.0, %v543_v7  ;;  %v1568_v11 = vsub.f32 0.0, %v544_v8  ;;  %v545_v12 = vld [vmem:[%s3611_s3 + $0xc30] sm:$0xff]  ;;  %v546_v13 = vld [vmem:[%s3611_s3 + $0xc38] sm:$0xff] }
 0x108   : > { %v547_v14 = vld [vmem:[%s3611_s3 + $0xc40] sm:$0xff]  ;;  %2587 = vst [vmem:[%s3626_s16 + $0xc00] sm:$0xff] %v1563_v3  ;;  %2588 = vst [vmem:[%s3626_s16 + $0xc08] sm:$0xff] %v1564_v4  ;;  %v1569_v15 = vsub.f32 0.0, %v545_v12  ;;  %v1570_v16 = vsub.f32 0.0, %v546_v13  ;;  %v548_v18 = vld [vmem:[%s3611_s3 + $0xc48] sm:$0xff] }
 0x109   : > { %2589 = vst [vmem:[%s3626_s16 + $0xc10] sm:$0xff] %v1565_v5  ;;  %v1571_v17 = vsub.f32 0.0, %v547_v14  ;;  %v549_v19 = vld [vmem:[%s3611_s3 + $0xc50] sm:$0xff]  ;;  %v550_v20 = vld [vmem:[%s3611_s3 + $0xc58] sm:$0xff]  ;;  %2590 = vst [vmem:[%s3626_s16 + $0xc18] sm:$0xff] %v1566_v9  ;;  %v1572_v21 = vsub.f32 0.0, %v548_v18 }
 0x10a   : > { %2591 = vst [vmem:[%s3626_s16 + $0xc20] sm:$0xff] %v1567_v10  ;;  %2592 = vst [vmem:[%s3626_s16 + $0xc28] sm:$0xff] %v1568_v11  ;;  %v1573_v22 = vsub.f32 0.0, %v549_v19  ;;  %v1574_v23 = vsub.f32 0.0, %v550_v20  ;;  %v551_v24 = vld [vmem:[%s3611_s3 + $0xc60] sm:$0xff]  ;;  %v552_v25 = vld [vmem:[%s3611_s3 + $0xc68] sm:$0xff] }
 0x10b   : > { %v553_v26 = vld [vmem:[%s3611_s3 + $0xc70] sm:$0xff]  ;;  %2593 = vst [vmem:[%s3626_s16 + $0xc30] sm:$0xff] %v1569_v15  ;;  %2594 = vst [vmem:[%s3626_s16 + $0xc38] sm:$0xff] %v1570_v16  ;;  %v1575_v27 = vsub.f32 0.0, %v551_v24  ;;  %v1576_v28 = vsub.f32 0.0, %v552_v25  ;;  %v554_v30 = vld [vmem:[%s3611_s3 + $0xc78] sm:$0xff] }
 0x10c   : > { %2595 = vst [vmem:[%s3626_s16 + $0xc40] sm:$0xff] %v1571_v17  ;;  %v1577_v29 = vsub.f32 0.0, %v553_v26  ;;  %v555_v31 = vld [vmem:[%s3611_s3 + $0xc80] sm:$0xff]  ;;  %v556_v32 = vld [vmem:[%s3611_s3 + $0xc88] sm:$0xff]  ;;  %2596 = vst [vmem:[%s3626_s16 + $0xc48] sm:$0xff] %v1572_v21  ;;  %v1578_v33 = vsub.f32 0.0, %v554_v30 }
 0x10d   : > { %2597 = vst [vmem:[%s3626_s16 + $0xc50] sm:$0xff] %v1573_v22  ;;  %2598 = vst [vmem:[%s3626_s16 + $0xc58] sm:$0xff] %v1574_v23  ;;  %v1579_v34 = vsub.f32 0.0, %v555_v31  ;;  %v1580_v35 = vsub.f32 0.0, %v556_v32  ;;  %v557_v36 = vld [vmem:[%s3611_s3 + $0xc90] sm:$0xff]  ;;  %v558_v37 = vld [vmem:[%s3611_s3 + $0xc98] sm:$0xff] }
 0x10e   : > { %v559_v38 = vld [vmem:[%s3611_s3 + $0xca0] sm:$0xff]  ;;  %2599 = vst [vmem:[%s3626_s16 + $0xc60] sm:$0xff] %v1575_v27  ;;  %2600 = vst [vmem:[%s3626_s16 + $0xc68] sm:$0xff] %v1576_v28  ;;  %v1581_v39 = vsub.f32 0.0, %v557_v36  ;;  %v1582_v40 = vsub.f32 0.0, %v558_v37  ;;  %v560_v42 = vld [vmem:[%s3611_s3 + $0xca8] sm:$0xff] }
 0x10f   : > { %2601 = vst [vmem:[%s3626_s16 + $0xc70] sm:$0xff] %v1577_v29  ;;  %v1583_v41 = vsub.f32 0.0, %v559_v38  ;;  %v561_v43 = vld [vmem:[%s3611_s3 + $0xcb0] sm:$0xff]  ;;  %v562_v44 = vld [vmem:[%s3611_s3 + $0xcb8] sm:$0xff]  ;;  %2602 = vst [vmem:[%s3626_s16 + $0xc78] sm:$0xff] %v1578_v33  ;;  %v1584_v45 = vsub.f32 0.0, %v560_v42 }
 0x110   : > { %2603 = vst [vmem:[%s3626_s16 + $0xc80] sm:$0xff] %v1579_v34  ;;  %2604 = vst [vmem:[%s3626_s16 + $0xc88] sm:$0xff] %v1580_v35  ;;  %v1585_v46 = vsub.f32 0.0, %v561_v43  ;;  %v1586_v47 = vsub.f32 0.0, %v562_v44  ;;  %v563_v48 = vld [vmem:[%s3611_s3 + $0xcc0] sm:$0xff]  ;;  %v564_v49 = vld [vmem:[%s3611_s3 + $0xcc8] sm:$0xff] }
 0x111   : > { %v565_v50 = vld [vmem:[%s3611_s3 + $0xcd0] sm:$0xff]  ;;  %2605 = vst [vmem:[%s3626_s16 + $0xc90] sm:$0xff] %v1581_v39  ;;  %2606 = vst [vmem:[%s3626_s16 + $0xc98] sm:$0xff] %v1582_v40  ;;  %v1587_v51 = vsub.f32 0.0, %v563_v48  ;;  %v1588_v52 = vsub.f32 0.0, %v564_v49  ;;  %v566_v54 = vld [vmem:[%s3611_s3 + $0xcd8] sm:$0xff] }
 0x112   : > { %2607 = vst [vmem:[%s3626_s16 + $0xca0] sm:$0xff] %v1583_v41  ;;  %v1589_v53 = vsub.f32 0.0, %v565_v50  ;;  %v567_v55 = vld [vmem:[%s3611_s3 + $0xce0] sm:$0xff]  ;;  %v568_v56 = vld [vmem:[%s3611_s3 + $0xce8] sm:$0xff]  ;;  %2608 = vst [vmem:[%s3626_s16 + $0xca8] sm:$0xff] %v1584_v45  ;;  %v1590_v57 = vsub.f32 0.0, %v566_v54 }
 0x113   : > { %2609 = vst [vmem:[%s3626_s16 + $0xcb0] sm:$0xff] %v1585_v46  ;;  %2610 = vst [vmem:[%s3626_s16 + $0xcb8] sm:$0xff] %v1586_v47  ;;  %v1591_v58 = vsub.f32 0.0, %v567_v55  ;;  %v1592_v59 = vsub.f32 0.0, %v568_v56  ;;  %v569_v60 = vld [vmem:[%s3611_s3 + $0xcf0] sm:$0xff]  ;;  %v570_v61 = vld [vmem:[%s3611_s3 + $0xcf8] sm:$0xff] }
 0x114   : > { %v571_v62 = vld [vmem:[%s3611_s3 + $0xd00] sm:$0xff]  ;;  %2611 = vst [vmem:[%s3626_s16 + $0xcc0] sm:$0xff] %v1587_v51  ;;  %2612 = vst [vmem:[%s3626_s16 + $0xcc8] sm:$0xff] %v1588_v52  ;;  %v1593_v63 = vsub.f32 0.0, %v569_v60  ;;  %v1594_v0 = vsub.f32 0.0, %v570_v61  ;;  %v572_v2 = vld [vmem:[%s3611_s3 + $0xd08] sm:$0xff] }
 0x115   : > { %2613 = vst [vmem:[%s3626_s16 + $0xcd0] sm:$0xff] %v1589_v53  ;;  %v1595_v1 = vsub.f32 0.0, %v571_v62  ;;  %v573_v3 = vld [vmem:[%s3611_s3 + $0xd10] sm:$0xff]  ;;  %v574_v4 = vld [vmem:[%s3611_s3 + $0xd18] sm:$0xff]  ;;  %2614 = vst [vmem:[%s3626_s16 + $0xcd8] sm:$0xff] %v1590_v57  ;;  %v1596_v5 = vsub.f32 0.0, %v572_v2 }
 0x116   : > { %2615 = vst [vmem:[%s3626_s16 + $0xce0] sm:$0xff] %v1591_v58  ;;  %2616 = vst [vmem:[%s3626_s16 + $0xce8] sm:$0xff] %v1592_v59  ;;  %v1597_v6 = vsub.f32 0.0, %v573_v3  ;;  %v1598_v7 = vsub.f32 0.0, %v574_v4  ;;  %v575_v8 = vld [vmem:[%s3611_s3 + $0xd20] sm:$0xff]  ;;  %v576_v9 = vld [vmem:[%s3611_s3 + $0xd28] sm:$0xff] }
 0x117   : > { %v577_v10 = vld [vmem:[%s3611_s3 + $0xd30] sm:$0xff]  ;;  %2617 = vst [vmem:[%s3626_s16 + $0xcf0] sm:$0xff] %v1593_v63  ;;  %2618 = vst [vmem:[%s3626_s16 + $0xcf8] sm:$0xff] %v1594_v0  ;;  %v1599_v11 = vsub.f32 0.0, %v575_v8  ;;  %v1600_v12 = vsub.f32 0.0, %v576_v9  ;;  %v578_v14 = vld [vmem:[%s3611_s3 + $0xd38] sm:$0xff] }
 0x118   : > { %2619 = vst [vmem:[%s3626_s16 + $0xd00] sm:$0xff] %v1595_v1  ;;  %v1601_v13 = vsub.f32 0.0, %v577_v10  ;;  %v579_v15 = vld [vmem:[%s3611_s3 + $0xd40] sm:$0xff]  ;;  %v580_v16 = vld [vmem:[%s3611_s3 + $0xd48] sm:$0xff]  ;;  %2620 = vst [vmem:[%s3626_s16 + $0xd08] sm:$0xff] %v1596_v5  ;;  %v1602_v17 = vsub.f32 0.0, %v578_v14 }
 0x119   : > { %2621 = vst [vmem:[%s3626_s16 + $0xd10] sm:$0xff] %v1597_v6  ;;  %2622 = vst [vmem:[%s3626_s16 + $0xd18] sm:$0xff] %v1598_v7  ;;  %v1603_v18 = vsub.f32 0.0, %v579_v15  ;;  %v1604_v19 = vsub.f32 0.0, %v580_v16  ;;  %v581_v20 = vld [vmem:[%s3611_s3 + $0xd50] sm:$0xff]  ;;  %v582_v21 = vld [vmem:[%s3611_s3 + $0xd58] sm:$0xff] }
 0x11a   : > { %v583_v22 = vld [vmem:[%s3611_s3 + $0xd60] sm:$0xff]  ;;  %2623 = vst [vmem:[%s3626_s16 + $0xd20] sm:$0xff] %v1599_v11  ;;  %2624 = vst [vmem:[%s3626_s16 + $0xd28] sm:$0xff] %v1600_v12  ;;  %v1605_v23 = vsub.f32 0.0, %v581_v20  ;;  %v1606_v24 = vsub.f32 0.0, %v582_v21  ;;  %v584_v26 = vld [vmem:[%s3611_s3 + $0xd68] sm:$0xff] }
 0x11b   : > { %2625 = vst [vmem:[%s3626_s16 + $0xd30] sm:$0xff] %v1601_v13  ;;  %v1607_v25 = vsub.f32 0.0, %v583_v22  ;;  %v585_v27 = vld [vmem:[%s3611_s3 + $0xd70] sm:$0xff]  ;;  %v586_v28 = vld [vmem:[%s3611_s3 + $0xd78] sm:$0xff]  ;;  %2626 = vst [vmem:[%s3626_s16 + $0xd38] sm:$0xff] %v1602_v17  ;;  %v1608_v29 = vsub.f32 0.0, %v584_v26 }
 0x11c   : > { %2627 = vst [vmem:[%s3626_s16 + $0xd40] sm:$0xff] %v1603_v18  ;;  %2628 = vst [vmem:[%s3626_s16 + $0xd48] sm:$0xff] %v1604_v19  ;;  %v1609_v30 = vsub.f32 0.0, %v585_v27  ;;  %v1610_v31 = vsub.f32 0.0, %v586_v28  ;;  %v587_v32 = vld [vmem:[%s3611_s3 + $0xd80] sm:$0xff]  ;;  %v588_v33 = vld [vmem:[%s3611_s3 + $0xd88] sm:$0xff] }
 0x11d   : > { %v589_v34 = vld [vmem:[%s3611_s3 + $0xd90] sm:$0xff]  ;;  %2629 = vst [vmem:[%s3626_s16 + $0xd50] sm:$0xff] %v1605_v23  ;;  %2630 = vst [vmem:[%s3626_s16 + $0xd58] sm:$0xff] %v1606_v24  ;;  %v1611_v35 = vsub.f32 0.0, %v587_v32  ;;  %v1612_v36 = vsub.f32 0.0, %v588_v33  ;;  %v590_v38 = vld [vmem:[%s3611_s3 + $0xd98] sm:$0xff] }
 0x11e   : > { %2631 = vst [vmem:[%s3626_s16 + $0xd60] sm:$0xff] %v1607_v25  ;;  %v1613_v37 = vsub.f32 0.0, %v589_v34  ;;  %v591_v39 = vld [vmem:[%s3611_s3 + $0xda0] sm:$0xff]  ;;  %v592_v40 = vld [vmem:[%s3611_s3 + $0xda8] sm:$0xff]  ;;  %2632 = vst [vmem:[%s3626_s16 + $0xd68] sm:$0xff] %v1608_v29  ;;  %v1614_v41 = vsub.f32 0.0, %v590_v38 }
 0x11f   : > { %2633 = vst [vmem:[%s3626_s16 + $0xd70] sm:$0xff] %v1609_v30  ;;  %2634 = vst [vmem:[%s3626_s16 + $0xd78] sm:$0xff] %v1610_v31  ;;  %v1615_v42 = vsub.f32 0.0, %v591_v39  ;;  %v1616_v43 = vsub.f32 0.0, %v592_v40  ;;  %v593_v44 = vld [vmem:[%s3611_s3 + $0xdb0] sm:$0xff]  ;;  %v594_v45 = vld [vmem:[%s3611_s3 + $0xdb8] sm:$0xff] }
 0x120   : > { %v595_v46 = vld [vmem:[%s3611_s3 + $0xdc0] sm:$0xff]  ;;  %2635 = vst [vmem:[%s3626_s16 + $0xd80] sm:$0xff] %v1611_v35  ;;  %2636 = vst [vmem:[%s3626_s16 + $0xd88] sm:$0xff] %v1612_v36  ;;  %v1617_v47 = vsub.f32 0.0, %v593_v44  ;;  %v1618_v48 = vsub.f32 0.0, %v594_v45  ;;  %v596_v50 = vld [vmem:[%s3611_s3 + $0xdc8] sm:$0xff] }
 0x121   : > { %2637 = vst [vmem:[%s3626_s16 + $0xd90] sm:$0xff] %v1613_v37  ;;  %v1619_v49 = vsub.f32 0.0, %v595_v46  ;;  %v597_v51 = vld [vmem:[%s3611_s3 + $0xdd0] sm:$0xff]  ;;  %v598_v52 = vld [vmem:[%s3611_s3 + $0xdd8] sm:$0xff]  ;;  %2638 = vst [vmem:[%s3626_s16 + $0xd98] sm:$0xff] %v1614_v41  ;;  %v1620_v53 = vsub.f32 0.0, %v596_v50 }
 0x122   : > { %2639 = vst [vmem:[%s3626_s16 + $0xda0] sm:$0xff] %v1615_v42  ;;  %2640 = vst [vmem:[%s3626_s16 + $0xda8] sm:$0xff] %v1616_v43  ;;  %v1621_v54 = vsub.f32 0.0, %v597_v51  ;;  %v1622_v55 = vsub.f32 0.0, %v598_v52  ;;  %v599_v56 = vld [vmem:[%s3611_s3 + $0xde0] sm:$0xff]  ;;  %v600_v57 = vld [vmem:[%s3611_s3 + $0xde8] sm:$0xff] }
 0x123   : > { %v601_v58 = vld [vmem:[%s3611_s3 + $0xdf0] sm:$0xff]  ;;  %2641 = vst [vmem:[%s3626_s16 + $0xdb0] sm:$0xff] %v1617_v47  ;;  %2642 = vst [vmem:[%s3626_s16 + $0xdb8] sm:$0xff] %v1618_v48  ;;  %v1623_v59 = vsub.f32 0.0, %v599_v56  ;;  %v1624_v60 = vsub.f32 0.0, %v600_v57  ;;  %v602_v62 = vld [vmem:[%s3611_s3 + $0xdf8] sm:$0xff] }
 0x124   : > { %2643 = vst [vmem:[%s3626_s16 + $0xdc0] sm:$0xff] %v1619_v49  ;;  %v1625_v61 = vsub.f32 0.0, %v601_v58  ;;  %v603_v63 = vld [vmem:[%s3611_s3 + $0xe00] sm:$0xff]  ;;  %v604_v0 = vld [vmem:[%s3611_s3 + $0xe08] sm:$0xff]  ;;  %2644 = vst [vmem:[%s3626_s16 + $0xdc8] sm:$0xff] %v1620_v53  ;;  %v1626_v1 = vsub.f32 0.0, %v602_v62 }
 0x125   : > { %2645 = vst [vmem:[%s3626_s16 + $0xdd0] sm:$0xff] %v1621_v54  ;;  %2646 = vst [vmem:[%s3626_s16 + $0xdd8] sm:$0xff] %v1622_v55  ;;  %v1627_v2 = vsub.f32 0.0, %v603_v63  ;;  %v1628_v3 = vsub.f32 0.0, %v604_v0  ;;  %v605_v4 = vld [vmem:[%s3611_s3 + $0xe10] sm:$0xff]  ;;  %v606_v5 = vld [vmem:[%s3611_s3 + $0xe18] sm:$0xff] }
 0x126   : > { %v607_v6 = vld [vmem:[%s3611_s3 + $0xe20] sm:$0xff]  ;;  %2647 = vst [vmem:[%s3626_s16 + $0xde0] sm:$0xff] %v1623_v59  ;;  %2648 = vst [vmem:[%s3626_s16 + $0xde8] sm:$0xff] %v1624_v60  ;;  %v1629_v7 = vsub.f32 0.0, %v605_v4  ;;  %v1630_v8 = vsub.f32 0.0, %v606_v5  ;;  %v608_v10 = vld [vmem:[%s3611_s3 + $0xe28] sm:$0xff] }
 0x127   : > { %2649 = vst [vmem:[%s3626_s16 + $0xdf0] sm:$0xff] %v1625_v61  ;;  %v1631_v9 = vsub.f32 0.0, %v607_v6  ;;  %v609_v11 = vld [vmem:[%s3611_s3 + $0xe30] sm:$0xff]  ;;  %v610_v12 = vld [vmem:[%s3611_s3 + $0xe38] sm:$0xff]  ;;  %2650 = vst [vmem:[%s3626_s16 + $0xdf8] sm:$0xff] %v1626_v1  ;;  %v1632_v13 = vsub.f32 0.0, %v608_v10 }
 0x128   : > { %2651 = vst [vmem:[%s3626_s16 + $0xe00] sm:$0xff] %v1627_v2  ;;  %2652 = vst [vmem:[%s3626_s16 + $0xe08] sm:$0xff] %v1628_v3  ;;  %v1633_v14 = vsub.f32 0.0, %v609_v11  ;;  %v1634_v15 = vsub.f32 0.0, %v610_v12  ;;  %v611_v16 = vld [vmem:[%s3611_s3 + $0xe40] sm:$0xff]  ;;  %v612_v17 = vld [vmem:[%s3611_s3 + $0xe48] sm:$0xff] }
 0x129   : > { %v613_v18 = vld [vmem:[%s3611_s3 + $0xe50] sm:$0xff]  ;;  %2653 = vst [vmem:[%s3626_s16 + $0xe10] sm:$0xff] %v1629_v7  ;;  %2654 = vst [vmem:[%s3626_s16 + $0xe18] sm:$0xff] %v1630_v8  ;;  %v1635_v19 = vsub.f32 0.0, %v611_v16  ;;  %v1636_v20 = vsub.f32 0.0, %v612_v17  ;;  %v614_v22 = vld [vmem:[%s3611_s3 + $0xe58] sm:$0xff] }
 0x12a   : > { %2655 = vst [vmem:[%s3626_s16 + $0xe20] sm:$0xff] %v1631_v9  ;;  %v1637_v21 = vsub.f32 0.0, %v613_v18  ;;  %v615_v23 = vld [vmem:[%s3611_s3 + $0xe60] sm:$0xff]  ;;  %v616_v24 = vld [vmem:[%s3611_s3 + $0xe68] sm:$0xff]  ;;  %2656 = vst [vmem:[%s3626_s16 + $0xe28] sm:$0xff] %v1632_v13  ;;  %v1638_v25 = vsub.f32 0.0, %v614_v22 }
 0x12b   : > { %2657 = vst [vmem:[%s3626_s16 + $0xe30] sm:$0xff] %v1633_v14  ;;  %2658 = vst [vmem:[%s3626_s16 + $0xe38] sm:$0xff] %v1634_v15  ;;  %v1639_v26 = vsub.f32 0.0, %v615_v23  ;;  %v1640_v27 = vsub.f32 0.0, %v616_v24  ;;  %v617_v28 = vld [vmem:[%s3611_s3 + $0xe70] sm:$0xff]  ;;  %v618_v29 = vld [vmem:[%s3611_s3 + $0xe78] sm:$0xff] }
 0x12c   : > { %v619_v30 = vld [vmem:[%s3611_s3 + $0xe80] sm:$0xff]  ;;  %2659 = vst [vmem:[%s3626_s16 + $0xe40] sm:$0xff] %v1635_v19  ;;  %2660 = vst [vmem:[%s3626_s16 + $0xe48] sm:$0xff] %v1636_v20  ;;  %v1641_v31 = vsub.f32 0.0, %v617_v28  ;;  %v1642_v32 = vsub.f32 0.0, %v618_v29  ;;  %v620_v34 = vld [vmem:[%s3611_s3 + $0xe88] sm:$0xff] }
 0x12d   : > { %2661 = vst [vmem:[%s3626_s16 + $0xe50] sm:$0xff] %v1637_v21  ;;  %v1643_v33 = vsub.f32 0.0, %v619_v30  ;;  %v621_v35 = vld [vmem:[%s3611_s3 + $0xe90] sm:$0xff]  ;;  %v622_v36 = vld [vmem:[%s3611_s3 + $0xe98] sm:$0xff]  ;;  %2662 = vst [vmem:[%s3626_s16 + $0xe58] sm:$0xff] %v1638_v25  ;;  %v1644_v37 = vsub.f32 0.0, %v620_v34 }
 0x12e   : > { %2663 = vst [vmem:[%s3626_s16 + $0xe60] sm:$0xff] %v1639_v26  ;;  %2664 = vst [vmem:[%s3626_s16 + $0xe68] sm:$0xff] %v1640_v27  ;;  %v1645_v38 = vsub.f32 0.0, %v621_v35  ;;  %v1646_v39 = vsub.f32 0.0, %v622_v36  ;;  %v623_v40 = vld [vmem:[%s3611_s3 + $0xea0] sm:$0xff]  ;;  %v624_v41 = vld [vmem:[%s3611_s3 + $0xea8] sm:$0xff] }
 0x12f   : > { %v625_v42 = vld [vmem:[%s3611_s3 + $0xeb0] sm:$0xff]  ;;  %2665 = vst [vmem:[%s3626_s16 + $0xe70] sm:$0xff] %v1641_v31  ;;  %2666 = vst [vmem:[%s3626_s16 + $0xe78] sm:$0xff] %v1642_v32  ;;  %v1647_v43 = vsub.f32 0.0, %v623_v40  ;;  %v1648_v44 = vsub.f32 0.0, %v624_v41  ;;  %v626_v46 = vld [vmem:[%s3611_s3 + $0xeb8] sm:$0xff] }
 0x130   : > { %2667 = vst [vmem:[%s3626_s16 + $0xe80] sm:$0xff] %v1643_v33  ;;  %v1649_v45 = vsub.f32 0.0, %v625_v42  ;;  %v627_v47 = vld [vmem:[%s3611_s3 + $0xec0] sm:$0xff]  ;;  %v628_v48 = vld [vmem:[%s3611_s3 + $0xec8] sm:$0xff]  ;;  %2668 = vst [vmem:[%s3626_s16 + $0xe88] sm:$0xff] %v1644_v37  ;;  %v1650_v49 = vsub.f32 0.0, %v626_v46 }
 0x131   : > { %2669 = vst [vmem:[%s3626_s16 + $0xe90] sm:$0xff] %v1645_v38  ;;  %2670 = vst [vmem:[%s3626_s16 + $0xe98] sm:$0xff] %v1646_v39  ;;  %v1651_v50 = vsub.f32 0.0, %v627_v47  ;;  %v1652_v51 = vsub.f32 0.0, %v628_v48  ;;  %v629_v52 = vld [vmem:[%s3611_s3 + $0xed0] sm:$0xff]  ;;  %v630_v53 = vld [vmem:[%s3611_s3 + $0xed8] sm:$0xff] }
 0x132   : > { %v631_v54 = vld [vmem:[%s3611_s3 + $0xee0] sm:$0xff]  ;;  %2671 = vst [vmem:[%s3626_s16 + $0xea0] sm:$0xff] %v1647_v43  ;;  %2672 = vst [vmem:[%s3626_s16 + $0xea8] sm:$0xff] %v1648_v44  ;;  %v1653_v55 = vsub.f32 0.0, %v629_v52  ;;  %v1654_v56 = vsub.f32 0.0, %v630_v53  ;;  %v632_v58 = vld [vmem:[%s3611_s3 + $0xee8] sm:$0xff] }
 0x133   : > { %2673 = vst [vmem:[%s3626_s16 + $0xeb0] sm:$0xff] %v1649_v45  ;;  %v1655_v57 = vsub.f32 0.0, %v631_v54  ;;  %v633_v59 = vld [vmem:[%s3611_s3 + $0xef0] sm:$0xff]  ;;  %v634_v60 = vld [vmem:[%s3611_s3 + $0xef8] sm:$0xff]  ;;  %2674 = vst [vmem:[%s3626_s16 + $0xeb8] sm:$0xff] %v1650_v49  ;;  %v1656_v61 = vsub.f32 0.0, %v632_v58 }
 0x134   : > { %2675 = vst [vmem:[%s3626_s16 + $0xec0] sm:$0xff] %v1651_v50  ;;  %2676 = vst [vmem:[%s3626_s16 + $0xec8] sm:$0xff] %v1652_v51  ;;  %v1657_v62 = vsub.f32 0.0, %v633_v59  ;;  %v1658_v63 = vsub.f32 0.0, %v634_v60  ;;  %v635_v0 = vld [vmem:[%s3611_s3 + $0xf00] sm:$0xff]  ;;  %v636_v1 = vld [vmem:[%s3611_s3 + $0xf08] sm:$0xff] }
 0x135   : > { %v637_v2 = vld [vmem:[%s3611_s3 + $0xf10] sm:$0xff]  ;;  %2677 = vst [vmem:[%s3626_s16 + $0xed0] sm:$0xff] %v1653_v55  ;;  %2678 = vst [vmem:[%s3626_s16 + $0xed8] sm:$0xff] %v1654_v56  ;;  %v1659_v3 = vsub.f32 0.0, %v635_v0  ;;  %v1660_v4 = vsub.f32 0.0, %v636_v1  ;;  %v638_v6 = vld [vmem:[%s3611_s3 + $0xf18] sm:$0xff] }
 0x136   : > { %2679 = vst [vmem:[%s3626_s16 + $0xee0] sm:$0xff] %v1655_v57  ;;  %v1661_v5 = vsub.f32 0.0, %v637_v2  ;;  %v639_v7 = vld [vmem:[%s3611_s3 + $0xf20] sm:$0xff]  ;;  %v640_v8 = vld [vmem:[%s3611_s3 + $0xf28] sm:$0xff]  ;;  %2680 = vst [vmem:[%s3626_s16 + $0xee8] sm:$0xff] %v1656_v61  ;;  %v1662_v9 = vsub.f32 0.0, %v638_v6 }
 0x137   : > { %2681 = vst [vmem:[%s3626_s16 + $0xef0] sm:$0xff] %v1657_v62  ;;  %2682 = vst [vmem:[%s3626_s16 + $0xef8] sm:$0xff] %v1658_v63  ;;  %v1663_v10 = vsub.f32 0.0, %v639_v7  ;;  %v1664_v11 = vsub.f32 0.0, %v640_v8  ;;  %v641_v12 = vld [vmem:[%s3611_s3 + $0xf30] sm:$0xff]  ;;  %v642_v13 = vld [vmem:[%s3611_s3 + $0xf38] sm:$0xff] }
 0x138   : > { %v643_v14 = vld [vmem:[%s3611_s3 + $0xf40] sm:$0xff]  ;;  %2683 = vst [vmem:[%s3626_s16 + $0xf00] sm:$0xff] %v1659_v3  ;;  %2684 = vst [vmem:[%s3626_s16 + $0xf08] sm:$0xff] %v1660_v4  ;;  %v1665_v15 = vsub.f32 0.0, %v641_v12  ;;  %v1666_v16 = vsub.f32 0.0, %v642_v13  ;;  %v644_v18 = vld [vmem:[%s3611_s3 + $0xf48] sm:$0xff] }
 0x139   : > { %2685 = vst [vmem:[%s3626_s16 + $0xf10] sm:$0xff] %v1661_v5  ;;  %v1667_v17 = vsub.f32 0.0, %v643_v14  ;;  %v645_v19 = vld [vmem:[%s3611_s3 + $0xf50] sm:$0xff]  ;;  %v646_v20 = vld [vmem:[%s3611_s3 + $0xf58] sm:$0xff]  ;;  %2686 = vst [vmem:[%s3626_s16 + $0xf18] sm:$0xff] %v1662_v9  ;;  %v1668_v21 = vsub.f32 0.0, %v644_v18 }
 0x13a   : > { %2687 = vst [vmem:[%s3626_s16 + $0xf20] sm:$0xff] %v1663_v10  ;;  %2688 = vst [vmem:[%s3626_s16 + $0xf28] sm:$0xff] %v1664_v11  ;;  %v1669_v22 = vsub.f32 0.0, %v645_v19  ;;  %v1670_v23 = vsub.f32 0.0, %v646_v20  ;;  %v647_v24 = vld [vmem:[%s3611_s3 + $0xf60] sm:$0xff]  ;;  %v648_v25 = vld [vmem:[%s3611_s3 + $0xf68] sm:$0xff] }
 0x13b   : > { %v649_v26 = vld [vmem:[%s3611_s3 + $0xf70] sm:$0xff]  ;;  %2689 = vst [vmem:[%s3626_s16 + $0xf30] sm:$0xff] %v1665_v15  ;;  %2690 = vst [vmem:[%s3626_s16 + $0xf38] sm:$0xff] %v1666_v16  ;;  %v1671_v27 = vsub.f32 0.0, %v647_v24  ;;  %v1672_v28 = vsub.f32 0.0, %v648_v25  ;;  %v650_v30 = vld [vmem:[%s3611_s3 + $0xf78] sm:$0xff] }
 0x13c   : > { %2691 = vst [vmem:[%s3626_s16 + $0xf40] sm:$0xff] %v1667_v17  ;;  %v1673_v29 = vsub.f32 0.0, %v649_v26  ;;  %v651_v31 = vld [vmem:[%s3611_s3 + $0xf80] sm:$0xff]  ;;  %v652_v32 = vld [vmem:[%s3611_s3 + $0xf88] sm:$0xff]  ;;  %2692 = vst [vmem:[%s3626_s16 + $0xf48] sm:$0xff] %v1668_v21  ;;  %v1674_v33 = vsub.f32 0.0, %v650_v30 }
 0x13d   : > { %2693 = vst [vmem:[%s3626_s16 + $0xf50] sm:$0xff] %v1669_v22  ;;  %2694 = vst [vmem:[%s3626_s16 + $0xf58] sm:$0xff] %v1670_v23  ;;  %v1675_v34 = vsub.f32 0.0, %v651_v31  ;;  %v1676_v35 = vsub.f32 0.0, %v652_v32  ;;  %v653_v36 = vld [vmem:[%s3611_s3 + $0xf90] sm:$0xff]  ;;  %v654_v37 = vld [vmem:[%s3611_s3 + $0xf98] sm:$0xff] }
 0x13e   : > { %v655_v38 = vld [vmem:[%s3611_s3 + $0xfa0] sm:$0xff]  ;;  %2695 = vst [vmem:[%s3626_s16 + $0xf60] sm:$0xff] %v1671_v27  ;;  %2696 = vst [vmem:[%s3626_s16 + $0xf68] sm:$0xff] %v1672_v28  ;;  %v1677_v39 = vsub.f32 0.0, %v653_v36  ;;  %v1678_v40 = vsub.f32 0.0, %v654_v37  ;;  %v656_v42 = vld [vmem:[%s3611_s3 + $0xfa8] sm:$0xff] }
 0x13f   : > { %2697 = vst [vmem:[%s3626_s16 + $0xf70] sm:$0xff] %v1673_v29  ;;  %v1679_v41 = vsub.f32 0.0, %v655_v38  ;;  %v657_v43 = vld [vmem:[%s3611_s3 + $0xfb0] sm:$0xff]  ;;  %v658_v44 = vld [vmem:[%s3611_s3 + $0xfb8] sm:$0xff]  ;;  %2698 = vst [vmem:[%s3626_s16 + $0xf78] sm:$0xff] %v1674_v33  ;;  %v1680_v45 = vsub.f32 0.0, %v656_v42 }
 0x140   : > { %2699 = vst [vmem:[%s3626_s16 + $0xf80] sm:$0xff] %v1675_v34  ;;  %2700 = vst [vmem:[%s3626_s16 + $0xf88] sm:$0xff] %v1676_v35  ;;  %v1681_v46 = vsub.f32 0.0, %v657_v43  ;;  %v1682_v47 = vsub.f32 0.0, %v658_v44  ;;  %v659_v48 = vld [vmem:[%s3611_s3 + $0xfc0] sm:$0xff]  ;;  %v660_v49 = vld [vmem:[%s3611_s3 + $0xfc8] sm:$0xff] }
 0x141   : > { %v661_v50 = vld [vmem:[%s3611_s3 + $0xfd0] sm:$0xff]  ;;  %2701 = vst [vmem:[%s3626_s16 + $0xf90] sm:$0xff] %v1677_v39  ;;  %2702 = vst [vmem:[%s3626_s16 + $0xf98] sm:$0xff] %v1678_v40  ;;  %v1683_v51 = vsub.f32 0.0, %v659_v48  ;;  %v1684_v52 = vsub.f32 0.0, %v660_v49  ;;  %v662_v54 = vld [vmem:[%s3611_s3 + $0xfd8] sm:$0xff] }
 0x142   : > { %2703 = vst [vmem:[%s3626_s16 + $0xfa0] sm:$0xff] %v1679_v41  ;;  %v1685_v53 = vsub.f32 0.0, %v661_v50  ;;  %v663_v55 = vld [vmem:[%s3611_s3 + $0xfe0] sm:$0xff]  ;;  %v664_v56 = vld [vmem:[%s3611_s3 + $0xfe8] sm:$0xff]  ;;  %2704 = vst [vmem:[%s3626_s16 + $0xfa8] sm:$0xff] %v1680_v45  ;;  %v1686_v57 = vsub.f32 0.0, %v662_v54 }
 0x143   : > { %2705 = vst [vmem:[%s3626_s16 + $0xfb0] sm:$0xff] %v1681_v46  ;;  %2706 = vst [vmem:[%s3626_s16 + $0xfb8] sm:$0xff] %v1682_v47  ;;  %v1687_v58 = vsub.f32 0.0, %v663_v55  ;;  %v1688_v59 = vsub.f32 0.0, %v664_v56  ;;  %v665_v60 = vld [vmem:[%s3611_s3 + $0xff0] sm:$0xff]  ;;  %v666_v61 = vld [vmem:[%s3611_s3 + $0xff8] sm:$0xff] }
 0x144   : > { %v667_v62 = vld [vmem:[%s3611_s3 + $0x1000] sm:$0xff]  ;;  %2707 = vst [vmem:[%s3626_s16 + $0xfc0] sm:$0xff] %v1683_v51  ;;  %2708 = vst [vmem:[%s3626_s16 + $0xfc8] sm:$0xff] %v1684_v52  ;;  %v1689_v63 = vsub.f32 0.0, %v665_v60  ;;  %v1690_v0 = vsub.f32 0.0, %v666_v61  ;;  %v668_v2 = vld [vmem:[%s3611_s3 + $0x1008] sm:$0xff] }
 0x145   : > { %2709 = vst [vmem:[%s3626_s16 + $0xfd0] sm:$0xff] %v1685_v53  ;;  %v1691_v1 = vsub.f32 0.0, %v667_v62  ;;  %v669_v3 = vld [vmem:[%s3611_s3 + $0x1010] sm:$0xff]  ;;  %v670_v4 = vld [vmem:[%s3611_s3 + $0x1018] sm:$0xff]  ;;  %2710 = vst [vmem:[%s3626_s16 + $0xfd8] sm:$0xff] %v1686_v57  ;;  %v1692_v5 = vsub.f32 0.0, %v668_v2 }
 0x146   : > { %2711 = vst [vmem:[%s3626_s16 + $0xfe0] sm:$0xff] %v1687_v58  ;;  %2712 = vst [vmem:[%s3626_s16 + $0xfe8] sm:$0xff] %v1688_v59  ;;  %v1693_v6 = vsub.f32 0.0, %v669_v3  ;;  %v1694_v7 = vsub.f32 0.0, %v670_v4  ;;  %v671_v8 = vld [vmem:[%s3611_s3 + $0x1020] sm:$0xff]  ;;  %v672_v9 = vld [vmem:[%s3611_s3 + $0x1028] sm:$0xff] }
 0x147   : > { %v673_v10 = vld [vmem:[%s3611_s3 + $0x1030] sm:$0xff]  ;;  %2713 = vst [vmem:[%s3626_s16 + $0xff0] sm:$0xff] %v1689_v63  ;;  %2714 = vst [vmem:[%s3626_s16 + $0xff8] sm:$0xff] %v1690_v0  ;;  %v1695_v11 = vsub.f32 0.0, %v671_v8  ;;  %v1696_v12 = vsub.f32 0.0, %v672_v9  ;;  %v674_v14 = vld [vmem:[%s3611_s3 + $0x1038] sm:$0xff] }
 0x148   : > { %2715 = vst [vmem:[%s3626_s16 + $0x1000] sm:$0xff] %v1691_v1  ;;  %v1697_v13 = vsub.f32 0.0, %v673_v10  ;;  %v675_v15 = vld [vmem:[%s3611_s3 + $0x1040] sm:$0xff]  ;;  %v676_v16 = vld [vmem:[%s3611_s3 + $0x1048] sm:$0xff]  ;;  %2716 = vst [vmem:[%s3626_s16 + $0x1008] sm:$0xff] %v1692_v5  ;;  %v1698_v17 = vsub.f32 0.0, %v674_v14 }
 0x149   : > { %2717 = vst [vmem:[%s3626_s16 + $0x1010] sm:$0xff] %v1693_v6  ;;  %2718 = vst [vmem:[%s3626_s16 + $0x1018] sm:$0xff] %v1694_v7  ;;  %v1699_v18 = vsub.f32 0.0, %v675_v15  ;;  %v1700_v19 = vsub.f32 0.0, %v676_v16  ;;  %v677_v20 = vld [vmem:[%s3611_s3 + $0x1050] sm:$0xff]  ;;  %v678_v21 = vld [vmem:[%s3611_s3 + $0x1058] sm:$0xff] }
 0x14a   : > { %v679_v22 = vld [vmem:[%s3611_s3 + $0x1060] sm:$0xff]  ;;  %2719 = vst [vmem:[%s3626_s16 + $0x1020] sm:$0xff] %v1695_v11  ;;  %2720 = vst [vmem:[%s3626_s16 + $0x1028] sm:$0xff] %v1696_v12  ;;  %v1701_v23 = vsub.f32 0.0, %v677_v20  ;;  %v1702_v24 = vsub.f32 0.0, %v678_v21  ;;  %v680_v26 = vld [vmem:[%s3611_s3 + $0x1068] sm:$0xff] }
 0x14b   : > { %2721 = vst [vmem:[%s3626_s16 + $0x1030] sm:$0xff] %v1697_v13  ;;  %v1703_v25 = vsub.f32 0.0, %v679_v22  ;;  %v681_v27 = vld [vmem:[%s3611_s3 + $0x1070] sm:$0xff]  ;;  %v682_v28 = vld [vmem:[%s3611_s3 + $0x1078] sm:$0xff]  ;;  %2722 = vst [vmem:[%s3626_s16 + $0x1038] sm:$0xff] %v1698_v17  ;;  %v1704_v29 = vsub.f32 0.0, %v680_v26 }
 0x14c   : > { %2723 = vst [vmem:[%s3626_s16 + $0x1040] sm:$0xff] %v1699_v18  ;;  %2724 = vst [vmem:[%s3626_s16 + $0x1048] sm:$0xff] %v1700_v19  ;;  %v1705_v30 = vsub.f32 0.0, %v681_v27  ;;  %v1706_v31 = vsub.f32 0.0, %v682_v28  ;;  %v683_v32 = vld [vmem:[%s3611_s3 + $0x1080] sm:$0xff]  ;;  %v684_v33 = vld [vmem:[%s3611_s3 + $0x1088] sm:$0xff] }
 0x14d   : > { %v685_v34 = vld [vmem:[%s3611_s3 + $0x1090] sm:$0xff]  ;;  %2725 = vst [vmem:[%s3626_s16 + $0x1050] sm:$0xff] %v1701_v23  ;;  %2726 = vst [vmem:[%s3626_s16 + $0x1058] sm:$0xff] %v1702_v24  ;;  %v1707_v35 = vsub.f32 0.0, %v683_v32  ;;  %v1708_v36 = vsub.f32 0.0, %v684_v33  ;;  %v686_v38 = vld [vmem:[%s3611_s3 + $0x1098] sm:$0xff] }
 0x14e   : > { %2727 = vst [vmem:[%s3626_s16 + $0x1060] sm:$0xff] %v1703_v25  ;;  %v1709_v37 = vsub.f32 0.0, %v685_v34  ;;  %v687_v39 = vld [vmem:[%s3611_s3 + $0x10a0] sm:$0xff]  ;;  %v688_v40 = vld [vmem:[%s3611_s3 + $0x10a8] sm:$0xff]  ;;  %2728 = vst [vmem:[%s3626_s16 + $0x1068] sm:$0xff] %v1704_v29  ;;  %v1710_v41 = vsub.f32 0.0, %v686_v38 }
 0x14f   : > { %2729 = vst [vmem:[%s3626_s16 + $0x1070] sm:$0xff] %v1705_v30  ;;  %2730 = vst [vmem:[%s3626_s16 + $0x1078] sm:$0xff] %v1706_v31  ;;  %v1711_v42 = vsub.f32 0.0, %v687_v39  ;;  %v1712_v43 = vsub.f32 0.0, %v688_v40  ;;  %v689_v44 = vld [vmem:[%s3611_s3 + $0x10b0] sm:$0xff]  ;;  %v690_v45 = vld [vmem:[%s3611_s3 + $0x10b8] sm:$0xff] }
 0x150   : > { %v691_v46 = vld [vmem:[%s3611_s3 + $0x10c0] sm:$0xff]  ;;  %2731 = vst [vmem:[%s3626_s16 + $0x1080] sm:$0xff] %v1707_v35  ;;  %2732 = vst [vmem:[%s3626_s16 + $0x1088] sm:$0xff] %v1708_v36  ;;  %v1713_v47 = vsub.f32 0.0, %v689_v44  ;;  %v1714_v48 = vsub.f32 0.0, %v690_v45  ;;  %v692_v50 = vld [vmem:[%s3611_s3 + $0x10c8] sm:$0xff] }
 0x151   : > { %2733 = vst [vmem:[%s3626_s16 + $0x1090] sm:$0xff] %v1709_v37  ;;  %v1715_v49 = vsub.f32 0.0, %v691_v46  ;;  %v693_v51 = vld [vmem:[%s3611_s3 + $0x10d0] sm:$0xff]  ;;  %v694_v52 = vld [vmem:[%s3611_s3 + $0x10d8] sm:$0xff]  ;;  %2734 = vst [vmem:[%s3626_s16 + $0x1098] sm:$0xff] %v1710_v41  ;;  %v1716_v53 = vsub.f32 0.0, %v692_v50 }
 0x152   : > { %2735 = vst [vmem:[%s3626_s16 + $0x10a0] sm:$0xff] %v1711_v42  ;;  %2736 = vst [vmem:[%s3626_s16 + $0x10a8] sm:$0xff] %v1712_v43  ;;  %v1717_v54 = vsub.f32 0.0, %v693_v51  ;;  %v1718_v55 = vsub.f32 0.0, %v694_v52  ;;  %v695_v56 = vld [vmem:[%s3611_s3 + $0x10e0] sm:$0xff]  ;;  %v696_v57 = vld [vmem:[%s3611_s3 + $0x10e8] sm:$0xff] }
 0x153   : > { %v697_v58 = vld [vmem:[%s3611_s3 + $0x10f0] sm:$0xff]  ;;  %2737 = vst [vmem:[%s3626_s16 + $0x10b0] sm:$0xff] %v1713_v47  ;;  %2738 = vst [vmem:[%s3626_s16 + $0x10b8] sm:$0xff] %v1714_v48  ;;  %v1719_v59 = vsub.f32 0.0, %v695_v56  ;;  %v1720_v60 = vsub.f32 0.0, %v696_v57  ;;  %v698_v62 = vld [vmem:[%s3611_s3 + $0x10f8] sm:$0xff] }
 0x154   : > { %2739 = vst [vmem:[%s3626_s16 + $0x10c0] sm:$0xff] %v1715_v49  ;;  %v1721_v61 = vsub.f32 0.0, %v697_v58  ;;  %v699_v63 = vld [vmem:[%s3611_s3 + $0x1100] sm:$0xff]  ;;  %v700_v0 = vld [vmem:[%s3611_s3 + $0x1108] sm:$0xff]  ;;  %2740 = vst [vmem:[%s3626_s16 + $0x10c8] sm:$0xff] %v1716_v53  ;;  %v1722_v1 = vsub.f32 0.0, %v698_v62 }
 0x155   : > { %2741 = vst [vmem:[%s3626_s16 + $0x10d0] sm:$0xff] %v1717_v54  ;;  %2742 = vst [vmem:[%s3626_s16 + $0x10d8] sm:$0xff] %v1718_v55  ;;  %v1723_v2 = vsub.f32 0.0, %v699_v63  ;;  %v1724_v3 = vsub.f32 0.0, %v700_v0  ;;  %v701_v4 = vld [vmem:[%s3611_s3 + $0x1110] sm:$0xff]  ;;  %v702_v5 = vld [vmem:[%s3611_s3 + $0x1118] sm:$0xff] }
 0x156   : > { %v703_v6 = vld [vmem:[%s3611_s3 + $0x1120] sm:$0xff]  ;;  %2743 = vst [vmem:[%s3626_s16 + $0x10e0] sm:$0xff] %v1719_v59  ;;  %2744 = vst [vmem:[%s3626_s16 + $0x10e8] sm:$0xff] %v1720_v60  ;;  %v1725_v7 = vsub.f32 0.0, %v701_v4  ;;  %v1726_v8 = vsub.f32 0.0, %v702_v5  ;;  %v704_v10 = vld [vmem:[%s3611_s3 + $0x1128] sm:$0xff] }
 0x157   : > { %2745 = vst [vmem:[%s3626_s16 + $0x10f0] sm:$0xff] %v1721_v61  ;;  %v1727_v9 = vsub.f32 0.0, %v703_v6  ;;  %v705_v11 = vld [vmem:[%s3611_s3 + $0x1130] sm:$0xff]  ;;  %v706_v12 = vld [vmem:[%s3611_s3 + $0x1138] sm:$0xff]  ;;  %2746 = vst [vmem:[%s3626_s16 + $0x10f8] sm:$0xff] %v1722_v1  ;;  %v1728_v13 = vsub.f32 0.0, %v704_v10 }
 0x158   : > { %2747 = vst [vmem:[%s3626_s16 + $0x1100] sm:$0xff] %v1723_v2  ;;  %2748 = vst [vmem:[%s3626_s16 + $0x1108] sm:$0xff] %v1724_v3  ;;  %v1729_v14 = vsub.f32 0.0, %v705_v11  ;;  %v1730_v15 = vsub.f32 0.0, %v706_v12  ;;  %v707_v16 = vld [vmem:[%s3611_s3 + $0x1140] sm:$0xff]  ;;  %v708_v17 = vld [vmem:[%s3611_s3 + $0x1148] sm:$0xff] }
 0x159   : > { %v709_v18 = vld [vmem:[%s3611_s3 + $0x1150] sm:$0xff]  ;;  %2749 = vst [vmem:[%s3626_s16 + $0x1110] sm:$0xff] %v1725_v7  ;;  %2750 = vst [vmem:[%s3626_s16 + $0x1118] sm:$0xff] %v1726_v8  ;;  %v1731_v19 = vsub.f32 0.0, %v707_v16  ;;  %v1732_v20 = vsub.f32 0.0, %v708_v17  ;;  %v710_v22 = vld [vmem:[%s3611_s3 + $0x1158] sm:$0xff] }
 0x15a   : > { %2751 = vst [vmem:[%s3626_s16 + $0x1120] sm:$0xff] %v1727_v9  ;;  %v1733_v21 = vsub.f32 0.0, %v709_v18  ;;  %v711_v23 = vld [vmem:[%s3611_s3 + $0x1160] sm:$0xff]  ;;  %v712_v24 = vld [vmem:[%s3611_s3 + $0x1168] sm:$0xff]  ;;  %2752 = vst [vmem:[%s3626_s16 + $0x1128] sm:$0xff] %v1728_v13  ;;  %v1734_v25 = vsub.f32 0.0, %v710_v22 }
 0x15b   : > { %2753 = vst [vmem:[%s3626_s16 + $0x1130] sm:$0xff] %v1729_v14  ;;  %2754 = vst [vmem:[%s3626_s16 + $0x1138] sm:$0xff] %v1730_v15  ;;  %v1735_v26 = vsub.f32 0.0, %v711_v23  ;;  %v1736_v27 = vsub.f32 0.0, %v712_v24  ;;  %v713_v28 = vld [vmem:[%s3611_s3 + $0x1170] sm:$0xff]  ;;  %v714_v29 = vld [vmem:[%s3611_s3 + $0x1178] sm:$0xff] }
 0x15c   : > { %v715_v30 = vld [vmem:[%s3611_s3 + $0x1180] sm:$0xff]  ;;  %2755 = vst [vmem:[%s3626_s16 + $0x1140] sm:$0xff] %v1731_v19  ;;  %2756 = vst [vmem:[%s3626_s16 + $0x1148] sm:$0xff] %v1732_v20  ;;  %v1737_v31 = vsub.f32 0.0, %v713_v28  ;;  %v1738_v32 = vsub.f32 0.0, %v714_v29  ;;  %v716_v34 = vld [vmem:[%s3611_s3 + $0x1188] sm:$0xff] }
 0x15d   : > { %2757 = vst [vmem:[%s3626_s16 + $0x1150] sm:$0xff] %v1733_v21  ;;  %v1739_v33 = vsub.f32 0.0, %v715_v30  ;;  %v717_v35 = vld [vmem:[%s3611_s3 + $0x1190] sm:$0xff]  ;;  %v718_v36 = vld [vmem:[%s3611_s3 + $0x1198] sm:$0xff]  ;;  %2758 = vst [vmem:[%s3626_s16 + $0x1158] sm:$0xff] %v1734_v25  ;;  %v1740_v37 = vsub.f32 0.0, %v716_v34 }
 0x15e   : > { %2759 = vst [vmem:[%s3626_s16 + $0x1160] sm:$0xff] %v1735_v26  ;;  %2760 = vst [vmem:[%s3626_s16 + $0x1168] sm:$0xff] %v1736_v27  ;;  %v1741_v38 = vsub.f32 0.0, %v717_v35  ;;  %v1742_v39 = vsub.f32 0.0, %v718_v36  ;;  %v719_v40 = vld [vmem:[%s3611_s3 + $0x11a0] sm:$0xff]  ;;  %v720_v41 = vld [vmem:[%s3611_s3 + $0x11a8] sm:$0xff] }
 0x15f   : > { %v721_v42 = vld [vmem:[%s3611_s3 + $0x11b0] sm:$0xff]  ;;  %2761 = vst [vmem:[%s3626_s16 + $0x1170] sm:$0xff] %v1737_v31  ;;  %2762 = vst [vmem:[%s3626_s16 + $0x1178] sm:$0xff] %v1738_v32  ;;  %v1743_v43 = vsub.f32 0.0, %v719_v40  ;;  %v1744_v44 = vsub.f32 0.0, %v720_v41  ;;  %v722_v46 = vld [vmem:[%s3611_s3 + $0x11b8] sm:$0xff] }
 0x160   : > { %2763 = vst [vmem:[%s3626_s16 + $0x1180] sm:$0xff] %v1739_v33  ;;  %v1745_v45 = vsub.f32 0.0, %v721_v42  ;;  %v723_v47 = vld [vmem:[%s3611_s3 + $0x11c0] sm:$0xff]  ;;  %v724_v48 = vld [vmem:[%s3611_s3 + $0x11c8] sm:$0xff]  ;;  %2764 = vst [vmem:[%s3626_s16 + $0x1188] sm:$0xff] %v1740_v37  ;;  %v1746_v49 = vsub.f32 0.0, %v722_v46 }
 0x161   : > { %2765 = vst [vmem:[%s3626_s16 + $0x1190] sm:$0xff] %v1741_v38  ;;  %2766 = vst [vmem:[%s3626_s16 + $0x1198] sm:$0xff] %v1742_v39  ;;  %v1747_v50 = vsub.f32 0.0, %v723_v47  ;;  %v1748_v51 = vsub.f32 0.0, %v724_v48  ;;  %v725_v52 = vld [vmem:[%s3611_s3 + $0x11d0] sm:$0xff]  ;;  %v726_v53 = vld [vmem:[%s3611_s3 + $0x11d8] sm:$0xff] }
 0x162   : > { %v727_v54 = vld [vmem:[%s3611_s3 + $0x11e0] sm:$0xff]  ;;  %2767 = vst [vmem:[%s3626_s16 + $0x11a0] sm:$0xff] %v1743_v43  ;;  %2768 = vst [vmem:[%s3626_s16 + $0x11a8] sm:$0xff] %v1744_v44  ;;  %v1749_v55 = vsub.f32 0.0, %v725_v52  ;;  %v1750_v56 = vsub.f32 0.0, %v726_v53  ;;  %v728_v58 = vld [vmem:[%s3611_s3 + $0x11e8] sm:$0xff] }
 0x163   : > { %2769 = vst [vmem:[%s3626_s16 + $0x11b0] sm:$0xff] %v1745_v45  ;;  %v1751_v57 = vsub.f32 0.0, %v727_v54  ;;  %v729_v59 = vld [vmem:[%s3611_s3 + $0x11f0] sm:$0xff]  ;;  %v730_v60 = vld [vmem:[%s3611_s3 + $0x11f8] sm:$0xff]  ;;  %2770 = vst [vmem:[%s3626_s16 + $0x11b8] sm:$0xff] %v1746_v49  ;;  %v1752_v61 = vsub.f32 0.0, %v728_v58 }
 0x164   : > { %2771 = vst [vmem:[%s3626_s16 + $0x11c0] sm:$0xff] %v1747_v50  ;;  %2772 = vst [vmem:[%s3626_s16 + $0x11c8] sm:$0xff] %v1748_v51  ;;  %v1753_v62 = vsub.f32 0.0, %v729_v59  ;;  %v1754_v63 = vsub.f32 0.0, %v730_v60  ;;  %v731_v0 = vld [vmem:[%s3611_s3 + $0x1200] sm:$0xff]  ;;  %v732_v1 = vld [vmem:[%s3611_s3 + $0x1208] sm:$0xff] }
 0x165   : > { %v733_v2 = vld [vmem:[%s3611_s3 + $0x1210] sm:$0xff]  ;;  %2773 = vst [vmem:[%s3626_s16 + $0x11d0] sm:$0xff] %v1749_v55  ;;  %2774 = vst [vmem:[%s3626_s16 + $0x11d8] sm:$0xff] %v1750_v56  ;;  %v1755_v3 = vsub.f32 0.0, %v731_v0  ;;  %v1756_v4 = vsub.f32 0.0, %v732_v1  ;;  %v734_v6 = vld [vmem:[%s3611_s3 + $0x1218] sm:$0xff] }
 0x166   : > { %2775 = vst [vmem:[%s3626_s16 + $0x11e0] sm:$0xff] %v1751_v57  ;;  %v1757_v5 = vsub.f32 0.0, %v733_v2  ;;  %v735_v7 = vld [vmem:[%s3611_s3 + $0x1220] sm:$0xff]  ;;  %v736_v8 = vld [vmem:[%s3611_s3 + $0x1228] sm:$0xff]  ;;  %2776 = vst [vmem:[%s3626_s16 + $0x11e8] sm:$0xff] %v1752_v61  ;;  %v1758_v9 = vsub.f32 0.0, %v734_v6 }
 0x167   : > { %2777 = vst [vmem:[%s3626_s16 + $0x11f0] sm:$0xff] %v1753_v62  ;;  %2778 = vst [vmem:[%s3626_s16 + $0x11f8] sm:$0xff] %v1754_v63  ;;  %v1759_v10 = vsub.f32 0.0, %v735_v7  ;;  %v1760_v11 = vsub.f32 0.0, %v736_v8  ;;  %v737_v12 = vld [vmem:[%s3611_s3 + $0x1230] sm:$0xff]  ;;  %v738_v13 = vld [vmem:[%s3611_s3 + $0x1238] sm:$0xff] }
 0x168   : > { %v739_v14 = vld [vmem:[%s3611_s3 + $0x1240] sm:$0xff]  ;;  %2779 = vst [vmem:[%s3626_s16 + $0x1200] sm:$0xff] %v1755_v3  ;;  %2780 = vst [vmem:[%s3626_s16 + $0x1208] sm:$0xff] %v1756_v4  ;;  %v1761_v15 = vsub.f32 0.0, %v737_v12  ;;  %v1762_v16 = vsub.f32 0.0, %v738_v13  ;;  %v740_v18 = vld [vmem:[%s3611_s3 + $0x1248] sm:$0xff] }
 0x169   : > { %2781 = vst [vmem:[%s3626_s16 + $0x1210] sm:$0xff] %v1757_v5  ;;  %v1763_v17 = vsub.f32 0.0, %v739_v14  ;;  %v741_v19 = vld [vmem:[%s3611_s3 + $0x1250] sm:$0xff]  ;;  %v742_v20 = vld [vmem:[%s3611_s3 + $0x1258] sm:$0xff]  ;;  %2782 = vst [vmem:[%s3626_s16 + $0x1218] sm:$0xff] %v1758_v9  ;;  %v1764_v21 = vsub.f32 0.0, %v740_v18 }
 0x16a   : > { %2783 = vst [vmem:[%s3626_s16 + $0x1220] sm:$0xff] %v1759_v10  ;;  %2784 = vst [vmem:[%s3626_s16 + $0x1228] sm:$0xff] %v1760_v11  ;;  %v1765_v22 = vsub.f32 0.0, %v741_v19  ;;  %v1766_v23 = vsub.f32 0.0, %v742_v20  ;;  %v743_v24 = vld [vmem:[%s3611_s3 + $0x1260] sm:$0xff]  ;;  %v744_v25 = vld [vmem:[%s3611_s3 + $0x1268] sm:$0xff] }
 0x16b   : > { %v745_v26 = vld [vmem:[%s3611_s3 + $0x1270] sm:$0xff]  ;;  %2785 = vst [vmem:[%s3626_s16 + $0x1230] sm:$0xff] %v1761_v15  ;;  %2786 = vst [vmem:[%s3626_s16 + $0x1238] sm:$0xff] %v1762_v16  ;;  %v1767_v27 = vsub.f32 0.0, %v743_v24  ;;  %v1768_v28 = vsub.f32 0.0, %v744_v25  ;;  %v746_v30 = vld [vmem:[%s3611_s3 + $0x1278] sm:$0xff] }
 0x16c   : > { %2787 = vst [vmem:[%s3626_s16 + $0x1240] sm:$0xff] %v1763_v17  ;;  %v1769_v29 = vsub.f32 0.0, %v745_v26  ;;  %v747_v31 = vld [vmem:[%s3611_s3 + $0x1280] sm:$0xff]  ;;  %v748_v32 = vld [vmem:[%s3611_s3 + $0x1288] sm:$0xff]  ;;  %2788 = vst [vmem:[%s3626_s16 + $0x1248] sm:$0xff] %v1764_v21  ;;  %v1770_v33 = vsub.f32 0.0, %v746_v30 }
 0x16d   : > { %2789 = vst [vmem:[%s3626_s16 + $0x1250] sm:$0xff] %v1765_v22  ;;  %2790 = vst [vmem:[%s3626_s16 + $0x1258] sm:$0xff] %v1766_v23  ;;  %v1771_v34 = vsub.f32 0.0, %v747_v31  ;;  %v1772_v35 = vsub.f32 0.0, %v748_v32  ;;  %v749_v36 = vld [vmem:[%s3611_s3 + $0x1290] sm:$0xff]  ;;  %v750_v37 = vld [vmem:[%s3611_s3 + $0x1298] sm:$0xff] }
 0x16e   : > { %v751_v38 = vld [vmem:[%s3611_s3 + $0x12a0] sm:$0xff]  ;;  %2791 = vst [vmem:[%s3626_s16 + $0x1260] sm:$0xff] %v1767_v27  ;;  %2792 = vst [vmem:[%s3626_s16 + $0x1268] sm:$0xff] %v1768_v28  ;;  %v1773_v39 = vsub.f32 0.0, %v749_v36  ;;  %v1774_v40 = vsub.f32 0.0, %v750_v37  ;;  %v752_v42 = vld [vmem:[%s3611_s3 + $0x12a8] sm:$0xff] }
 0x16f   : > { %2793 = vst [vmem:[%s3626_s16 + $0x1270] sm:$0xff] %v1769_v29  ;;  %v1775_v41 = vsub.f32 0.0, %v751_v38  ;;  %v753_v43 = vld [vmem:[%s3611_s3 + $0x12b0] sm:$0xff]  ;;  %v754_v44 = vld [vmem:[%s3611_s3 + $0x12b8] sm:$0xff]  ;;  %2794 = vst [vmem:[%s3626_s16 + $0x1278] sm:$0xff] %v1770_v33  ;;  %v1776_v45 = vsub.f32 0.0, %v752_v42 }
 0x170   : > { %2795 = vst [vmem:[%s3626_s16 + $0x1280] sm:$0xff] %v1771_v34  ;;  %2796 = vst [vmem:[%s3626_s16 + $0x1288] sm:$0xff] %v1772_v35  ;;  %v1777_v46 = vsub.f32 0.0, %v753_v43  ;;  %v1778_v47 = vsub.f32 0.0, %v754_v44  ;;  %v755_v48 = vld [vmem:[%s3611_s3 + $0x12c0] sm:$0xff]  ;;  %v756_v49 = vld [vmem:[%s3611_s3 + $0x12c8] sm:$0xff] }
 0x171   : > { %v757_v50 = vld [vmem:[%s3611_s3 + $0x12d0] sm:$0xff]  ;;  %2797 = vst [vmem:[%s3626_s16 + $0x1290] sm:$0xff] %v1773_v39  ;;  %2798 = vst [vmem:[%s3626_s16 + $0x1298] sm:$0xff] %v1774_v40  ;;  %v1779_v51 = vsub.f32 0.0, %v755_v48  ;;  %v1780_v52 = vsub.f32 0.0, %v756_v49  ;;  %v758_v54 = vld [vmem:[%s3611_s3 + $0x12d8] sm:$0xff] }
 0x172   : > { %2799 = vst [vmem:[%s3626_s16 + $0x12a0] sm:$0xff] %v1775_v41  ;;  %v1781_v53 = vsub.f32 0.0, %v757_v50  ;;  %v759_v55 = vld [vmem:[%s3611_s3 + $0x12e0] sm:$0xff]  ;;  %v760_v56 = vld [vmem:[%s3611_s3 + $0x12e8] sm:$0xff]  ;;  %2800 = vst [vmem:[%s3626_s16 + $0x12a8] sm:$0xff] %v1776_v45  ;;  %v1782_v57 = vsub.f32 0.0, %v758_v54 }
 0x173   : > { %2801 = vst [vmem:[%s3626_s16 + $0x12b0] sm:$0xff] %v1777_v46  ;;  %2802 = vst [vmem:[%s3626_s16 + $0x12b8] sm:$0xff] %v1778_v47  ;;  %v1783_v58 = vsub.f32 0.0, %v759_v55  ;;  %v1784_v59 = vsub.f32 0.0, %v760_v56  ;;  %v761_v60 = vld [vmem:[%s3611_s3 + $0x12f0] sm:$0xff]  ;;  %v762_v61 = vld [vmem:[%s3611_s3 + $0x12f8] sm:$0xff] }
 0x174   : > { %v763_v62 = vld [vmem:[%s3611_s3 + $0x1300] sm:$0xff]  ;;  %2803 = vst [vmem:[%s3626_s16 + $0x12c0] sm:$0xff] %v1779_v51  ;;  %2804 = vst [vmem:[%s3626_s16 + $0x12c8] sm:$0xff] %v1780_v52  ;;  %v1785_v63 = vsub.f32 0.0, %v761_v60  ;;  %v1786_v0 = vsub.f32 0.0, %v762_v61  ;;  %v764_v2 = vld [vmem:[%s3611_s3 + $0x1308] sm:$0xff] }
 0x175   : > { %2805 = vst [vmem:[%s3626_s16 + $0x12d0] sm:$0xff] %v1781_v53  ;;  %v1787_v1 = vsub.f32 0.0, %v763_v62  ;;  %v765_v3 = vld [vmem:[%s3611_s3 + $0x1310] sm:$0xff]  ;;  %v766_v4 = vld [vmem:[%s3611_s3 + $0x1318] sm:$0xff]  ;;  %2806 = vst [vmem:[%s3626_s16 + $0x12d8] sm:$0xff] %v1782_v57  ;;  %v1788_v5 = vsub.f32 0.0, %v764_v2 }
 0x176   : > { %2807 = vst [vmem:[%s3626_s16 + $0x12e0] sm:$0xff] %v1783_v58  ;;  %2808 = vst [vmem:[%s3626_s16 + $0x12e8] sm:$0xff] %v1784_v59  ;;  %v1789_v6 = vsub.f32 0.0, %v765_v3  ;;  %v1790_v7 = vsub.f32 0.0, %v766_v4  ;;  %v767_v8 = vld [vmem:[%s3611_s3 + $0x1320] sm:$0xff]  ;;  %v768_v9 = vld [vmem:[%s3611_s3 + $0x1328] sm:$0xff] }
 0x177   : > { %v769_v10 = vld [vmem:[%s3611_s3 + $0x1330] sm:$0xff]  ;;  %2809 = vst [vmem:[%s3626_s16 + $0x12f0] sm:$0xff] %v1785_v63  ;;  %2810 = vst [vmem:[%s3626_s16 + $0x12f8] sm:$0xff] %v1786_v0  ;;  %v1791_v11 = vsub.f32 0.0, %v767_v8  ;;  %v1792_v12 = vsub.f32 0.0, %v768_v9  ;;  %v770_v14 = vld [vmem:[%s3611_s3 + $0x1338] sm:$0xff] }
 0x178   : > { %2811 = vst [vmem:[%s3626_s16 + $0x1300] sm:$0xff] %v1787_v1  ;;  %v1793_v13 = vsub.f32 0.0, %v769_v10  ;;  %v771_v15 = vld [vmem:[%s3611_s3 + $0x1340] sm:$0xff]  ;;  %v772_v16 = vld [vmem:[%s3611_s3 + $0x1348] sm:$0xff]  ;;  %2812 = vst [vmem:[%s3626_s16 + $0x1308] sm:$0xff] %v1788_v5  ;;  %v1794_v17 = vsub.f32 0.0, %v770_v14 }
 0x179   : > { %2813 = vst [vmem:[%s3626_s16 + $0x1310] sm:$0xff] %v1789_v6  ;;  %2814 = vst [vmem:[%s3626_s16 + $0x1318] sm:$0xff] %v1790_v7  ;;  %v1795_v18 = vsub.f32 0.0, %v771_v15  ;;  %v1796_v19 = vsub.f32 0.0, %v772_v16  ;;  %v773_v20 = vld [vmem:[%s3611_s3 + $0x1350] sm:$0xff]  ;;  %v774_v21 = vld [vmem:[%s3611_s3 + $0x1358] sm:$0xff] }
 0x17a   : > { %v775_v22 = vld [vmem:[%s3611_s3 + $0x1360] sm:$0xff]  ;;  %2815 = vst [vmem:[%s3626_s16 + $0x1320] sm:$0xff] %v1791_v11  ;;  %2816 = vst [vmem:[%s3626_s16 + $0x1328] sm:$0xff] %v1792_v12  ;;  %v1797_v23 = vsub.f32 0.0, %v773_v20  ;;  %v1798_v24 = vsub.f32 0.0, %v774_v21  ;;  %v776_v26 = vld [vmem:[%s3611_s3 + $0x1368] sm:$0xff] }
 0x17b   : > { %2817 = vst [vmem:[%s3626_s16 + $0x1330] sm:$0xff] %v1793_v13  ;;  %v1799_v25 = vsub.f32 0.0, %v775_v22  ;;  %v777_v27 = vld [vmem:[%s3611_s3 + $0x1370] sm:$0xff]  ;;  %v778_v28 = vld [vmem:[%s3611_s3 + $0x1378] sm:$0xff]  ;;  %2818 = vst [vmem:[%s3626_s16 + $0x1338] sm:$0xff] %v1794_v17  ;;  %v1800_v29 = vsub.f32 0.0, %v776_v26 }
 0x17c   : > { %2819 = vst [vmem:[%s3626_s16 + $0x1340] sm:$0xff] %v1795_v18  ;;  %2820 = vst [vmem:[%s3626_s16 + $0x1348] sm:$0xff] %v1796_v19  ;;  %v1801_v30 = vsub.f32 0.0, %v777_v27  ;;  %v1802_v31 = vsub.f32 0.0, %v778_v28  ;;  %v779_v32 = vld [vmem:[%s3611_s3 + $0x1380] sm:$0xff]  ;;  %v780_v33 = vld [vmem:[%s3611_s3 + $0x1388] sm:$0xff] }
 0x17d   : > { %v781_v34 = vld [vmem:[%s3611_s3 + $0x1390] sm:$0xff]  ;;  %2821 = vst [vmem:[%s3626_s16 + $0x1350] sm:$0xff] %v1797_v23  ;;  %2822 = vst [vmem:[%s3626_s16 + $0x1358] sm:$0xff] %v1798_v24  ;;  %v1803_v35 = vsub.f32 0.0, %v779_v32  ;;  %v1804_v36 = vsub.f32 0.0, %v780_v33  ;;  %v782_v38 = vld [vmem:[%s3611_s3 + $0x1398] sm:$0xff] }
 0x17e   : > { %2823 = vst [vmem:[%s3626_s16 + $0x1360] sm:$0xff] %v1799_v25  ;;  %v1805_v37 = vsub.f32 0.0, %v781_v34  ;;  %v783_v39 = vld [vmem:[%s3611_s3 + $0x13a0] sm:$0xff]  ;;  %v784_v40 = vld [vmem:[%s3611_s3 + $0x13a8] sm:$0xff]  ;;  %2824 = vst [vmem:[%s3626_s16 + $0x1368] sm:$0xff] %v1800_v29  ;;  %v1806_v41 = vsub.f32 0.0, %v782_v38 }
 0x17f   : > { %2825 = vst [vmem:[%s3626_s16 + $0x1370] sm:$0xff] %v1801_v30  ;;  %2826 = vst [vmem:[%s3626_s16 + $0x1378] sm:$0xff] %v1802_v31  ;;  %v1807_v42 = vsub.f32 0.0, %v783_v39  ;;  %v1808_v43 = vsub.f32 0.0, %v784_v40  ;;  %v785_v44 = vld [vmem:[%s3611_s3 + $0x13b0] sm:$0xff]  ;;  %v786_v45 = vld [vmem:[%s3611_s3 + $0x13b8] sm:$0xff] }
 0x180   : > { %v787_v46 = vld [vmem:[%s3611_s3 + $0x13c0] sm:$0xff]  ;;  %2827 = vst [vmem:[%s3626_s16 + $0x1380] sm:$0xff] %v1803_v35  ;;  %2828 = vst [vmem:[%s3626_s16 + $0x1388] sm:$0xff] %v1804_v36  ;;  %v1809_v47 = vsub.f32 0.0, %v785_v44  ;;  %v1810_v48 = vsub.f32 0.0, %v786_v45  ;;  %v788_v50 = vld [vmem:[%s3611_s3 + $0x13c8] sm:$0xff] }
 0x181   : > { %2829 = vst [vmem:[%s3626_s16 + $0x1390] sm:$0xff] %v1805_v37  ;;  %v1811_v49 = vsub.f32 0.0, %v787_v46  ;;  %v789_v51 = vld [vmem:[%s3611_s3 + $0x13d0] sm:$0xff]  ;;  %v790_v52 = vld [vmem:[%s3611_s3 + $0x13d8] sm:$0xff]  ;;  %2830 = vst [vmem:[%s3626_s16 + $0x1398] sm:$0xff] %v1806_v41  ;;  %v1812_v53 = vsub.f32 0.0, %v788_v50 }
 0x182   : > { %2831 = vst [vmem:[%s3626_s16 + $0x13a0] sm:$0xff] %v1807_v42  ;;  %2832 = vst [vmem:[%s3626_s16 + $0x13a8] sm:$0xff] %v1808_v43  ;;  %v1813_v54 = vsub.f32 0.0, %v789_v51  ;;  %v1814_v55 = vsub.f32 0.0, %v790_v52  ;;  %v791_v56 = vld [vmem:[%s3611_s3 + $0x13e0] sm:$0xff]  ;;  %v792_v57 = vld [vmem:[%s3611_s3 + $0x13e8] sm:$0xff] }
 0x183   : > { %v793_v58 = vld [vmem:[%s3611_s3 + $0x13f0] sm:$0xff]  ;;  %2833 = vst [vmem:[%s3626_s16 + $0x13b0] sm:$0xff] %v1809_v47  ;;  %2834 = vst [vmem:[%s3626_s16 + $0x13b8] sm:$0xff] %v1810_v48  ;;  %v1815_v59 = vsub.f32 0.0, %v791_v56  ;;  %v1816_v60 = vsub.f32 0.0, %v792_v57  ;;  %v794_v62 = vld [vmem:[%s3611_s3 + $0x13f8] sm:$0xff] }
 0x184   : > { %2835 = vst [vmem:[%s3626_s16 + $0x13c0] sm:$0xff] %v1811_v49  ;;  %v1817_v61 = vsub.f32 0.0, %v793_v58  ;;  %v795_v63 = vld [vmem:[%s3611_s3 + $0x1400] sm:$0xff]  ;;  %v796_v0 = vld [vmem:[%s3611_s3 + $0x1408] sm:$0xff]  ;;  %2836 = vst [vmem:[%s3626_s16 + $0x13c8] sm:$0xff] %v1812_v53  ;;  %v1818_v1 = vsub.f32 0.0, %v794_v62 }
 0x185   : > { %2837 = vst [vmem:[%s3626_s16 + $0x13d0] sm:$0xff] %v1813_v54  ;;  %2838 = vst [vmem:[%s3626_s16 + $0x13d8] sm:$0xff] %v1814_v55  ;;  %v1819_v2 = vsub.f32 0.0, %v795_v63  ;;  %v1820_v3 = vsub.f32 0.0, %v796_v0  ;;  %v797_v4 = vld [vmem:[%s3611_s3 + $0x1410] sm:$0xff]  ;;  %v798_v5 = vld [vmem:[%s3611_s3 + $0x1418] sm:$0xff] }
 0x186   : > { %v799_v6 = vld [vmem:[%s3611_s3 + $0x1420] sm:$0xff]  ;;  %2839 = vst [vmem:[%s3626_s16 + $0x13e0] sm:$0xff] %v1815_v59  ;;  %2840 = vst [vmem:[%s3626_s16 + $0x13e8] sm:$0xff] %v1816_v60  ;;  %v1821_v7 = vsub.f32 0.0, %v797_v4  ;;  %v1822_v8 = vsub.f32 0.0, %v798_v5  ;;  %v800_v10 = vld [vmem:[%s3611_s3 + $0x1428] sm:$0xff] }
 0x187   : > { %2841 = vst [vmem:[%s3626_s16 + $0x13f0] sm:$0xff] %v1817_v61  ;;  %v1823_v9 = vsub.f32 0.0, %v799_v6  ;;  %v801_v11 = vld [vmem:[%s3611_s3 + $0x1430] sm:$0xff]  ;;  %v802_v12 = vld [vmem:[%s3611_s3 + $0x1438] sm:$0xff]  ;;  %2842 = vst [vmem:[%s3626_s16 + $0x13f8] sm:$0xff] %v1818_v1  ;;  %v1824_v13 = vsub.f32 0.0, %v800_v10 }
 0x188   : > { %2843 = vst [vmem:[%s3626_s16 + $0x1400] sm:$0xff] %v1819_v2  ;;  %2844 = vst [vmem:[%s3626_s16 + $0x1408] sm:$0xff] %v1820_v3  ;;  %v1825_v14 = vsub.f32 0.0, %v801_v11  ;;  %v1826_v15 = vsub.f32 0.0, %v802_v12  ;;  %v803_v16 = vld [vmem:[%s3611_s3 + $0x1440] sm:$0xff]  ;;  %v804_v17 = vld [vmem:[%s3611_s3 + $0x1448] sm:$0xff] }
 0x189   : > { %v805_v18 = vld [vmem:[%s3611_s3 + $0x1450] sm:$0xff]  ;;  %2845 = vst [vmem:[%s3626_s16 + $0x1410] sm:$0xff] %v1821_v7  ;;  %2846 = vst [vmem:[%s3626_s16 + $0x1418] sm:$0xff] %v1822_v8  ;;  %v1827_v19 = vsub.f32 0.0, %v803_v16  ;;  %v1828_v20 = vsub.f32 0.0, %v804_v17  ;;  %v806_v22 = vld [vmem:[%s3611_s3 + $0x1458] sm:$0xff] }
 0x18a   : > { %2847 = vst [vmem:[%s3626_s16 + $0x1420] sm:$0xff] %v1823_v9  ;;  %v1829_v21 = vsub.f32 0.0, %v805_v18  ;;  %v807_v23 = vld [vmem:[%s3611_s3 + $0x1460] sm:$0xff]  ;;  %v808_v24 = vld [vmem:[%s3611_s3 + $0x1468] sm:$0xff]  ;;  %2848 = vst [vmem:[%s3626_s16 + $0x1428] sm:$0xff] %v1824_v13  ;;  %v1830_v25 = vsub.f32 0.0, %v806_v22 }
 0x18b   : > { %2849 = vst [vmem:[%s3626_s16 + $0x1430] sm:$0xff] %v1825_v14  ;;  %2850 = vst [vmem:[%s3626_s16 + $0x1438] sm:$0xff] %v1826_v15  ;;  %v1831_v26 = vsub.f32 0.0, %v807_v23  ;;  %v1832_v27 = vsub.f32 0.0, %v808_v24  ;;  %v809_v28 = vld [vmem:[%s3611_s3 + $0x1470] sm:$0xff]  ;;  %v810_v29 = vld [vmem:[%s3611_s3 + $0x1478] sm:$0xff] }
 0x18c   : > { %v811_v30 = vld [vmem:[%s3611_s3 + $0x1480] sm:$0xff]  ;;  %2851 = vst [vmem:[%s3626_s16 + $0x1440] sm:$0xff] %v1827_v19  ;;  %2852 = vst [vmem:[%s3626_s16 + $0x1448] sm:$0xff] %v1828_v20  ;;  %v1833_v31 = vsub.f32 0.0, %v809_v28  ;;  %v1834_v32 = vsub.f32 0.0, %v810_v29  ;;  %v812_v34 = vld [vmem:[%s3611_s3 + $0x1488] sm:$0xff] }
 0x18d   : > { %2853 = vst [vmem:[%s3626_s16 + $0x1450] sm:$0xff] %v1829_v21  ;;  %v1835_v33 = vsub.f32 0.0, %v811_v30  ;;  %v813_v35 = vld [vmem:[%s3611_s3 + $0x1490] sm:$0xff]  ;;  %v814_v36 = vld [vmem:[%s3611_s3 + $0x1498] sm:$0xff]  ;;  %2854 = vst [vmem:[%s3626_s16 + $0x1458] sm:$0xff] %v1830_v25  ;;  %v1836_v37 = vsub.f32 0.0, %v812_v34 }
 0x18e   : > { %2855 = vst [vmem:[%s3626_s16 + $0x1460] sm:$0xff] %v1831_v26  ;;  %2856 = vst [vmem:[%s3626_s16 + $0x1468] sm:$0xff] %v1832_v27  ;;  %v1837_v38 = vsub.f32 0.0, %v813_v35  ;;  %v1838_v39 = vsub.f32 0.0, %v814_v36  ;;  %v815_v40 = vld [vmem:[%s3611_s3 + $0x14a0] sm:$0xff]  ;;  %v816_v41 = vld [vmem:[%s3611_s3 + $0x14a8] sm:$0xff] }
 0x18f   : > { %v817_v42 = vld [vmem:[%s3611_s3 + $0x14b0] sm:$0xff]  ;;  %2857 = vst [vmem:[%s3626_s16 + $0x1470] sm:$0xff] %v1833_v31  ;;  %2858 = vst [vmem:[%s3626_s16 + $0x1478] sm:$0xff] %v1834_v32  ;;  %v1839_v43 = vsub.f32 0.0, %v815_v40  ;;  %v1840_v44 = vsub.f32 0.0, %v816_v41  ;;  %v818_v46 = vld [vmem:[%s3611_s3 + $0x14b8] sm:$0xff] }
 0x190   : > { %2859 = vst [vmem:[%s3626_s16 + $0x1480] sm:$0xff] %v1835_v33  ;;  %v1841_v45 = vsub.f32 0.0, %v817_v42  ;;  %v819_v47 = vld [vmem:[%s3611_s3 + $0x14c0] sm:$0xff]  ;;  %v820_v48 = vld [vmem:[%s3611_s3 + $0x14c8] sm:$0xff]  ;;  %2860 = vst [vmem:[%s3626_s16 + $0x1488] sm:$0xff] %v1836_v37  ;;  %v1842_v49 = vsub.f32 0.0, %v818_v46 }
 0x191   : > { %2861 = vst [vmem:[%s3626_s16 + $0x1490] sm:$0xff] %v1837_v38  ;;  %2862 = vst [vmem:[%s3626_s16 + $0x1498] sm:$0xff] %v1838_v39  ;;  %v1843_v50 = vsub.f32 0.0, %v819_v47  ;;  %v1844_v51 = vsub.f32 0.0, %v820_v48  ;;  %v821_v52 = vld [vmem:[%s3611_s3 + $0x14d0] sm:$0xff]  ;;  %v822_v53 = vld [vmem:[%s3611_s3 + $0x14d8] sm:$0xff] }
 0x192   : > { %v823_v54 = vld [vmem:[%s3611_s3 + $0x14e0] sm:$0xff]  ;;  %2863 = vst [vmem:[%s3626_s16 + $0x14a0] sm:$0xff] %v1839_v43  ;;  %2864 = vst [vmem:[%s3626_s16 + $0x14a8] sm:$0xff] %v1840_v44  ;;  %v1845_v55 = vsub.f32 0.0, %v821_v52  ;;  %v1846_v56 = vsub.f32 0.0, %v822_v53  ;;  %v824_v58 = vld [vmem:[%s3611_s3 + $0x14e8] sm:$0xff] }
 0x193   : > { %2865 = vst [vmem:[%s3626_s16 + $0x14b0] sm:$0xff] %v1841_v45  ;;  %v1847_v57 = vsub.f32 0.0, %v823_v54  ;;  %v825_v59 = vld [vmem:[%s3611_s3 + $0x14f0] sm:$0xff]  ;;  %v826_v60 = vld [vmem:[%s3611_s3 + $0x14f8] sm:$0xff]  ;;  %2866 = vst [vmem:[%s3626_s16 + $0x14b8] sm:$0xff] %v1842_v49  ;;  %v1848_v61 = vsub.f32 0.0, %v824_v58 }
 0x194   : > { %2867 = vst [vmem:[%s3626_s16 + $0x14c0] sm:$0xff] %v1843_v50  ;;  %2868 = vst [vmem:[%s3626_s16 + $0x14c8] sm:$0xff] %v1844_v51  ;;  %v1849_v62 = vsub.f32 0.0, %v825_v59  ;;  %v1850_v63 = vsub.f32 0.0, %v826_v60  ;;  %v827_v0 = vld [vmem:[%s3611_s3 + $0x1500] sm:$0xff]  ;;  %v828_v1 = vld [vmem:[%s3611_s3 + $0x1508] sm:$0xff] }
 0x195   : > { %v829_v2 = vld [vmem:[%s3611_s3 + $0x1510] sm:$0xff]  ;;  %2869 = vst [vmem:[%s3626_s16 + $0x14d0] sm:$0xff] %v1845_v55  ;;  %2870 = vst [vmem:[%s3626_s16 + $0x14d8] sm:$0xff] %v1846_v56  ;;  %v1851_v3 = vsub.f32 0.0, %v827_v0  ;;  %v1852_v4 = vsub.f32 0.0, %v828_v1  ;;  %v830_v6 = vld [vmem:[%s3611_s3 + $0x1518] sm:$0xff] }
 0x196   : > { %2871 = vst [vmem:[%s3626_s16 + $0x14e0] sm:$0xff] %v1847_v57  ;;  %v1853_v5 = vsub.f32 0.0, %v829_v2  ;;  %v831_v7 = vld [vmem:[%s3611_s3 + $0x1520] sm:$0xff]  ;;  %v832_v8 = vld [vmem:[%s3611_s3 + $0x1528] sm:$0xff]  ;;  %2872 = vst [vmem:[%s3626_s16 + $0x14e8] sm:$0xff] %v1848_v61  ;;  %v1854_v9 = vsub.f32 0.0, %v830_v6 }
 0x197   : > { %2873 = vst [vmem:[%s3626_s16 + $0x14f0] sm:$0xff] %v1849_v62  ;;  %2874 = vst [vmem:[%s3626_s16 + $0x14f8] sm:$0xff] %v1850_v63  ;;  %v1855_v10 = vsub.f32 0.0, %v831_v7  ;;  %v1856_v11 = vsub.f32 0.0, %v832_v8  ;;  %v833_v12 = vld [vmem:[%s3611_s3 + $0x1530] sm:$0xff]  ;;  %v834_v13 = vld [vmem:[%s3611_s3 + $0x1538] sm:$0xff] }
 0x198   : > { %v835_v14 = vld [vmem:[%s3611_s3 + $0x1540] sm:$0xff]  ;;  %2875 = vst [vmem:[%s3626_s16 + $0x1500] sm:$0xff] %v1851_v3  ;;  %2876 = vst [vmem:[%s3626_s16 + $0x1508] sm:$0xff] %v1852_v4  ;;  %v1857_v15 = vsub.f32 0.0, %v833_v12  ;;  %v1858_v16 = vsub.f32 0.0, %v834_v13  ;;  %v836_v18 = vld [vmem:[%s3611_s3 + $0x1548] sm:$0xff] }
 0x199   : > { %2877 = vst [vmem:[%s3626_s16 + $0x1510] sm:$0xff] %v1853_v5  ;;  %v1859_v17 = vsub.f32 0.0, %v835_v14  ;;  %v837_v19 = vld [vmem:[%s3611_s3 + $0x1550] sm:$0xff]  ;;  %v838_v20 = vld [vmem:[%s3611_s3 + $0x1558] sm:$0xff]  ;;  %2878 = vst [vmem:[%s3626_s16 + $0x1518] sm:$0xff] %v1854_v9  ;;  %v1860_v21 = vsub.f32 0.0, %v836_v18 }
 0x19a   : > { %2879 = vst [vmem:[%s3626_s16 + $0x1520] sm:$0xff] %v1855_v10  ;;  %2880 = vst [vmem:[%s3626_s16 + $0x1528] sm:$0xff] %v1856_v11  ;;  %v1861_v22 = vsub.f32 0.0, %v837_v19  ;;  %v1862_v23 = vsub.f32 0.0, %v838_v20  ;;  %v839_v24 = vld [vmem:[%s3611_s3 + $0x1560] sm:$0xff]  ;;  %v840_v25 = vld [vmem:[%s3611_s3 + $0x1568] sm:$0xff] }
 0x19b   : > { %v841_v26 = vld [vmem:[%s3611_s3 + $0x1570] sm:$0xff]  ;;  %2881 = vst [vmem:[%s3626_s16 + $0x1530] sm:$0xff] %v1857_v15  ;;  %2882 = vst [vmem:[%s3626_s16 + $0x1538] sm:$0xff] %v1858_v16  ;;  %v1863_v27 = vsub.f32 0.0, %v839_v24  ;;  %v1864_v28 = vsub.f32 0.0, %v840_v25  ;;  %v842_v30 = vld [vmem:[%s3611_s3 + $0x1578] sm:$0xff] }
 0x19c   : > { %2883 = vst [vmem:[%s3626_s16 + $0x1540] sm:$0xff] %v1859_v17  ;;  %v1865_v29 = vsub.f32 0.0, %v841_v26  ;;  %v843_v31 = vld [vmem:[%s3611_s3 + $0x1580] sm:$0xff]  ;;  %v844_v32 = vld [vmem:[%s3611_s3 + $0x1588] sm:$0xff]  ;;  %2884 = vst [vmem:[%s3626_s16 + $0x1548] sm:$0xff] %v1860_v21  ;;  %v1866_v33 = vsub.f32 0.0, %v842_v30 }
 0x19d   : > { %2885 = vst [vmem:[%s3626_s16 + $0x1550] sm:$0xff] %v1861_v22  ;;  %2886 = vst [vmem:[%s3626_s16 + $0x1558] sm:$0xff] %v1862_v23  ;;  %v1867_v34 = vsub.f32 0.0, %v843_v31  ;;  %v1868_v35 = vsub.f32 0.0, %v844_v32  ;;  %v845_v36 = vld [vmem:[%s3611_s3 + $0x1590] sm:$0xff]  ;;  %v846_v37 = vld [vmem:[%s3611_s3 + $0x1598] sm:$0xff] }
 0x19e   : > { %v847_v38 = vld [vmem:[%s3611_s3 + $0x15a0] sm:$0xff]  ;;  %2887 = vst [vmem:[%s3626_s16 + $0x1560] sm:$0xff] %v1863_v27  ;;  %2888 = vst [vmem:[%s3626_s16 + $0x1568] sm:$0xff] %v1864_v28  ;;  %v1869_v39 = vsub.f32 0.0, %v845_v36  ;;  %v1870_v40 = vsub.f32 0.0, %v846_v37  ;;  %v848_v42 = vld [vmem:[%s3611_s3 + $0x15a8] sm:$0xff] }
 0x19f   : > { %2889 = vst [vmem:[%s3626_s16 + $0x1570] sm:$0xff] %v1865_v29  ;;  %v1871_v41 = vsub.f32 0.0, %v847_v38  ;;  %v849_v43 = vld [vmem:[%s3611_s3 + $0x15b0] sm:$0xff]  ;;  %v850_v44 = vld [vmem:[%s3611_s3 + $0x15b8] sm:$0xff]  ;;  %2890 = vst [vmem:[%s3626_s16 + $0x1578] sm:$0xff] %v1866_v33  ;;  %v1872_v45 = vsub.f32 0.0, %v848_v42 }
 0x1a0   : > { %2891 = vst [vmem:[%s3626_s16 + $0x1580] sm:$0xff] %v1867_v34  ;;  %2892 = vst [vmem:[%s3626_s16 + $0x1588] sm:$0xff] %v1868_v35  ;;  %v1873_v46 = vsub.f32 0.0, %v849_v43  ;;  %v1874_v47 = vsub.f32 0.0, %v850_v44  ;;  %v851_v48 = vld [vmem:[%s3611_s3 + $0x15c0] sm:$0xff]  ;;  %v852_v49 = vld [vmem:[%s3611_s3 + $0x15c8] sm:$0xff] }
 0x1a1   : > { %v853_v50 = vld [vmem:[%s3611_s3 + $0x15d0] sm:$0xff]  ;;  %2893 = vst [vmem:[%s3626_s16 + $0x1590] sm:$0xff] %v1869_v39  ;;  %2894 = vst [vmem:[%s3626_s16 + $0x1598] sm:$0xff] %v1870_v40  ;;  %v1875_v51 = vsub.f32 0.0, %v851_v48  ;;  %v1876_v52 = vsub.f32 0.0, %v852_v49  ;;  %v854_v54 = vld [vmem:[%s3611_s3 + $0x15d8] sm:$0xff] }
 0x1a2   : > { %2895 = vst [vmem:[%s3626_s16 + $0x15a0] sm:$0xff] %v1871_v41  ;;  %v1877_v53 = vsub.f32 0.0, %v853_v50  ;;  %v855_v55 = vld [vmem:[%s3611_s3 + $0x15e0] sm:$0xff]  ;;  %v856_v56 = vld [vmem:[%s3611_s3 + $0x15e8] sm:$0xff]  ;;  %2896 = vst [vmem:[%s3626_s16 + $0x15a8] sm:$0xff] %v1872_v45  ;;  %v1878_v57 = vsub.f32 0.0, %v854_v54 }
 0x1a3   : > { %2897 = vst [vmem:[%s3626_s16 + $0x15b0] sm:$0xff] %v1873_v46  ;;  %2898 = vst [vmem:[%s3626_s16 + $0x15b8] sm:$0xff] %v1874_v47  ;;  %v1879_v58 = vsub.f32 0.0, %v855_v55  ;;  %v1880_v59 = vsub.f32 0.0, %v856_v56  ;;  %v857_v60 = vld [vmem:[%s3611_s3 + $0x15f0] sm:$0xff]  ;;  %v858_v61 = vld [vmem:[%s3611_s3 + $0x15f8] sm:$0xff] }
 0x1a4   : > { %v859_v62 = vld [vmem:[%s3611_s3 + $0x1600] sm:$0xff]  ;;  %2899 = vst [vmem:[%s3626_s16 + $0x15c0] sm:$0xff] %v1875_v51  ;;  %2900 = vst [vmem:[%s3626_s16 + $0x15c8] sm:$0xff] %v1876_v52  ;;  %v1881_v63 = vsub.f32 0.0, %v857_v60  ;;  %v1882_v0 = vsub.f32 0.0, %v858_v61  ;;  %v860_v2 = vld [vmem:[%s3611_s3 + $0x1608] sm:$0xff] }
 0x1a5   : > { %2901 = vst [vmem:[%s3626_s16 + $0x15d0] sm:$0xff] %v1877_v53  ;;  %v1883_v1 = vsub.f32 0.0, %v859_v62  ;;  %v861_v3 = vld [vmem:[%s3611_s3 + $0x1610] sm:$0xff]  ;;  %v862_v4 = vld [vmem:[%s3611_s3 + $0x1618] sm:$0xff]  ;;  %2902 = vst [vmem:[%s3626_s16 + $0x15d8] sm:$0xff] %v1878_v57  ;;  %v1884_v5 = vsub.f32 0.0, %v860_v2 }
 0x1a6   : > { %2903 = vst [vmem:[%s3626_s16 + $0x15e0] sm:$0xff] %v1879_v58  ;;  %2904 = vst [vmem:[%s3626_s16 + $0x15e8] sm:$0xff] %v1880_v59  ;;  %v1885_v6 = vsub.f32 0.0, %v861_v3  ;;  %v1886_v7 = vsub.f32 0.0, %v862_v4  ;;  %v863_v8 = vld [vmem:[%s3611_s3 + $0x1620] sm:$0xff]  ;;  %v864_v9 = vld [vmem:[%s3611_s3 + $0x1628] sm:$0xff] }
 0x1a7   : > { %v865_v10 = vld [vmem:[%s3611_s3 + $0x1630] sm:$0xff]  ;;  %2905 = vst [vmem:[%s3626_s16 + $0x15f0] sm:$0xff] %v1881_v63  ;;  %2906 = vst [vmem:[%s3626_s16 + $0x15f8] sm:$0xff] %v1882_v0  ;;  %v1887_v11 = vsub.f32 0.0, %v863_v8  ;;  %v1888_v12 = vsub.f32 0.0, %v864_v9  ;;  %v866_v14 = vld [vmem:[%s3611_s3 + $0x1638] sm:$0xff] }
 0x1a8   : > { %2907 = vst [vmem:[%s3626_s16 + $0x1600] sm:$0xff] %v1883_v1  ;;  %v1889_v13 = vsub.f32 0.0, %v865_v10  ;;  %v867_v15 = vld [vmem:[%s3611_s3 + $0x1640] sm:$0xff]  ;;  %v868_v16 = vld [vmem:[%s3611_s3 + $0x1648] sm:$0xff]  ;;  %2908 = vst [vmem:[%s3626_s16 + $0x1608] sm:$0xff] %v1884_v5  ;;  %v1890_v17 = vsub.f32 0.0, %v866_v14 }
 0x1a9   : > { %2909 = vst [vmem:[%s3626_s16 + $0x1610] sm:$0xff] %v1885_v6  ;;  %2910 = vst [vmem:[%s3626_s16 + $0x1618] sm:$0xff] %v1886_v7  ;;  %v1891_v18 = vsub.f32 0.0, %v867_v15  ;;  %v1892_v19 = vsub.f32 0.0, %v868_v16  ;;  %v869_v20 = vld [vmem:[%s3611_s3 + $0x1650] sm:$0xff]  ;;  %v870_v21 = vld [vmem:[%s3611_s3 + $0x1658] sm:$0xff] }
 0x1aa   : > { %v871_v22 = vld [vmem:[%s3611_s3 + $0x1660] sm:$0xff]  ;;  %2911 = vst [vmem:[%s3626_s16 + $0x1620] sm:$0xff] %v1887_v11  ;;  %2912 = vst [vmem:[%s3626_s16 + $0x1628] sm:$0xff] %v1888_v12  ;;  %v1893_v23 = vsub.f32 0.0, %v869_v20  ;;  %v1894_v24 = vsub.f32 0.0, %v870_v21  ;;  %v872_v26 = vld [vmem:[%s3611_s3 + $0x1668] sm:$0xff] }
 0x1ab   : > { %2913 = vst [vmem:[%s3626_s16 + $0x1630] sm:$0xff] %v1889_v13  ;;  %v1895_v25 = vsub.f32 0.0, %v871_v22  ;;  %v873_v27 = vld [vmem:[%s3611_s3 + $0x1670] sm:$0xff]  ;;  %v874_v28 = vld [vmem:[%s3611_s3 + $0x1678] sm:$0xff]  ;;  %2914 = vst [vmem:[%s3626_s16 + $0x1638] sm:$0xff] %v1890_v17  ;;  %v1896_v29 = vsub.f32 0.0, %v872_v26 }
 0x1ac   : > { %2915 = vst [vmem:[%s3626_s16 + $0x1640] sm:$0xff] %v1891_v18  ;;  %2916 = vst [vmem:[%s3626_s16 + $0x1648] sm:$0xff] %v1892_v19  ;;  %v1897_v30 = vsub.f32 0.0, %v873_v27  ;;  %v1898_v31 = vsub.f32 0.0, %v874_v28  ;;  %v875_v32 = vld [vmem:[%s3611_s3 + $0x1680] sm:$0xff]  ;;  %v876_v33 = vld [vmem:[%s3611_s3 + $0x1688] sm:$0xff] }
 0x1ad   : > { %v877_v34 = vld [vmem:[%s3611_s3 + $0x1690] sm:$0xff]  ;;  %2917 = vst [vmem:[%s3626_s16 + $0x1650] sm:$0xff] %v1893_v23  ;;  %2918 = vst [vmem:[%s3626_s16 + $0x1658] sm:$0xff] %v1894_v24  ;;  %v1899_v35 = vsub.f32 0.0, %v875_v32  ;;  %v1900_v36 = vsub.f32 0.0, %v876_v33  ;;  %v878_v38 = vld [vmem:[%s3611_s3 + $0x1698] sm:$0xff] }
 0x1ae   : > { %2919 = vst [vmem:[%s3626_s16 + $0x1660] sm:$0xff] %v1895_v25  ;;  %v1901_v37 = vsub.f32 0.0, %v877_v34  ;;  %v879_v39 = vld [vmem:[%s3611_s3 + $0x16a0] sm:$0xff]  ;;  %v880_v40 = vld [vmem:[%s3611_s3 + $0x16a8] sm:$0xff]  ;;  %2920 = vst [vmem:[%s3626_s16 + $0x1668] sm:$0xff] %v1896_v29  ;;  %v1902_v41 = vsub.f32 0.0, %v878_v38 }
 0x1af   : > { %2921 = vst [vmem:[%s3626_s16 + $0x1670] sm:$0xff] %v1897_v30  ;;  %2922 = vst [vmem:[%s3626_s16 + $0x1678] sm:$0xff] %v1898_v31  ;;  %v1903_v42 = vsub.f32 0.0, %v879_v39  ;;  %v1904_v43 = vsub.f32 0.0, %v880_v40  ;;  %v881_v44 = vld [vmem:[%s3611_s3 + $0x16b0] sm:$0xff]  ;;  %v882_v45 = vld [vmem:[%s3611_s3 + $0x16b8] sm:$0xff] }
 0x1b0   : > { %v883_v46 = vld [vmem:[%s3611_s3 + $0x16c0] sm:$0xff]  ;;  %2923 = vst [vmem:[%s3626_s16 + $0x1680] sm:$0xff] %v1899_v35  ;;  %2924 = vst [vmem:[%s3626_s16 + $0x1688] sm:$0xff] %v1900_v36  ;;  %v1905_v47 = vsub.f32 0.0, %v881_v44  ;;  %v1906_v48 = vsub.f32 0.0, %v882_v45  ;;  %v884_v50 = vld [vmem:[%s3611_s3 + $0x16c8] sm:$0xff] }
 0x1b1   : > { %2925 = vst [vmem:[%s3626_s16 + $0x1690] sm:$0xff] %v1901_v37  ;;  %v1907_v49 = vsub.f32 0.0, %v883_v46  ;;  %v885_v51 = vld [vmem:[%s3611_s3 + $0x16d0] sm:$0xff]  ;;  %v886_v52 = vld [vmem:[%s3611_s3 + $0x16d8] sm:$0xff]  ;;  %2926 = vst [vmem:[%s3626_s16 + $0x1698] sm:$0xff] %v1902_v41  ;;  %v1908_v53 = vsub.f32 0.0, %v884_v50 }
 0x1b2   : > { %2927 = vst [vmem:[%s3626_s16 + $0x16a0] sm:$0xff] %v1903_v42  ;;  %2928 = vst [vmem:[%s3626_s16 + $0x16a8] sm:$0xff] %v1904_v43  ;;  %v1909_v54 = vsub.f32 0.0, %v885_v51  ;;  %v1910_v55 = vsub.f32 0.0, %v886_v52  ;;  %v887_v56 = vld [vmem:[%s3611_s3 + $0x16e0] sm:$0xff]  ;;  %v888_v57 = vld [vmem:[%s3611_s3 + $0x16e8] sm:$0xff] }
 0x1b3   : > { %v889_v58 = vld [vmem:[%s3611_s3 + $0x16f0] sm:$0xff]  ;;  %2929 = vst [vmem:[%s3626_s16 + $0x16b0] sm:$0xff] %v1905_v47  ;;  %2930 = vst [vmem:[%s3626_s16 + $0x16b8] sm:$0xff] %v1906_v48  ;;  %v1911_v59 = vsub.f32 0.0, %v887_v56  ;;  %v1912_v60 = vsub.f32 0.0, %v888_v57  ;;  %v890_v62 = vld [vmem:[%s3611_s3 + $0x16f8] sm:$0xff] }
 0x1b4   : > { %2931 = vst [vmem:[%s3626_s16 + $0x16c0] sm:$0xff] %v1907_v49  ;;  %v1913_v61 = vsub.f32 0.0, %v889_v58  ;;  %v891_v63 = vld [vmem:[%s3611_s3 + $0x1700] sm:$0xff]  ;;  %v892_v0 = vld [vmem:[%s3611_s3 + $0x1708] sm:$0xff]  ;;  %2932 = vst [vmem:[%s3626_s16 + $0x16c8] sm:$0xff] %v1908_v53  ;;  %v1914_v1 = vsub.f32 0.0, %v890_v62 }
 0x1b5   : > { %2933 = vst [vmem:[%s3626_s16 + $0x16d0] sm:$0xff] %v1909_v54  ;;  %2934 = vst [vmem:[%s3626_s16 + $0x16d8] sm:$0xff] %v1910_v55  ;;  %v1915_v2 = vsub.f32 0.0, %v891_v63  ;;  %v1916_v3 = vsub.f32 0.0, %v892_v0  ;;  %v893_v4 = vld [vmem:[%s3611_s3 + $0x1710] sm:$0xff]  ;;  %v894_v5 = vld [vmem:[%s3611_s3 + $0x1718] sm:$0xff] }
 0x1b6   : > { %v895_v6 = vld [vmem:[%s3611_s3 + $0x1720] sm:$0xff]  ;;  %2935 = vst [vmem:[%s3626_s16 + $0x16e0] sm:$0xff] %v1911_v59  ;;  %2936 = vst [vmem:[%s3626_s16 + $0x16e8] sm:$0xff] %v1912_v60  ;;  %v1917_v7 = vsub.f32 0.0, %v893_v4  ;;  %v1918_v8 = vsub.f32 0.0, %v894_v5  ;;  %v896_v10 = vld [vmem:[%s3611_s3 + $0x1728] sm:$0xff] }
 0x1b7   : > { %2937 = vst [vmem:[%s3626_s16 + $0x16f0] sm:$0xff] %v1913_v61  ;;  %v1919_v9 = vsub.f32 0.0, %v895_v6  ;;  %v897_v11 = vld [vmem:[%s3611_s3 + $0x1730] sm:$0xff]  ;;  %v898_v12 = vld [vmem:[%s3611_s3 + $0x1738] sm:$0xff]  ;;  %2938 = vst [vmem:[%s3626_s16 + $0x16f8] sm:$0xff] %v1914_v1  ;;  %v1920_v13 = vsub.f32 0.0, %v896_v10 }
 0x1b8   : > { %2939 = vst [vmem:[%s3626_s16 + $0x1700] sm:$0xff] %v1915_v2  ;;  %2940 = vst [vmem:[%s3626_s16 + $0x1708] sm:$0xff] %v1916_v3  ;;  %v1921_v14 = vsub.f32 0.0, %v897_v11  ;;  %v1922_v15 = vsub.f32 0.0, %v898_v12  ;;  %v899_v16 = vld [vmem:[%s3611_s3 + $0x1740] sm:$0xff]  ;;  %v900_v17 = vld [vmem:[%s3611_s3 + $0x1748] sm:$0xff] }
 0x1b9   : > { %v901_v18 = vld [vmem:[%s3611_s3 + $0x1750] sm:$0xff]  ;;  %2941 = vst [vmem:[%s3626_s16 + $0x1710] sm:$0xff] %v1917_v7  ;;  %2942 = vst [vmem:[%s3626_s16 + $0x1718] sm:$0xff] %v1918_v8  ;;  %v1923_v19 = vsub.f32 0.0, %v899_v16  ;;  %v1924_v20 = vsub.f32 0.0, %v900_v17  ;;  %v902_v22 = vld [vmem:[%s3611_s3 + $0x1758] sm:$0xff] }
 0x1ba   : > { %2943 = vst [vmem:[%s3626_s16 + $0x1720] sm:$0xff] %v1919_v9  ;;  %v1925_v21 = vsub.f32 0.0, %v901_v18  ;;  %v903_v23 = vld [vmem:[%s3611_s3 + $0x1760] sm:$0xff]  ;;  %v904_v24 = vld [vmem:[%s3611_s3 + $0x1768] sm:$0xff]  ;;  %2944 = vst [vmem:[%s3626_s16 + $0x1728] sm:$0xff] %v1920_v13  ;;  %v1926_v25 = vsub.f32 0.0, %v902_v22 }
 0x1bb   : > { %2945 = vst [vmem:[%s3626_s16 + $0x1730] sm:$0xff] %v1921_v14  ;;  %2946 = vst [vmem:[%s3626_s16 + $0x1738] sm:$0xff] %v1922_v15  ;;  %v1927_v26 = vsub.f32 0.0, %v903_v23  ;;  %v1928_v27 = vsub.f32 0.0, %v904_v24  ;;  %v905_v28 = vld [vmem:[%s3611_s3 + $0x1770] sm:$0xff]  ;;  %v906_v29 = vld [vmem:[%s3611_s3 + $0x1778] sm:$0xff] }
 0x1bc   : > { %v907_v30 = vld [vmem:[%s3611_s3 + $0x1780] sm:$0xff]  ;;  %2947 = vst [vmem:[%s3626_s16 + $0x1740] sm:$0xff] %v1923_v19  ;;  %2948 = vst [vmem:[%s3626_s16 + $0x1748] sm:$0xff] %v1924_v20  ;;  %v1929_v31 = vsub.f32 0.0, %v905_v28  ;;  %v1930_v32 = vsub.f32 0.0, %v906_v29  ;;  %v908_v34 = vld [vmem:[%s3611_s3 + $0x1788] sm:$0xff] }
 0x1bd   : > { %2949 = vst [vmem:[%s3626_s16 + $0x1750] sm:$0xff] %v1925_v21  ;;  %v1931_v33 = vsub.f32 0.0, %v907_v30  ;;  %v909_v35 = vld [vmem:[%s3611_s3 + $0x1790] sm:$0xff]  ;;  %v910_v36 = vld [vmem:[%s3611_s3 + $0x1798] sm:$0xff]  ;;  %2950 = vst [vmem:[%s3626_s16 + $0x1758] sm:$0xff] %v1926_v25  ;;  %v1932_v37 = vsub.f32 0.0, %v908_v34 }
 0x1be   : > { %2951 = vst [vmem:[%s3626_s16 + $0x1760] sm:$0xff] %v1927_v26  ;;  %2952 = vst [vmem:[%s3626_s16 + $0x1768] sm:$0xff] %v1928_v27  ;;  %v1933_v38 = vsub.f32 0.0, %v909_v35  ;;  %v1934_v39 = vsub.f32 0.0, %v910_v36  ;;  %v911_v40 = vld [vmem:[%s3611_s3 + $0x17a0] sm:$0xff]  ;;  %v912_v41 = vld [vmem:[%s3611_s3 + $0x17a8] sm:$0xff] }
 0x1bf   : > { %v913_v42 = vld [vmem:[%s3611_s3 + $0x17b0] sm:$0xff]  ;;  %2953 = vst [vmem:[%s3626_s16 + $0x1770] sm:$0xff] %v1929_v31  ;;  %2954 = vst [vmem:[%s3626_s16 + $0x1778] sm:$0xff] %v1930_v32  ;;  %v1935_v43 = vsub.f32 0.0, %v911_v40  ;;  %v1936_v44 = vsub.f32 0.0, %v912_v41  ;;  %v914_v46 = vld [vmem:[%s3611_s3 + $0x17b8] sm:$0xff] }
 0x1c0   : > { %2955 = vst [vmem:[%s3626_s16 + $0x1780] sm:$0xff] %v1931_v33  ;;  %v1937_v45 = vsub.f32 0.0, %v913_v42  ;;  %v915_v47 = vld [vmem:[%s3611_s3 + $0x17c0] sm:$0xff]  ;;  %v916_v48 = vld [vmem:[%s3611_s3 + $0x17c8] sm:$0xff]  ;;  %2956 = vst [vmem:[%s3626_s16 + $0x1788] sm:$0xff] %v1932_v37  ;;  %v1938_v49 = vsub.f32 0.0, %v914_v46 }
 0x1c1   : > { %2957 = vst [vmem:[%s3626_s16 + $0x1790] sm:$0xff] %v1933_v38  ;;  %2958 = vst [vmem:[%s3626_s16 + $0x1798] sm:$0xff] %v1934_v39  ;;  %v1939_v50 = vsub.f32 0.0, %v915_v47  ;;  %v1940_v51 = vsub.f32 0.0, %v916_v48  ;;  %v917_v52 = vld [vmem:[%s3611_s3 + $0x17d0] sm:$0xff]  ;;  %v918_v53 = vld [vmem:[%s3611_s3 + $0x17d8] sm:$0xff] }
 0x1c2   : > { %v919_v54 = vld [vmem:[%s3611_s3 + $0x17e0] sm:$0xff]  ;;  %2959 = vst [vmem:[%s3626_s16 + $0x17a0] sm:$0xff] %v1935_v43  ;;  %2960 = vst [vmem:[%s3626_s16 + $0x17a8] sm:$0xff] %v1936_v44  ;;  %v1941_v55 = vsub.f32 0.0, %v917_v52  ;;  %v1942_v56 = vsub.f32 0.0, %v918_v53  ;;  %v920_v58 = vld [vmem:[%s3611_s3 + $0x17e8] sm:$0xff] }
 0x1c3   : > { %2961 = vst [vmem:[%s3626_s16 + $0x17b0] sm:$0xff] %v1937_v45  ;;  %v1943_v57 = vsub.f32 0.0, %v919_v54  ;;  %v921_v59 = vld [vmem:[%s3611_s3 + $0x17f0] sm:$0xff]  ;;  %v922_v60 = vld [vmem:[%s3611_s3 + $0x17f8] sm:$0xff]  ;;  %2962 = vst [vmem:[%s3626_s16 + $0x17b8] sm:$0xff] %v1938_v49  ;;  %v1944_v61 = vsub.f32 0.0, %v920_v58 }
 0x1c4   : > { %2963 = vst [vmem:[%s3626_s16 + $0x17c0] sm:$0xff] %v1939_v50  ;;  %2964 = vst [vmem:[%s3626_s16 + $0x17c8] sm:$0xff] %v1940_v51  ;;  %v1945_v62 = vsub.f32 0.0, %v921_v59  ;;  %v1946_v63 = vsub.f32 0.0, %v922_v60  ;;  %v923_v0 = vld [vmem:[%s3611_s3 + $0x1800] sm:$0xff]  ;;  %v924_v1 = vld [vmem:[%s3611_s3 + $0x1808] sm:$0xff] }
 0x1c5   : > { %v925_v2 = vld [vmem:[%s3611_s3 + $0x1810] sm:$0xff]  ;;  %2965 = vst [vmem:[%s3626_s16 + $0x17d0] sm:$0xff] %v1941_v55  ;;  %2966 = vst [vmem:[%s3626_s16 + $0x17d8] sm:$0xff] %v1942_v56  ;;  %v1947_v3 = vsub.f32 0.0, %v923_v0  ;;  %v1948_v4 = vsub.f32 0.0, %v924_v1  ;;  %v926_v6 = vld [vmem:[%s3611_s3 + $0x1818] sm:$0xff] }
 0x1c6   : > { %2967 = vst [vmem:[%s3626_s16 + $0x17e0] sm:$0xff] %v1943_v57  ;;  %v1949_v5 = vsub.f32 0.0, %v925_v2  ;;  %v927_v7 = vld [vmem:[%s3611_s3 + $0x1820] sm:$0xff]  ;;  %v928_v8 = vld [vmem:[%s3611_s3 + $0x1828] sm:$0xff]  ;;  %2968 = vst [vmem:[%s3626_s16 + $0x17e8] sm:$0xff] %v1944_v61  ;;  %v1950_v9 = vsub.f32 0.0, %v926_v6 }
 0x1c7   : > { %2969 = vst [vmem:[%s3626_s16 + $0x17f0] sm:$0xff] %v1945_v62  ;;  %2970 = vst [vmem:[%s3626_s16 + $0x17f8] sm:$0xff] %v1946_v63  ;;  %v1951_v10 = vsub.f32 0.0, %v927_v7  ;;  %v1952_v11 = vsub.f32 0.0, %v928_v8  ;;  %v929_v12 = vld [vmem:[%s3611_s3 + $0x1830] sm:$0xff]  ;;  %v930_v13 = vld [vmem:[%s3611_s3 + $0x1838] sm:$0xff] }
 0x1c8   : > { %v931_v14 = vld [vmem:[%s3611_s3 + $0x1840] sm:$0xff]  ;;  %2971 = vst [vmem:[%s3626_s16 + $0x1800] sm:$0xff] %v1947_v3  ;;  %2972 = vst [vmem:[%s3626_s16 + $0x1808] sm:$0xff] %v1948_v4  ;;  %v1953_v15 = vsub.f32 0.0, %v929_v12  ;;  %v1954_v16 = vsub.f32 0.0, %v930_v13  ;;  %v932_v18 = vld [vmem:[%s3611_s3 + $0x1848] sm:$0xff] }
 0x1c9   : > { %2973 = vst [vmem:[%s3626_s16 + $0x1810] sm:$0xff] %v1949_v5  ;;  %v1955_v17 = vsub.f32 0.0, %v931_v14  ;;  %v933_v19 = vld [vmem:[%s3611_s3 + $0x1850] sm:$0xff]  ;;  %v934_v20 = vld [vmem:[%s3611_s3 + $0x1858] sm:$0xff]  ;;  %2974 = vst [vmem:[%s3626_s16 + $0x1818] sm:$0xff] %v1950_v9  ;;  %v1956_v21 = vsub.f32 0.0, %v932_v18 }
 0x1ca   : > { %2975 = vst [vmem:[%s3626_s16 + $0x1820] sm:$0xff] %v1951_v10  ;;  %2976 = vst [vmem:[%s3626_s16 + $0x1828] sm:$0xff] %v1952_v11  ;;  %v1957_v22 = vsub.f32 0.0, %v933_v19  ;;  %v1958_v23 = vsub.f32 0.0, %v934_v20  ;;  %v935_v24 = vld [vmem:[%s3611_s3 + $0x1860] sm:$0xff]  ;;  %v936_v25 = vld [vmem:[%s3611_s3 + $0x1868] sm:$0xff] }
 0x1cb   : > { %v937_v26 = vld [vmem:[%s3611_s3 + $0x1870] sm:$0xff]  ;;  %2977 = vst [vmem:[%s3626_s16 + $0x1830] sm:$0xff] %v1953_v15  ;;  %2978 = vst [vmem:[%s3626_s16 + $0x1838] sm:$0xff] %v1954_v16  ;;  %v1959_v27 = vsub.f32 0.0, %v935_v24  ;;  %v1960_v28 = vsub.f32 0.0, %v936_v25  ;;  %v938_v30 = vld [vmem:[%s3611_s3 + $0x1878] sm:$0xff] }
 0x1cc   : > { %2979 = vst [vmem:[%s3626_s16 + $0x1840] sm:$0xff] %v1955_v17  ;;  %v1961_v29 = vsub.f32 0.0, %v937_v26  ;;  %v939_v31 = vld [vmem:[%s3611_s3 + $0x1880] sm:$0xff]  ;;  %v940_v32 = vld [vmem:[%s3611_s3 + $0x1888] sm:$0xff]  ;;  %2980 = vst [vmem:[%s3626_s16 + $0x1848] sm:$0xff] %v1956_v21  ;;  %v1962_v33 = vsub.f32 0.0, %v938_v30 }
 0x1cd   : > { %2981 = vst [vmem:[%s3626_s16 + $0x1850] sm:$0xff] %v1957_v22  ;;  %2982 = vst [vmem:[%s3626_s16 + $0x1858] sm:$0xff] %v1958_v23  ;;  %v1963_v34 = vsub.f32 0.0, %v939_v31  ;;  %v1964_v35 = vsub.f32 0.0, %v940_v32  ;;  %v941_v36 = vld [vmem:[%s3611_s3 + $0x1890] sm:$0xff]  ;;  %v942_v37 = vld [vmem:[%s3611_s3 + $0x1898] sm:$0xff] }
 0x1ce   : > { %v943_v38 = vld [vmem:[%s3611_s3 + $0x18a0] sm:$0xff]  ;;  %2983 = vst [vmem:[%s3626_s16 + $0x1860] sm:$0xff] %v1959_v27  ;;  %2984 = vst [vmem:[%s3626_s16 + $0x1868] sm:$0xff] %v1960_v28  ;;  %v1965_v39 = vsub.f32 0.0, %v941_v36  ;;  %v1966_v40 = vsub.f32 0.0, %v942_v37  ;;  %v944_v42 = vld [vmem:[%s3611_s3 + $0x18a8] sm:$0xff] }
 0x1cf   : > { %2985 = vst [vmem:[%s3626_s16 + $0x1870] sm:$0xff] %v1961_v29  ;;  %v1967_v41 = vsub.f32 0.0, %v943_v38  ;;  %v945_v43 = vld [vmem:[%s3611_s3 + $0x18b0] sm:$0xff]  ;;  %v946_v44 = vld [vmem:[%s3611_s3 + $0x18b8] sm:$0xff]  ;;  %2986 = vst [vmem:[%s3626_s16 + $0x1878] sm:$0xff] %v1962_v33  ;;  %v1968_v45 = vsub.f32 0.0, %v944_v42 }
 0x1d0   : > { %2987 = vst [vmem:[%s3626_s16 + $0x1880] sm:$0xff] %v1963_v34  ;;  %2988 = vst [vmem:[%s3626_s16 + $0x1888] sm:$0xff] %v1964_v35  ;;  %v1969_v46 = vsub.f32 0.0, %v945_v43  ;;  %v1970_v47 = vsub.f32 0.0, %v946_v44  ;;  %v947_v48 = vld [vmem:[%s3611_s3 + $0x18c0] sm:$0xff]  ;;  %v948_v49 = vld [vmem:[%s3611_s3 + $0x18c8] sm:$0xff] }
 0x1d1   : > { %v949_v50 = vld [vmem:[%s3611_s3 + $0x18d0] sm:$0xff]  ;;  %2989 = vst [vmem:[%s3626_s16 + $0x1890] sm:$0xff] %v1965_v39  ;;  %2990 = vst [vmem:[%s3626_s16 + $0x1898] sm:$0xff] %v1966_v40  ;;  %v1971_v51 = vsub.f32 0.0, %v947_v48  ;;  %v1972_v52 = vsub.f32 0.0, %v948_v49  ;;  %v950_v54 = vld [vmem:[%s3611_s3 + $0x18d8] sm:$0xff] }
 0x1d2   : > { %2991 = vst [vmem:[%s3626_s16 + $0x18a0] sm:$0xff] %v1967_v41  ;;  %v1973_v53 = vsub.f32 0.0, %v949_v50  ;;  %v951_v55 = vld [vmem:[%s3611_s3 + $0x18e0] sm:$0xff]  ;;  %v952_v56 = vld [vmem:[%s3611_s3 + $0x18e8] sm:$0xff]  ;;  %2992 = vst [vmem:[%s3626_s16 + $0x18a8] sm:$0xff] %v1968_v45  ;;  %v1974_v57 = vsub.f32 0.0, %v950_v54 }
 0x1d3   : > { %2993 = vst [vmem:[%s3626_s16 + $0x18b0] sm:$0xff] %v1969_v46  ;;  %2994 = vst [vmem:[%s3626_s16 + $0x18b8] sm:$0xff] %v1970_v47  ;;  %v1975_v58 = vsub.f32 0.0, %v951_v55  ;;  %v1976_v59 = vsub.f32 0.0, %v952_v56  ;;  %v953_v60 = vld [vmem:[%s3611_s3 + $0x18f0] sm:$0xff]  ;;  %v954_v61 = vld [vmem:[%s3611_s3 + $0x18f8] sm:$0xff] }
 0x1d4   : > { %v955_v62 = vld [vmem:[%s3611_s3 + $0x1900] sm:$0xff]  ;;  %2995 = vst [vmem:[%s3626_s16 + $0x18c0] sm:$0xff] %v1971_v51  ;;  %2996 = vst [vmem:[%s3626_s16 + $0x18c8] sm:$0xff] %v1972_v52  ;;  %v1977_v63 = vsub.f32 0.0, %v953_v60  ;;  %v1978_v0 = vsub.f32 0.0, %v954_v61  ;;  %v956_v2 = vld [vmem:[%s3611_s3 + $0x1908] sm:$0xff] }
 0x1d5   : > { %2997 = vst [vmem:[%s3626_s16 + $0x18d0] sm:$0xff] %v1973_v53  ;;  %v1979_v1 = vsub.f32 0.0, %v955_v62  ;;  %v957_v3 = vld [vmem:[%s3611_s3 + $0x1910] sm:$0xff]  ;;  %v958_v4 = vld [vmem:[%s3611_s3 + $0x1918] sm:$0xff]  ;;  %2998 = vst [vmem:[%s3626_s16 + $0x18d8] sm:$0xff] %v1974_v57  ;;  %v1980_v5 = vsub.f32 0.0, %v956_v2 }
 0x1d6   : > { %2999 = vst [vmem:[%s3626_s16 + $0x18e0] sm:$0xff] %v1975_v58  ;;  %3000 = vst [vmem:[%s3626_s16 + $0x18e8] sm:$0xff] %v1976_v59  ;;  %v1981_v6 = vsub.f32 0.0, %v957_v3  ;;  %v1982_v7 = vsub.f32 0.0, %v958_v4  ;;  %v959_v8 = vld [vmem:[%s3611_s3 + $0x1920] sm:$0xff]  ;;  %v960_v9 = vld [vmem:[%s3611_s3 + $0x1928] sm:$0xff] }
 0x1d7   : > { %v961_v10 = vld [vmem:[%s3611_s3 + $0x1930] sm:$0xff]  ;;  %3001 = vst [vmem:[%s3626_s16 + $0x18f0] sm:$0xff] %v1977_v63  ;;  %3002 = vst [vmem:[%s3626_s16 + $0x18f8] sm:$0xff] %v1978_v0  ;;  %v1983_v11 = vsub.f32 0.0, %v959_v8  ;;  %v1984_v12 = vsub.f32 0.0, %v960_v9  ;;  %v962_v14 = vld [vmem:[%s3611_s3 + $0x1938] sm:$0xff] }
 0x1d8   : > { %3003 = vst [vmem:[%s3626_s16 + $0x1900] sm:$0xff] %v1979_v1  ;;  %v1985_v13 = vsub.f32 0.0, %v961_v10  ;;  %v963_v15 = vld [vmem:[%s3611_s3 + $0x1940] sm:$0xff]  ;;  %v964_v16 = vld [vmem:[%s3611_s3 + $0x1948] sm:$0xff]  ;;  %3004 = vst [vmem:[%s3626_s16 + $0x1908] sm:$0xff] %v1980_v5  ;;  %v1986_v17 = vsub.f32 0.0, %v962_v14 }
 0x1d9   : > { %3005 = vst [vmem:[%s3626_s16 + $0x1910] sm:$0xff] %v1981_v6  ;;  %3006 = vst [vmem:[%s3626_s16 + $0x1918] sm:$0xff] %v1982_v7  ;;  %v1987_v18 = vsub.f32 0.0, %v963_v15  ;;  %v1988_v19 = vsub.f32 0.0, %v964_v16  ;;  %v965_v20 = vld [vmem:[%s3611_s3 + $0x1950] sm:$0xff]  ;;  %v966_v21 = vld [vmem:[%s3611_s3 + $0x1958] sm:$0xff] }
 0x1da   : > { %v967_v22 = vld [vmem:[%s3611_s3 + $0x1960] sm:$0xff]  ;;  %3007 = vst [vmem:[%s3626_s16 + $0x1920] sm:$0xff] %v1983_v11  ;;  %3008 = vst [vmem:[%s3626_s16 + $0x1928] sm:$0xff] %v1984_v12  ;;  %v1989_v23 = vsub.f32 0.0, %v965_v20  ;;  %v1990_v24 = vsub.f32 0.0, %v966_v21  ;;  %v968_v26 = vld [vmem:[%s3611_s3 + $0x1968] sm:$0xff] }
 0x1db   : > { %3009 = vst [vmem:[%s3626_s16 + $0x1930] sm:$0xff] %v1985_v13  ;;  %v1991_v25 = vsub.f32 0.0, %v967_v22  ;;  %v969_v27 = vld [vmem:[%s3611_s3 + $0x1970] sm:$0xff]  ;;  %v970_v28 = vld [vmem:[%s3611_s3 + $0x1978] sm:$0xff]  ;;  %3010 = vst [vmem:[%s3626_s16 + $0x1938] sm:$0xff] %v1986_v17  ;;  %v1992_v29 = vsub.f32 0.0, %v968_v26 }
 0x1dc   : > { %3011 = vst [vmem:[%s3626_s16 + $0x1940] sm:$0xff] %v1987_v18  ;;  %3012 = vst [vmem:[%s3626_s16 + $0x1948] sm:$0xff] %v1988_v19  ;;  %v1993_v30 = vsub.f32 0.0, %v969_v27  ;;  %v1994_v31 = vsub.f32 0.0, %v970_v28  ;;  %v971_v32 = vld [vmem:[%s3611_s3 + $0x1980] sm:$0xff]  ;;  %v972_v33 = vld [vmem:[%s3611_s3 + $0x1988] sm:$0xff] }
 0x1dd   : > { %v973_v34 = vld [vmem:[%s3611_s3 + $0x1990] sm:$0xff]  ;;  %3013 = vst [vmem:[%s3626_s16 + $0x1950] sm:$0xff] %v1989_v23  ;;  %3014 = vst [vmem:[%s3626_s16 + $0x1958] sm:$0xff] %v1990_v24  ;;  %v1995_v35 = vsub.f32 0.0, %v971_v32  ;;  %v1996_v36 = vsub.f32 0.0, %v972_v33  ;;  %v974_v38 = vld [vmem:[%s3611_s3 + $0x1998] sm:$0xff] }
 0x1de   : > { %3015 = vst [vmem:[%s3626_s16 + $0x1960] sm:$0xff] %v1991_v25  ;;  %v1997_v37 = vsub.f32 0.0, %v973_v34  ;;  %v975_v39 = vld [vmem:[%s3611_s3 + $0x19a0] sm:$0xff]  ;;  %v976_v40 = vld [vmem:[%s3611_s3 + $0x19a8] sm:$0xff]  ;;  %3016 = vst [vmem:[%s3626_s16 + $0x1968] sm:$0xff] %v1992_v29  ;;  %v1998_v41 = vsub.f32 0.0, %v974_v38 }
 0x1df   : > { %3017 = vst [vmem:[%s3626_s16 + $0x1970] sm:$0xff] %v1993_v30  ;;  %3018 = vst [vmem:[%s3626_s16 + $0x1978] sm:$0xff] %v1994_v31  ;;  %v1999_v42 = vsub.f32 0.0, %v975_v39  ;;  %v2000_v43 = vsub.f32 0.0, %v976_v40  ;;  %v977_v44 = vld [vmem:[%s3611_s3 + $0x19b0] sm:$0xff]  ;;  %v978_v45 = vld [vmem:[%s3611_s3 + $0x19b8] sm:$0xff] }
 0x1e0   : > { %v979_v46 = vld [vmem:[%s3611_s3 + $0x19c0] sm:$0xff]  ;;  %3019 = vst [vmem:[%s3626_s16 + $0x1980] sm:$0xff] %v1995_v35  ;;  %3020 = vst [vmem:[%s3626_s16 + $0x1988] sm:$0xff] %v1996_v36  ;;  %v2001_v47 = vsub.f32 0.0, %v977_v44  ;;  %v2002_v48 = vsub.f32 0.0, %v978_v45  ;;  %v980_v50 = vld [vmem:[%s3611_s3 + $0x19c8] sm:$0xff] }
 0x1e1   : > { %3021 = vst [vmem:[%s3626_s16 + $0x1990] sm:$0xff] %v1997_v37  ;;  %v2003_v49 = vsub.f32 0.0, %v979_v46  ;;  %v981_v51 = vld [vmem:[%s3611_s3 + $0x19d0] sm:$0xff]  ;;  %v982_v52 = vld [vmem:[%s3611_s3 + $0x19d8] sm:$0xff]  ;;  %3022 = vst [vmem:[%s3626_s16 + $0x1998] sm:$0xff] %v1998_v41  ;;  %v2004_v53 = vsub.f32 0.0, %v980_v50 }
 0x1e2   : > { %3023 = vst [vmem:[%s3626_s16 + $0x19a0] sm:$0xff] %v1999_v42  ;;  %3024 = vst [vmem:[%s3626_s16 + $0x19a8] sm:$0xff] %v2000_v43  ;;  %v2005_v54 = vsub.f32 0.0, %v981_v51  ;;  %v2006_v55 = vsub.f32 0.0, %v982_v52  ;;  %v983_v56 = vld [vmem:[%s3611_s3 + $0x19e0] sm:$0xff]  ;;  %v984_v57 = vld [vmem:[%s3611_s3 + $0x19e8] sm:$0xff] }
 0x1e3   : > { %v985_v58 = vld [vmem:[%s3611_s3 + $0x19f0] sm:$0xff]  ;;  %3025 = vst [vmem:[%s3626_s16 + $0x19b0] sm:$0xff] %v2001_v47  ;;  %3026 = vst [vmem:[%s3626_s16 + $0x19b8] sm:$0xff] %v2002_v48  ;;  %v2007_v59 = vsub.f32 0.0, %v983_v56  ;;  %v2008_v60 = vsub.f32 0.0, %v984_v57  ;;  %v986_v62 = vld [vmem:[%s3611_s3 + $0x19f8] sm:$0xff] }
 0x1e4   : > { %3027 = vst [vmem:[%s3626_s16 + $0x19c0] sm:$0xff] %v2003_v49  ;;  %v2009_v61 = vsub.f32 0.0, %v985_v58  ;;  %v987_v63 = vld [vmem:[%s3611_s3 + $0x1a00] sm:$0xff]  ;;  %v988_v0 = vld [vmem:[%s3611_s3 + $0x1a08] sm:$0xff]  ;;  %3028 = vst [vmem:[%s3626_s16 + $0x19c8] sm:$0xff] %v2004_v53  ;;  %v2010_v1 = vsub.f32 0.0, %v986_v62 }
 0x1e5   : > { %3029 = vst [vmem:[%s3626_s16 + $0x19d0] sm:$0xff] %v2005_v54  ;;  %3030 = vst [vmem:[%s3626_s16 + $0x19d8] sm:$0xff] %v2006_v55  ;;  %v2011_v2 = vsub.f32 0.0, %v987_v63  ;;  %v2012_v3 = vsub.f32 0.0, %v988_v0  ;;  %v989_v4 = vld [vmem:[%s3611_s3 + $0x1a10] sm:$0xff]  ;;  %v990_v5 = vld [vmem:[%s3611_s3 + $0x1a18] sm:$0xff] }
 0x1e6   : > { %v991_v6 = vld [vmem:[%s3611_s3 + $0x1a20] sm:$0xff]  ;;  %3031 = vst [vmem:[%s3626_s16 + $0x19e0] sm:$0xff] %v2007_v59  ;;  %3032 = vst [vmem:[%s3626_s16 + $0x19e8] sm:$0xff] %v2008_v60  ;;  %v2013_v7 = vsub.f32 0.0, %v989_v4  ;;  %v2014_v8 = vsub.f32 0.0, %v990_v5  ;;  %v992_v10 = vld [vmem:[%s3611_s3 + $0x1a28] sm:$0xff] }
 0x1e7   : > { %3033 = vst [vmem:[%s3626_s16 + $0x19f0] sm:$0xff] %v2009_v61  ;;  %v2015_v9 = vsub.f32 0.0, %v991_v6  ;;  %v993_v11 = vld [vmem:[%s3611_s3 + $0x1a30] sm:$0xff]  ;;  %v994_v12 = vld [vmem:[%s3611_s3 + $0x1a38] sm:$0xff]  ;;  %3034 = vst [vmem:[%s3626_s16 + $0x19f8] sm:$0xff] %v2010_v1  ;;  %v2016_v13 = vsub.f32 0.0, %v992_v10 }
 0x1e8   : > { %3035 = vst [vmem:[%s3626_s16 + $0x1a00] sm:$0xff] %v2011_v2  ;;  %3036 = vst [vmem:[%s3626_s16 + $0x1a08] sm:$0xff] %v2012_v3  ;;  %v2017_v14 = vsub.f32 0.0, %v993_v11  ;;  %v2018_v15 = vsub.f32 0.0, %v994_v12  ;;  %v995_v16 = vld [vmem:[%s3611_s3 + $0x1a40] sm:$0xff]  ;;  %v996_v17 = vld [vmem:[%s3611_s3 + $0x1a48] sm:$0xff] }
 0x1e9   : > { %v997_v18 = vld [vmem:[%s3611_s3 + $0x1a50] sm:$0xff]  ;;  %3037 = vst [vmem:[%s3626_s16 + $0x1a10] sm:$0xff] %v2013_v7  ;;  %3038 = vst [vmem:[%s3626_s16 + $0x1a18] sm:$0xff] %v2014_v8  ;;  %v2019_v19 = vsub.f32 0.0, %v995_v16  ;;  %v2020_v20 = vsub.f32 0.0, %v996_v17  ;;  %v998_v22 = vld [vmem:[%s3611_s3 + $0x1a58] sm:$0xff] }
 0x1ea   : > { %3039 = vst [vmem:[%s3626_s16 + $0x1a20] sm:$0xff] %v2015_v9  ;;  %v2021_v21 = vsub.f32 0.0, %v997_v18  ;;  %v999_v23 = vld [vmem:[%s3611_s3 + $0x1a60] sm:$0xff]  ;;  %v1000_v24 = vld [vmem:[%s3611_s3 + $0x1a68] sm:$0xff]  ;;  %3040 = vst [vmem:[%s3626_s16 + $0x1a28] sm:$0xff] %v2016_v13  ;;  %v2022_v25 = vsub.f32 0.0, %v998_v22 }
 0x1eb   : > { %3041 = vst [vmem:[%s3626_s16 + $0x1a30] sm:$0xff] %v2017_v14  ;;  %3042 = vst [vmem:[%s3626_s16 + $0x1a38] sm:$0xff] %v2018_v15  ;;  %v2023_v26 = vsub.f32 0.0, %v999_v23  ;;  %v2024_v27 = vsub.f32 0.0, %v1000_v24  ;;  %v1001_v28 = vld [vmem:[%s3611_s3 + $0x1a70] sm:$0xff]  ;;  %v1002_v29 = vld [vmem:[%s3611_s3 + $0x1a78] sm:$0xff] }
 0x1ec   : > { %v1003_v30 = vld [vmem:[%s3611_s3 + $0x1a80] sm:$0xff]  ;;  %3043 = vst [vmem:[%s3626_s16 + $0x1a40] sm:$0xff] %v2019_v19  ;;  %3044 = vst [vmem:[%s3626_s16 + $0x1a48] sm:$0xff] %v2020_v20  ;;  %v2025_v31 = vsub.f32 0.0, %v1001_v28  ;;  %v2026_v32 = vsub.f32 0.0, %v1002_v29  ;;  %v1004_v34 = vld [vmem:[%s3611_s3 + $0x1a88] sm:$0xff] }
 0x1ed   : > { %3045 = vst [vmem:[%s3626_s16 + $0x1a50] sm:$0xff] %v2021_v21  ;;  %v2027_v33 = vsub.f32 0.0, %v1003_v30  ;;  %v1005_v35 = vld [vmem:[%s3611_s3 + $0x1a90] sm:$0xff]  ;;  %v1006_v36 = vld [vmem:[%s3611_s3 + $0x1a98] sm:$0xff]  ;;  %3046 = vst [vmem:[%s3626_s16 + $0x1a58] sm:$0xff] %v2022_v25  ;;  %v2028_v37 = vsub.f32 0.0, %v1004_v34 }
 0x1ee   : > { %3047 = vst [vmem:[%s3626_s16 + $0x1a60] sm:$0xff] %v2023_v26  ;;  %3048 = vst [vmem:[%s3626_s16 + $0x1a68] sm:$0xff] %v2024_v27  ;;  %v2029_v38 = vsub.f32 0.0, %v1005_v35  ;;  %v2030_v39 = vsub.f32 0.0, %v1006_v36  ;;  %v1007_v40 = vld [vmem:[%s3611_s3 + $0x1aa0] sm:$0xff]  ;;  %v1008_v41 = vld [vmem:[%s3611_s3 + $0x1aa8] sm:$0xff] }
 0x1ef   : > { %v1009_v42 = vld [vmem:[%s3611_s3 + $0x1ab0] sm:$0xff]  ;;  %3049 = vst [vmem:[%s3626_s16 + $0x1a70] sm:$0xff] %v2025_v31  ;;  %3050 = vst [vmem:[%s3626_s16 + $0x1a78] sm:$0xff] %v2026_v32  ;;  %v2031_v43 = vsub.f32 0.0, %v1007_v40  ;;  %v2032_v44 = vsub.f32 0.0, %v1008_v41  ;;  %v1010_v46 = vld [vmem:[%s3611_s3 + $0x1ab8] sm:$0xff] }
 0x1f0   : > { %3051 = vst [vmem:[%s3626_s16 + $0x1a80] sm:$0xff] %v2027_v33  ;;  %v2033_v45 = vsub.f32 0.0, %v1009_v42  ;;  %v1011_v47 = vld [vmem:[%s3611_s3 + $0x1ac0] sm:$0xff]  ;;  %v1012_v48 = vld [vmem:[%s3611_s3 + $0x1ac8] sm:$0xff]  ;;  %3052 = vst [vmem:[%s3626_s16 + $0x1a88] sm:$0xff] %v2028_v37  ;;  %v2034_v49 = vsub.f32 0.0, %v1010_v46 }
 0x1f1   : > { %3053 = vst [vmem:[%s3626_s16 + $0x1a90] sm:$0xff] %v2029_v38  ;;  %3054 = vst [vmem:[%s3626_s16 + $0x1a98] sm:$0xff] %v2030_v39  ;;  %v2035_v50 = vsub.f32 0.0, %v1011_v47  ;;  %v2036_v51 = vsub.f32 0.0, %v1012_v48  ;;  %v1013_v52 = vld [vmem:[%s3611_s3 + $0x1ad0] sm:$0xff]  ;;  %v1014_v53 = vld [vmem:[%s3611_s3 + $0x1ad8] sm:$0xff] }
 0x1f2   : > { %v1015_v54 = vld [vmem:[%s3611_s3 + $0x1ae0] sm:$0xff]  ;;  %3055 = vst [vmem:[%s3626_s16 + $0x1aa0] sm:$0xff] %v2031_v43  ;;  %3056 = vst [vmem:[%s3626_s16 + $0x1aa8] sm:$0xff] %v2032_v44  ;;  %v2037_v55 = vsub.f32 0.0, %v1013_v52  ;;  %v2038_v56 = vsub.f32 0.0, %v1014_v53  ;;  %v1016_v58 = vld [vmem:[%s3611_s3 + $0x1ae8] sm:$0xff] }
 0x1f3   : > { %3057 = vst [vmem:[%s3626_s16 + $0x1ab0] sm:$0xff] %v2033_v45  ;;  %v2039_v57 = vsub.f32 0.0, %v1015_v54  ;;  %v1017_v59 = vld [vmem:[%s3611_s3 + $0x1af0] sm:$0xff]  ;;  %v1018_v60 = vld [vmem:[%s3611_s3 + $0x1af8] sm:$0xff]  ;;  %3058 = vst [vmem:[%s3626_s16 + $0x1ab8] sm:$0xff] %v2034_v49  ;;  %v2040_v61 = vsub.f32 0.0, %v1016_v58 }
 0x1f4   : > { %3059 = vst [vmem:[%s3626_s16 + $0x1ac0] sm:$0xff] %v2035_v50  ;;  %3060 = vst [vmem:[%s3626_s16 + $0x1ac8] sm:$0xff] %v2036_v51  ;;  %v2041_v62 = vsub.f32 0.0, %v1017_v59  ;;  %v2042_v63 = vsub.f32 0.0, %v1018_v60  ;;  %v1019_v0 = vld [vmem:[%s3611_s3 + $0x1b00] sm:$0xff]  ;;  %v1020_v1 = vld [vmem:[%s3611_s3 + $0x1b08] sm:$0xff] }
 0x1f5   : > { %v1021_v2 = vld [vmem:[%s3611_s3 + $0x1b10] sm:$0xff]  ;;  %3061 = vst [vmem:[%s3626_s16 + $0x1ad0] sm:$0xff] %v2037_v55  ;;  %3062 = vst [vmem:[%s3626_s16 + $0x1ad8] sm:$0xff] %v2038_v56  ;;  %v2043_v3 = vsub.f32 0.0, %v1019_v0  ;;  %v2044_v4 = vsub.f32 0.0, %v1020_v1  ;;  %v1022_v6 = vld [vmem:[%s3611_s3 + $0x1b18] sm:$0xff] }
 0x1f6   : > { %3063 = vst [vmem:[%s3626_s16 + $0x1ae0] sm:$0xff] %v2039_v57  ;;  %v2045_v5 = vsub.f32 0.0, %v1021_v2  ;;  %v1023_v7 = vld [vmem:[%s3611_s3 + $0x1b20] sm:$0xff]  ;;  %v1024_v8 = vld [vmem:[%s3611_s3 + $0x1b28] sm:$0xff]  ;;  %3064 = vst [vmem:[%s3626_s16 + $0x1ae8] sm:$0xff] %v2040_v61  ;;  %v2046_v9 = vsub.f32 0.0, %v1022_v6 }
 0x1f7   : > { %3065 = vst [vmem:[%s3626_s16 + $0x1af0] sm:$0xff] %v2041_v62  ;;  %3066 = vst [vmem:[%s3626_s16 + $0x1af8] sm:$0xff] %v2042_v63  ;;  %v2047_v10 = vsub.f32 0.0, %v1023_v7  ;;  %v2048_v11 = vsub.f32 0.0, %v1024_v8  ;;  %v1025_v12 = vld [vmem:[%s3611_s3 + $0x1b30] sm:$0xff]  ;;  %v1026_v13 = vld [vmem:[%s3611_s3 + $0x1b38] sm:$0xff] }
 0x1f8   : > { %v1027_v14 = vld [vmem:[%s3611_s3 + $0x1b40] sm:$0xff]  ;;  %3067 = vst [vmem:[%s3626_s16 + $0x1b00] sm:$0xff] %v2043_v3  ;;  %3068 = vst [vmem:[%s3626_s16 + $0x1b08] sm:$0xff] %v2044_v4  ;;  %v2049_v15 = vsub.f32 0.0, %v1025_v12  ;;  %v2050_v16 = vsub.f32 0.0, %v1026_v13  ;;  %v1028_v18 = vld [vmem:[%s3611_s3 + $0x1b48] sm:$0xff] }
 0x1f9   : > { %3069 = vst [vmem:[%s3626_s16 + $0x1b10] sm:$0xff] %v2045_v5  ;;  %v2051_v17 = vsub.f32 0.0, %v1027_v14  ;;  %v1029_v19 = vld [vmem:[%s3611_s3 + $0x1b50] sm:$0xff]  ;;  %v1030_v20 = vld [vmem:[%s3611_s3 + $0x1b58] sm:$0xff]  ;;  %3070 = vst [vmem:[%s3626_s16 + $0x1b18] sm:$0xff] %v2046_v9  ;;  %v2052_v21 = vsub.f32 0.0, %v1028_v18 }
 0x1fa   : > { %3071 = vst [vmem:[%s3626_s16 + $0x1b20] sm:$0xff] %v2047_v10  ;;  %3072 = vst [vmem:[%s3626_s16 + $0x1b28] sm:$0xff] %v2048_v11  ;;  %v2053_v22 = vsub.f32 0.0, %v1029_v19  ;;  %v2054_v23 = vsub.f32 0.0, %v1030_v20  ;;  %v1031_v24 = vld [vmem:[%s3611_s3 + $0x1b60] sm:$0xff]  ;;  %v1032_v25 = vld [vmem:[%s3611_s3 + $0x1b68] sm:$0xff] }
 0x1fb   : > { %v1033_v26 = vld [vmem:[%s3611_s3 + $0x1b70] sm:$0xff]  ;;  %3073 = vst [vmem:[%s3626_s16 + $0x1b30] sm:$0xff] %v2049_v15  ;;  %3074 = vst [vmem:[%s3626_s16 + $0x1b38] sm:$0xff] %v2050_v16  ;;  %v2055_v27 = vsub.f32 0.0, %v1031_v24  ;;  %v2056_v28 = vsub.f32 0.0, %v1032_v25  ;;  %v1034_v30 = vld [vmem:[%s3611_s3 + $0x1b78] sm:$0xff] }
 0x1fc   : > { %3075 = vst [vmem:[%s3626_s16 + $0x1b40] sm:$0xff] %v2051_v17  ;;  %v2057_v29 = vsub.f32 0.0, %v1033_v26  ;;  %v1035_v31 = vld [vmem:[%s3611_s3 + $0x1b80] sm:$0xff]  ;;  %v1036_v32 = vld [vmem:[%s3611_s3 + $0x1b88] sm:$0xff]  ;;  %3076 = vst [vmem:[%s3626_s16 + $0x1b48] sm:$0xff] %v2052_v21  ;;  %v2058_v33 = vsub.f32 0.0, %v1034_v30 }
 0x1fd   : > { %3077 = vst [vmem:[%s3626_s16 + $0x1b50] sm:$0xff] %v2053_v22  ;;  %3078 = vst [vmem:[%s3626_s16 + $0x1b58] sm:$0xff] %v2054_v23  ;;  %v2059_v34 = vsub.f32 0.0, %v1035_v31  ;;  %v2060_v35 = vsub.f32 0.0, %v1036_v32  ;;  %v1037_v36 = vld [vmem:[%s3611_s3 + $0x1b90] sm:$0xff]  ;;  %v1038_v37 = vld [vmem:[%s3611_s3 + $0x1b98] sm:$0xff] }
 0x1fe   : > { %v1039_v38 = vld [vmem:[%s3611_s3 + $0x1ba0] sm:$0xff]  ;;  %3079 = vst [vmem:[%s3626_s16 + $0x1b60] sm:$0xff] %v2055_v27  ;;  %3080 = vst [vmem:[%s3626_s16 + $0x1b68] sm:$0xff] %v2056_v28  ;;  %v2061_v39 = vsub.f32 0.0, %v1037_v36  ;;  %v2062_v40 = vsub.f32 0.0, %v1038_v37  ;;  %v1040_v42 = vld [vmem:[%s3611_s3 + $0x1ba8] sm:$0xff] }
 0x1ff   : > { %3081 = vst [vmem:[%s3626_s16 + $0x1b70] sm:$0xff] %v2057_v29  ;;  %v2063_v41 = vsub.f32 0.0, %v1039_v38  ;;  %v1041_v43 = vld [vmem:[%s3611_s3 + $0x1bb0] sm:$0xff]  ;;  %v1042_v44 = vld [vmem:[%s3611_s3 + $0x1bb8] sm:$0xff]  ;;  %3082 = vst [vmem:[%s3626_s16 + $0x1b78] sm:$0xff] %v2058_v33  ;;  %v2064_v45 = vsub.f32 0.0, %v1040_v42 }
 0x200   : > { %3083 = vst [vmem:[%s3626_s16 + $0x1b80] sm:$0xff] %v2059_v34  ;;  %3084 = vst [vmem:[%s3626_s16 + $0x1b88] sm:$0xff] %v2060_v35  ;;  %v2065_v46 = vsub.f32 0.0, %v1041_v43  ;;  %v2066_v47 = vsub.f32 0.0, %v1042_v44  ;;  %v1043_v48 = vld [vmem:[%s3611_s3 + $0x1bc0] sm:$0xff]  ;;  %v1044_v49 = vld [vmem:[%s3611_s3 + $0x1bc8] sm:$0xff] }
 0x201   : > { %v1045_v50 = vld [vmem:[%s3611_s3 + $0x1bd0] sm:$0xff]  ;;  %3085 = vst [vmem:[%s3626_s16 + $0x1b90] sm:$0xff] %v2061_v39  ;;  %3086 = vst [vmem:[%s3626_s16 + $0x1b98] sm:$0xff] %v2062_v40  ;;  %v2067_v51 = vsub.f32 0.0, %v1043_v48  ;;  %v2068_v52 = vsub.f32 0.0, %v1044_v49  ;;  %v1046_v54 = vld [vmem:[%s3611_s3 + $0x1bd8] sm:$0xff] }
 0x202   : > { %3087 = vst [vmem:[%s3626_s16 + $0x1ba0] sm:$0xff] %v2063_v41  ;;  %v2069_v53 = vsub.f32 0.0, %v1045_v50  ;;  %v1047_v55 = vld [vmem:[%s3611_s3 + $0x1be0] sm:$0xff]  ;;  %v1048_v56 = vld [vmem:[%s3611_s3 + $0x1be8] sm:$0xff]  ;;  %3088 = vst [vmem:[%s3626_s16 + $0x1ba8] sm:$0xff] %v2064_v45  ;;  %v2070_v57 = vsub.f32 0.0, %v1046_v54 }
 0x203   : > { %3089 = vst [vmem:[%s3626_s16 + $0x1bb0] sm:$0xff] %v2065_v46  ;;  %3090 = vst [vmem:[%s3626_s16 + $0x1bb8] sm:$0xff] %v2066_v47  ;;  %v2071_v58 = vsub.f32 0.0, %v1047_v55  ;;  %v2072_v59 = vsub.f32 0.0, %v1048_v56  ;;  %v1049_v60 = vld [vmem:[%s3611_s3 + $0x1bf0] sm:$0xff]  ;;  %v1050_v61 = vld [vmem:[%s3611_s3 + $0x1bf8] sm:$0xff] }
 0x204   : > { %v1051_v62 = vld [vmem:[%s3611_s3 + $0x1c00] sm:$0xff]  ;;  %3091 = vst [vmem:[%s3626_s16 + $0x1bc0] sm:$0xff] %v2067_v51  ;;  %3092 = vst [vmem:[%s3626_s16 + $0x1bc8] sm:$0xff] %v2068_v52  ;;  %v2073_v63 = vsub.f32 0.0, %v1049_v60  ;;  %v2074_v0 = vsub.f32 0.0, %v1050_v61  ;;  %v1052_v2 = vld [vmem:[%s3611_s3 + $0x1c08] sm:$0xff] }
 0x205   : > { %3093 = vst [vmem:[%s3626_s16 + $0x1bd0] sm:$0xff] %v2069_v53  ;;  %v2075_v1 = vsub.f32 0.0, %v1051_v62  ;;  %v1053_v3 = vld [vmem:[%s3611_s3 + $0x1c10] sm:$0xff]  ;;  %v1054_v4 = vld [vmem:[%s3611_s3 + $0x1c18] sm:$0xff]  ;;  %3094 = vst [vmem:[%s3626_s16 + $0x1bd8] sm:$0xff] %v2070_v57  ;;  %v2076_v5 = vsub.f32 0.0, %v1052_v2 }
 0x206   : > { %3095 = vst [vmem:[%s3626_s16 + $0x1be0] sm:$0xff] %v2071_v58  ;;  %3096 = vst [vmem:[%s3626_s16 + $0x1be8] sm:$0xff] %v2072_v59  ;;  %v2077_v6 = vsub.f32 0.0, %v1053_v3  ;;  %v2078_v7 = vsub.f32 0.0, %v1054_v4  ;;  %v1055_v8 = vld [vmem:[%s3611_s3 + $0x1c20] sm:$0xff]  ;;  %v1056_v9 = vld [vmem:[%s3611_s3 + $0x1c28] sm:$0xff] }
 0x207   : > { %v1057_v10 = vld [vmem:[%s3611_s3 + $0x1c30] sm:$0xff]  ;;  %3097 = vst [vmem:[%s3626_s16 + $0x1bf0] sm:$0xff] %v2073_v63  ;;  %3098 = vst [vmem:[%s3626_s16 + $0x1bf8] sm:$0xff] %v2074_v0  ;;  %v2079_v11 = vsub.f32 0.0, %v1055_v8  ;;  %v2080_v12 = vsub.f32 0.0, %v1056_v9  ;;  %v1058_v14 = vld [vmem:[%s3611_s3 + $0x1c38] sm:$0xff] }
 0x208   : > { %3099 = vst [vmem:[%s3626_s16 + $0x1c00] sm:$0xff] %v2075_v1  ;;  %v2081_v13 = vsub.f32 0.0, %v1057_v10  ;;  %v1059_v15 = vld [vmem:[%s3611_s3 + $0x1c40] sm:$0xff]  ;;  %v1060_v16 = vld [vmem:[%s3611_s3 + $0x1c48] sm:$0xff]  ;;  %3100 = vst [vmem:[%s3626_s16 + $0x1c08] sm:$0xff] %v2076_v5  ;;  %v2082_v17 = vsub.f32 0.0, %v1058_v14 }
 0x209   : > { %3101 = vst [vmem:[%s3626_s16 + $0x1c10] sm:$0xff] %v2077_v6  ;;  %3102 = vst [vmem:[%s3626_s16 + $0x1c18] sm:$0xff] %v2078_v7  ;;  %v2083_v18 = vsub.f32 0.0, %v1059_v15  ;;  %v2084_v19 = vsub.f32 0.0, %v1060_v16  ;;  %v1061_v20 = vld [vmem:[%s3611_s3 + $0x1c50] sm:$0xff]  ;;  %v1062_v21 = vld [vmem:[%s3611_s3 + $0x1c58] sm:$0xff] }
 0x20a   : > { %v1063_v22 = vld [vmem:[%s3611_s3 + $0x1c60] sm:$0xff]  ;;  %3103 = vst [vmem:[%s3626_s16 + $0x1c20] sm:$0xff] %v2079_v11  ;;  %3104 = vst [vmem:[%s3626_s16 + $0x1c28] sm:$0xff] %v2080_v12  ;;  %v2085_v23 = vsub.f32 0.0, %v1061_v20  ;;  %v2086_v24 = vsub.f32 0.0, %v1062_v21  ;;  %v1064_v26 = vld [vmem:[%s3611_s3 + $0x1c68] sm:$0xff] }
 0x20b   : > { %3105 = vst [vmem:[%s3626_s16 + $0x1c30] sm:$0xff] %v2081_v13  ;;  %v2087_v25 = vsub.f32 0.0, %v1063_v22  ;;  %v1065_v27 = vld [vmem:[%s3611_s3 + $0x1c70] sm:$0xff]  ;;  %v1066_v28 = vld [vmem:[%s3611_s3 + $0x1c78] sm:$0xff]  ;;  %3106 = vst [vmem:[%s3626_s16 + $0x1c38] sm:$0xff] %v2082_v17  ;;  %v2088_v29 = vsub.f32 0.0, %v1064_v26 }
 0x20c   : > { %3107 = vst [vmem:[%s3626_s16 + $0x1c40] sm:$0xff] %v2083_v18  ;;  %3108 = vst [vmem:[%s3626_s16 + $0x1c48] sm:$0xff] %v2084_v19  ;;  %v2089_v30 = vsub.f32 0.0, %v1065_v27  ;;  %v2090_v31 = vsub.f32 0.0, %v1066_v28  ;;  %v1067_v32 = vld [vmem:[%s3611_s3 + $0x1c80] sm:$0xff]  ;;  %v1068_v33 = vld [vmem:[%s3611_s3 + $0x1c88] sm:$0xff] }
 0x20d   : > { %v1069_v34 = vld [vmem:[%s3611_s3 + $0x1c90] sm:$0xff]  ;;  %3109 = vst [vmem:[%s3626_s16 + $0x1c50] sm:$0xff] %v2085_v23  ;;  %3110 = vst [vmem:[%s3626_s16 + $0x1c58] sm:$0xff] %v2086_v24  ;;  %v2091_v35 = vsub.f32 0.0, %v1067_v32  ;;  %v2092_v36 = vsub.f32 0.0, %v1068_v33  ;;  %v1070_v38 = vld [vmem:[%s3611_s3 + $0x1c98] sm:$0xff] }
 0x20e   : > { %3111 = vst [vmem:[%s3626_s16 + $0x1c60] sm:$0xff] %v2087_v25  ;;  %v2093_v37 = vsub.f32 0.0, %v1069_v34  ;;  %v1071_v39 = vld [vmem:[%s3611_s3 + $0x1ca0] sm:$0xff]  ;;  %v1072_v40 = vld [vmem:[%s3611_s3 + $0x1ca8] sm:$0xff]  ;;  %3112 = vst [vmem:[%s3626_s16 + $0x1c68] sm:$0xff] %v2088_v29  ;;  %v2094_v41 = vsub.f32 0.0, %v1070_v38 }
 0x20f   : > { %3113 = vst [vmem:[%s3626_s16 + $0x1c70] sm:$0xff] %v2089_v30  ;;  %3114 = vst [vmem:[%s3626_s16 + $0x1c78] sm:$0xff] %v2090_v31  ;;  %v2095_v42 = vsub.f32 0.0, %v1071_v39  ;;  %v2096_v43 = vsub.f32 0.0, %v1072_v40  ;;  %v1073_v44 = vld [vmem:[%s3611_s3 + $0x1cb0] sm:$0xff]  ;;  %v1074_v45 = vld [vmem:[%s3611_s3 + $0x1cb8] sm:$0xff] }
 0x210   : > { %v1075_v46 = vld [vmem:[%s3611_s3 + $0x1cc0] sm:$0xff]  ;;  %3115 = vst [vmem:[%s3626_s16 + $0x1c80] sm:$0xff] %v2091_v35  ;;  %3116 = vst [vmem:[%s3626_s16 + $0x1c88] sm:$0xff] %v2092_v36  ;;  %v2097_v47 = vsub.f32 0.0, %v1073_v44  ;;  %v2098_v48 = vsub.f32 0.0, %v1074_v45  ;;  %v1076_v50 = vld [vmem:[%s3611_s3 + $0x1cc8] sm:$0xff] }
 0x211   : > { %3117 = vst [vmem:[%s3626_s16 + $0x1c90] sm:$0xff] %v2093_v37  ;;  %v2099_v49 = vsub.f32 0.0, %v1075_v46  ;;  %v1077_v51 = vld [vmem:[%s3611_s3 + $0x1cd0] sm:$0xff]  ;;  %v1078_v52 = vld [vmem:[%s3611_s3 + $0x1cd8] sm:$0xff]  ;;  %3118 = vst [vmem:[%s3626_s16 + $0x1c98] sm:$0xff] %v2094_v41  ;;  %v2100_v53 = vsub.f32 0.0, %v1076_v50 }
 0x212   : > { %3119 = vst [vmem:[%s3626_s16 + $0x1ca0] sm:$0xff] %v2095_v42  ;;  %3120 = vst [vmem:[%s3626_s16 + $0x1ca8] sm:$0xff] %v2096_v43  ;;  %v2101_v54 = vsub.f32 0.0, %v1077_v51  ;;  %v2102_v55 = vsub.f32 0.0, %v1078_v52  ;;  %v1079_v56 = vld [vmem:[%s3611_s3 + $0x1ce0] sm:$0xff]  ;;  %v1080_v57 = vld [vmem:[%s3611_s3 + $0x1ce8] sm:$0xff] }
 0x213   : > { %v1081_v58 = vld [vmem:[%s3611_s3 + $0x1cf0] sm:$0xff]  ;;  %3121 = vst [vmem:[%s3626_s16 + $0x1cb0] sm:$0xff] %v2097_v47  ;;  %3122 = vst [vmem:[%s3626_s16 + $0x1cb8] sm:$0xff] %v2098_v48  ;;  %v2103_v59 = vsub.f32 0.0, %v1079_v56  ;;  %v2104_v60 = vsub.f32 0.0, %v1080_v57  ;;  %v1082_v62 = vld [vmem:[%s3611_s3 + $0x1cf8] sm:$0xff] }
 0x214   : > { %3123 = vst [vmem:[%s3626_s16 + $0x1cc0] sm:$0xff] %v2099_v49  ;;  %v2105_v61 = vsub.f32 0.0, %v1081_v58  ;;  %v1083_v63 = vld [vmem:[%s3611_s3 + $0x1d00] sm:$0xff]  ;;  %v1084_v0 = vld [vmem:[%s3611_s3 + $0x1d08] sm:$0xff]  ;;  %3124 = vst [vmem:[%s3626_s16 + $0x1cc8] sm:$0xff] %v2100_v53  ;;  %v2106_v1 = vsub.f32 0.0, %v1082_v62 }
 0x215   : > { %3125 = vst [vmem:[%s3626_s16 + $0x1cd0] sm:$0xff] %v2101_v54  ;;  %3126 = vst [vmem:[%s3626_s16 + $0x1cd8] sm:$0xff] %v2102_v55  ;;  %v2107_v2 = vsub.f32 0.0, %v1083_v63  ;;  %v2108_v3 = vsub.f32 0.0, %v1084_v0  ;;  %v1085_v4 = vld [vmem:[%s3611_s3 + $0x1d10] sm:$0xff]  ;;  %v1086_v5 = vld [vmem:[%s3611_s3 + $0x1d18] sm:$0xff] }
 0x216   : > { %v1087_v6 = vld [vmem:[%s3611_s3 + $0x1d20] sm:$0xff]  ;;  %3127 = vst [vmem:[%s3626_s16 + $0x1ce0] sm:$0xff] %v2103_v59  ;;  %3128 = vst [vmem:[%s3626_s16 + $0x1ce8] sm:$0xff] %v2104_v60  ;;  %v2109_v7 = vsub.f32 0.0, %v1085_v4  ;;  %v2110_v8 = vsub.f32 0.0, %v1086_v5  ;;  %v1088_v10 = vld [vmem:[%s3611_s3 + $0x1d28] sm:$0xff] }
 0x217   : > { %3129 = vst [vmem:[%s3626_s16 + $0x1cf0] sm:$0xff] %v2105_v61  ;;  %v2111_v9 = vsub.f32 0.0, %v1087_v6  ;;  %v1089_v11 = vld [vmem:[%s3611_s3 + $0x1d30] sm:$0xff]  ;;  %v1090_v12 = vld [vmem:[%s3611_s3 + $0x1d38] sm:$0xff]  ;;  %3130 = vst [vmem:[%s3626_s16 + $0x1cf8] sm:$0xff] %v2106_v1  ;;  %v2112_v13 = vsub.f32 0.0, %v1088_v10 }
 0x218   : > { %3131 = vst [vmem:[%s3626_s16 + $0x1d00] sm:$0xff] %v2107_v2  ;;  %3132 = vst [vmem:[%s3626_s16 + $0x1d08] sm:$0xff] %v2108_v3  ;;  %v2113_v14 = vsub.f32 0.0, %v1089_v11  ;;  %v2114_v15 = vsub.f32 0.0, %v1090_v12  ;;  %v1091_v16 = vld [vmem:[%s3611_s3 + $0x1d40] sm:$0xff]  ;;  %v1092_v17 = vld [vmem:[%s3611_s3 + $0x1d48] sm:$0xff] }
 0x219   : > { %v1093_v18 = vld [vmem:[%s3611_s3 + $0x1d50] sm:$0xff]  ;;  %3133 = vst [vmem:[%s3626_s16 + $0x1d10] sm:$0xff] %v2109_v7  ;;  %3134 = vst [vmem:[%s3626_s16 + $0x1d18] sm:$0xff] %v2110_v8  ;;  %v2115_v19 = vsub.f32 0.0, %v1091_v16  ;;  %v2116_v20 = vsub.f32 0.0, %v1092_v17  ;;  %v1094_v22 = vld [vmem:[%s3611_s3 + $0x1d58] sm:$0xff] }
 0x21a   : > { %3135 = vst [vmem:[%s3626_s16 + $0x1d20] sm:$0xff] %v2111_v9  ;;  %v2117_v21 = vsub.f32 0.0, %v1093_v18  ;;  %v1095_v23 = vld [vmem:[%s3611_s3 + $0x1d60] sm:$0xff]  ;;  %v1096_v24 = vld [vmem:[%s3611_s3 + $0x1d68] sm:$0xff]  ;;  %3136 = vst [vmem:[%s3626_s16 + $0x1d28] sm:$0xff] %v2112_v13  ;;  %v2118_v25 = vsub.f32 0.0, %v1094_v22 }
 0x21b   : > { %3137 = vst [vmem:[%s3626_s16 + $0x1d30] sm:$0xff] %v2113_v14  ;;  %3138 = vst [vmem:[%s3626_s16 + $0x1d38] sm:$0xff] %v2114_v15  ;;  %v2119_v26 = vsub.f32 0.0, %v1095_v23  ;;  %v2120_v27 = vsub.f32 0.0, %v1096_v24  ;;  %v1097_v28 = vld [vmem:[%s3611_s3 + $0x1d70] sm:$0xff]  ;;  %v1098_v29 = vld [vmem:[%s3611_s3 + $0x1d78] sm:$0xff] }
 0x21c   : > { %v1099_v30 = vld [vmem:[%s3611_s3 + $0x1d80] sm:$0xff]  ;;  %3139 = vst [vmem:[%s3626_s16 + $0x1d40] sm:$0xff] %v2115_v19  ;;  %3140 = vst [vmem:[%s3626_s16 + $0x1d48] sm:$0xff] %v2116_v20  ;;  %v2121_v31 = vsub.f32 0.0, %v1097_v28  ;;  %v2122_v32 = vsub.f32 0.0, %v1098_v29  ;;  %v1100_v34 = vld [vmem:[%s3611_s3 + $0x1d88] sm:$0xff] }
 0x21d   : > { %3141 = vst [vmem:[%s3626_s16 + $0x1d50] sm:$0xff] %v2117_v21  ;;  %v2123_v33 = vsub.f32 0.0, %v1099_v30  ;;  %v1101_v35 = vld [vmem:[%s3611_s3 + $0x1d90] sm:$0xff]  ;;  %v1102_v36 = vld [vmem:[%s3611_s3 + $0x1d98] sm:$0xff]  ;;  %3142 = vst [vmem:[%s3626_s16 + $0x1d58] sm:$0xff] %v2118_v25  ;;  %v2124_v37 = vsub.f32 0.0, %v1100_v34 }
 0x21e   : > { %3143 = vst [vmem:[%s3626_s16 + $0x1d60] sm:$0xff] %v2119_v26  ;;  %3144 = vst [vmem:[%s3626_s16 + $0x1d68] sm:$0xff] %v2120_v27  ;;  %v2125_v38 = vsub.f32 0.0, %v1101_v35  ;;  %v2126_v39 = vsub.f32 0.0, %v1102_v36  ;;  %v1103_v40 = vld [vmem:[%s3611_s3 + $0x1da0] sm:$0xff]  ;;  %v1104_v41 = vld [vmem:[%s3611_s3 + $0x1da8] sm:$0xff] }
 0x21f   : > { %v1105_v42 = vld [vmem:[%s3611_s3 + $0x1db0] sm:$0xff]  ;;  %3145 = vst [vmem:[%s3626_s16 + $0x1d70] sm:$0xff] %v2121_v31  ;;  %3146 = vst [vmem:[%s3626_s16 + $0x1d78] sm:$0xff] %v2122_v32  ;;  %v2127_v43 = vsub.f32 0.0, %v1103_v40  ;;  %v2128_v44 = vsub.f32 0.0, %v1104_v41  ;;  %v1106_v46 = vld [vmem:[%s3611_s3 + $0x1db8] sm:$0xff] }
 0x220   : > { %3147 = vst [vmem:[%s3626_s16 + $0x1d80] sm:$0xff] %v2123_v33  ;;  %v2129_v45 = vsub.f32 0.0, %v1105_v42  ;;  %v1107_v47 = vld [vmem:[%s3611_s3 + $0x1dc0] sm:$0xff]  ;;  %v1108_v48 = vld [vmem:[%s3611_s3 + $0x1dc8] sm:$0xff]  ;;  %3148 = vst [vmem:[%s3626_s16 + $0x1d88] sm:$0xff] %v2124_v37  ;;  %v2130_v49 = vsub.f32 0.0, %v1106_v46 }
 0x221   : > { %3149 = vst [vmem:[%s3626_s16 + $0x1d90] sm:$0xff] %v2125_v38  ;;  %3150 = vst [vmem:[%s3626_s16 + $0x1d98] sm:$0xff] %v2126_v39  ;;  %v2131_v50 = vsub.f32 0.0, %v1107_v47  ;;  %v2132_v51 = vsub.f32 0.0, %v1108_v48  ;;  %v1109_v52 = vld [vmem:[%s3611_s3 + $0x1dd0] sm:$0xff]  ;;  %v1110_v53 = vld [vmem:[%s3611_s3 + $0x1dd8] sm:$0xff] }
 0x222   : > { %v1111_v54 = vld [vmem:[%s3611_s3 + $0x1de0] sm:$0xff]  ;;  %3151 = vst [vmem:[%s3626_s16 + $0x1da0] sm:$0xff] %v2127_v43  ;;  %3152 = vst [vmem:[%s3626_s16 + $0x1da8] sm:$0xff] %v2128_v44  ;;  %v2133_v55 = vsub.f32 0.0, %v1109_v52  ;;  %v2134_v56 = vsub.f32 0.0, %v1110_v53  ;;  %v1112_v58 = vld [vmem:[%s3611_s3 + $0x1de8] sm:$0xff] }
 0x223   : > { %3153 = vst [vmem:[%s3626_s16 + $0x1db0] sm:$0xff] %v2129_v45  ;;  %v2135_v57 = vsub.f32 0.0, %v1111_v54  ;;  %v1113_v59 = vld [vmem:[%s3611_s3 + $0x1df0] sm:$0xff]  ;;  %v1114_v60 = vld [vmem:[%s3611_s3 + $0x1df8] sm:$0xff]  ;;  %3154 = vst [vmem:[%s3626_s16 + $0x1db8] sm:$0xff] %v2130_v49  ;;  %v2136_v61 = vsub.f32 0.0, %v1112_v58 }
 0x224   : > { %3155 = vst [vmem:[%s3626_s16 + $0x1dc0] sm:$0xff] %v2131_v50  ;;  %3156 = vst [vmem:[%s3626_s16 + $0x1dc8] sm:$0xff] %v2132_v51  ;;  %v2137_v62 = vsub.f32 0.0, %v1113_v59  ;;  %v2138_v63 = vsub.f32 0.0, %v1114_v60  ;;  %v1115_v0 = vld [vmem:[%s3611_s3 + $0x1e00] sm:$0xff]  ;;  %v1116_v1 = vld [vmem:[%s3611_s3 + $0x1e08] sm:$0xff] }
 0x225   : > { %v1117_v2 = vld [vmem:[%s3611_s3 + $0x1e10] sm:$0xff]  ;;  %3157 = vst [vmem:[%s3626_s16 + $0x1dd0] sm:$0xff] %v2133_v55  ;;  %3158 = vst [vmem:[%s3626_s16 + $0x1dd8] sm:$0xff] %v2134_v56  ;;  %v2139_v3 = vsub.f32 0.0, %v1115_v0  ;;  %v2140_v4 = vsub.f32 0.0, %v1116_v1  ;;  %v1118_v6 = vld [vmem:[%s3611_s3 + $0x1e18] sm:$0xff] }
 0x226   : > { %3159 = vst [vmem:[%s3626_s16 + $0x1de0] sm:$0xff] %v2135_v57  ;;  %v2141_v5 = vsub.f32 0.0, %v1117_v2  ;;  %v1119_v7 = vld [vmem:[%s3611_s3 + $0x1e20] sm:$0xff]  ;;  %v1120_v8 = vld [vmem:[%s3611_s3 + $0x1e28] sm:$0xff]  ;;  %3160 = vst [vmem:[%s3626_s16 + $0x1de8] sm:$0xff] %v2136_v61  ;;  %v2142_v9 = vsub.f32 0.0, %v1118_v6 }
 0x227   : > { %3161 = vst [vmem:[%s3626_s16 + $0x1df0] sm:$0xff] %v2137_v62  ;;  %3162 = vst [vmem:[%s3626_s16 + $0x1df8] sm:$0xff] %v2138_v63  ;;  %v2143_v10 = vsub.f32 0.0, %v1119_v7  ;;  %v2144_v11 = vsub.f32 0.0, %v1120_v8  ;;  %v1121_v12 = vld [vmem:[%s3611_s3 + $0x1e30] sm:$0xff]  ;;  %v1122_v13 = vld [vmem:[%s3611_s3 + $0x1e38] sm:$0xff] }
 0x228   : > { %v1123_v14 = vld [vmem:[%s3611_s3 + $0x1e40] sm:$0xff]  ;;  %3163 = vst [vmem:[%s3626_s16 + $0x1e00] sm:$0xff] %v2139_v3  ;;  %3164 = vst [vmem:[%s3626_s16 + $0x1e08] sm:$0xff] %v2140_v4  ;;  %v2145_v15 = vsub.f32 0.0, %v1121_v12  ;;  %v2146_v16 = vsub.f32 0.0, %v1122_v13  ;;  %v1124_v18 = vld [vmem:[%s3611_s3 + $0x1e48] sm:$0xff] }
 0x229   : > { %3165 = vst [vmem:[%s3626_s16 + $0x1e10] sm:$0xff] %v2141_v5  ;;  %v2147_v17 = vsub.f32 0.0, %v1123_v14  ;;  %v1125_v19 = vld [vmem:[%s3611_s3 + $0x1e50] sm:$0xff]  ;;  %v1126_v20 = vld [vmem:[%s3611_s3 + $0x1e58] sm:$0xff]  ;;  %3166 = vst [vmem:[%s3626_s16 + $0x1e18] sm:$0xff] %v2142_v9  ;;  %v2148_v21 = vsub.f32 0.0, %v1124_v18 }
 0x22a   : > { %3167 = vst [vmem:[%s3626_s16 + $0x1e20] sm:$0xff] %v2143_v10  ;;  %3168 = vst [vmem:[%s3626_s16 + $0x1e28] sm:$0xff] %v2144_v11  ;;  %v2149_v22 = vsub.f32 0.0, %v1125_v19  ;;  %v2150_v23 = vsub.f32 0.0, %v1126_v20  ;;  %v1127_v24 = vld [vmem:[%s3611_s3 + $0x1e60] sm:$0xff]  ;;  %v1128_v25 = vld [vmem:[%s3611_s3 + $0x1e68] sm:$0xff] }
 0x22b   : > { %v1129_v26 = vld [vmem:[%s3611_s3 + $0x1e70] sm:$0xff]  ;;  %3169 = vst [vmem:[%s3626_s16 + $0x1e30] sm:$0xff] %v2145_v15  ;;  %3170 = vst [vmem:[%s3626_s16 + $0x1e38] sm:$0xff] %v2146_v16  ;;  %v2151_v27 = vsub.f32 0.0, %v1127_v24  ;;  %v2152_v28 = vsub.f32 0.0, %v1128_v25  ;;  %v1130_v30 = vld [vmem:[%s3611_s3 + $0x1e78] sm:$0xff] }
 0x22c   : > { %3171 = vst [vmem:[%s3626_s16 + $0x1e40] sm:$0xff] %v2147_v17  ;;  %v2153_v29 = vsub.f32 0.0, %v1129_v26  ;;  %v1131_v31 = vld [vmem:[%s3611_s3 + $0x1e80] sm:$0xff]  ;;  %v1132_v32 = vld [vmem:[%s3611_s3 + $0x1e88] sm:$0xff]  ;;  %3172 = vst [vmem:[%s3626_s16 + $0x1e48] sm:$0xff] %v2148_v21  ;;  %v2154_v33 = vsub.f32 0.0, %v1130_v30 }
 0x22d   : > { %3173 = vst [vmem:[%s3626_s16 + $0x1e50] sm:$0xff] %v2149_v22  ;;  %3174 = vst [vmem:[%s3626_s16 + $0x1e58] sm:$0xff] %v2150_v23  ;;  %v2155_v34 = vsub.f32 0.0, %v1131_v31  ;;  %v2156_v35 = vsub.f32 0.0, %v1132_v32  ;;  %v1133_v36 = vld [vmem:[%s3611_s3 + $0x1e90] sm:$0xff]  ;;  %v1134_v37 = vld [vmem:[%s3611_s3 + $0x1e98] sm:$0xff] }
 0x22e   : > { %v1135_v38 = vld [vmem:[%s3611_s3 + $0x1ea0] sm:$0xff]  ;;  %3175 = vst [vmem:[%s3626_s16 + $0x1e60] sm:$0xff] %v2151_v27  ;;  %3176 = vst [vmem:[%s3626_s16 + $0x1e68] sm:$0xff] %v2152_v28  ;;  %v2157_v39 = vsub.f32 0.0, %v1133_v36  ;;  %v2158_v40 = vsub.f32 0.0, %v1134_v37  ;;  %v1136_v42 = vld [vmem:[%s3611_s3 + $0x1ea8] sm:$0xff] }
 0x22f   : > { %3177 = vst [vmem:[%s3626_s16 + $0x1e70] sm:$0xff] %v2153_v29  ;;  %v2159_v41 = vsub.f32 0.0, %v1135_v38  ;;  %v1137_v43 = vld [vmem:[%s3611_s3 + $0x1eb0] sm:$0xff]  ;;  %v1138_v44 = vld [vmem:[%s3611_s3 + $0x1eb8] sm:$0xff]  ;;  %3178 = vst [vmem:[%s3626_s16 + $0x1e78] sm:$0xff] %v2154_v33  ;;  %v2160_v45 = vsub.f32 0.0, %v1136_v42 }
 0x230   : > { %3179 = vst [vmem:[%s3626_s16 + $0x1e80] sm:$0xff] %v2155_v34  ;;  %3180 = vst [vmem:[%s3626_s16 + $0x1e88] sm:$0xff] %v2156_v35  ;;  %v2161_v46 = vsub.f32 0.0, %v1137_v43  ;;  %v2162_v47 = vsub.f32 0.0, %v1138_v44  ;;  %v1139_v48 = vld [vmem:[%s3611_s3 + $0x1ec0] sm:$0xff]  ;;  %v1140_v49 = vld [vmem:[%s3611_s3 + $0x1ec8] sm:$0xff] }
 0x231   : > { %v1141_v50 = vld [vmem:[%s3611_s3 + $0x1ed0] sm:$0xff]  ;;  %3181 = vst [vmem:[%s3626_s16 + $0x1e90] sm:$0xff] %v2157_v39  ;;  %3182 = vst [vmem:[%s3626_s16 + $0x1e98] sm:$0xff] %v2158_v40  ;;  %v2163_v51 = vsub.f32 0.0, %v1139_v48  ;;  %v2164_v52 = vsub.f32 0.0, %v1140_v49  ;;  %v1142_v54 = vld [vmem:[%s3611_s3 + $0x1ed8] sm:$0xff] }
 0x232   : > { %3183 = vst [vmem:[%s3626_s16 + $0x1ea0] sm:$0xff] %v2159_v41  ;;  %v2165_v53 = vsub.f32 0.0, %v1141_v50  ;;  %v1143_v55 = vld [vmem:[%s3611_s3 + $0x1ee0] sm:$0xff]  ;;  %v1144_v56 = vld [vmem:[%s3611_s3 + $0x1ee8] sm:$0xff]  ;;  %3184 = vst [vmem:[%s3626_s16 + $0x1ea8] sm:$0xff] %v2160_v45  ;;  %v2166_v57 = vsub.f32 0.0, %v1142_v54 }
 0x233   : > { %3185 = vst [vmem:[%s3626_s16 + $0x1eb0] sm:$0xff] %v2161_v46  ;;  %3186 = vst [vmem:[%s3626_s16 + $0x1eb8] sm:$0xff] %v2162_v47  ;;  %v2167_v58 = vsub.f32 0.0, %v1143_v55  ;;  %v2168_v59 = vsub.f32 0.0, %v1144_v56  ;;  %v1145_v60 = vld [vmem:[%s3611_s3 + $0x1ef0] sm:$0xff]  ;;  %v1146_v61 = vld [vmem:[%s3611_s3 + $0x1ef8] sm:$0xff] }
 0x234   : > { %v1147_v62 = vld [vmem:[%s3611_s3 + $0x1f00] sm:$0xff]  ;;  %3187 = vst [vmem:[%s3626_s16 + $0x1ec0] sm:$0xff] %v2163_v51  ;;  %3188 = vst [vmem:[%s3626_s16 + $0x1ec8] sm:$0xff] %v2164_v52  ;;  %v2169_v63 = vsub.f32 0.0, %v1145_v60  ;;  %v2170_v0 = vsub.f32 0.0, %v1146_v61  ;;  %v1148_v2 = vld [vmem:[%s3611_s3 + $0x1f08] sm:$0xff] }
 0x235   : > { %3189 = vst [vmem:[%s3626_s16 + $0x1ed0] sm:$0xff] %v2165_v53  ;;  %v2171_v1 = vsub.f32 0.0, %v1147_v62  ;;  %v1149_v3 = vld [vmem:[%s3611_s3 + $0x1f10] sm:$0xff]  ;;  %v1150_v4 = vld [vmem:[%s3611_s3 + $0x1f18] sm:$0xff]  ;;  %3190 = vst [vmem:[%s3626_s16 + $0x1ed8] sm:$0xff] %v2166_v57  ;;  %v2172_v5 = vsub.f32 0.0, %v1148_v2 }
 0x236   : > { %3191 = vst [vmem:[%s3626_s16 + $0x1ee0] sm:$0xff] %v2167_v58  ;;  %3192 = vst [vmem:[%s3626_s16 + $0x1ee8] sm:$0xff] %v2168_v59  ;;  %v2173_v6 = vsub.f32 0.0, %v1149_v3  ;;  %v2174_v7 = vsub.f32 0.0, %v1150_v4  ;;  %v1151_v8 = vld [vmem:[%s3611_s3 + $0x1f20] sm:$0xff]  ;;  %v1152_v9 = vld [vmem:[%s3611_s3 + $0x1f28] sm:$0xff] }
 0x237   : > { %v1153_v10 = vld [vmem:[%s3611_s3 + $0x1f30] sm:$0xff]  ;;  %3193 = vst [vmem:[%s3626_s16 + $0x1ef0] sm:$0xff] %v2169_v63  ;;  %3194 = vst [vmem:[%s3626_s16 + $0x1ef8] sm:$0xff] %v2170_v0  ;;  %v2175_v11 = vsub.f32 0.0, %v1151_v8  ;;  %v2176_v12 = vsub.f32 0.0, %v1152_v9  ;;  %v1154_v14 = vld [vmem:[%s3611_s3 + $0x1f38] sm:$0xff] }
 0x238   : > { %3195 = vst [vmem:[%s3626_s16 + $0x1f00] sm:$0xff] %v2171_v1  ;;  %v2177_v13 = vsub.f32 0.0, %v1153_v10  ;;  %v1155_v15 = vld [vmem:[%s3611_s3 + $0x1f40] sm:$0xff]  ;;  %v1156_v16 = vld [vmem:[%s3611_s3 + $0x1f48] sm:$0xff]  ;;  %3196 = vst [vmem:[%s3626_s16 + $0x1f08] sm:$0xff] %v2172_v5  ;;  %v2178_v17 = vsub.f32 0.0, %v1154_v14 }
 0x239   : > { %3197 = vst [vmem:[%s3626_s16 + $0x1f10] sm:$0xff] %v2173_v6  ;;  %3198 = vst [vmem:[%s3626_s16 + $0x1f18] sm:$0xff] %v2174_v7  ;;  %v2179_v18 = vsub.f32 0.0, %v1155_v15  ;;  %v2180_v19 = vsub.f32 0.0, %v1156_v16  ;;  %v1157_v20 = vld [vmem:[%s3611_s3 + $0x1f50] sm:$0xff]  ;;  %v1158_v21 = vld [vmem:[%s3611_s3 + $0x1f58] sm:$0xff] }
 0x23a   : > { %v1159_v22 = vld [vmem:[%s3611_s3 + $0x1f60] sm:$0xff]  ;;  %3199 = vst [vmem:[%s3626_s16 + $0x1f20] sm:$0xff] %v2175_v11  ;;  %3200 = vst [vmem:[%s3626_s16 + $0x1f28] sm:$0xff] %v2176_v12  ;;  %v2181_v23 = vsub.f32 0.0, %v1157_v20  ;;  %v2182_v24 = vsub.f32 0.0, %v1158_v21  ;;  %v1160_v26 = vld [vmem:[%s3611_s3 + $0x1f68] sm:$0xff] }
 0x23b   : > { %3201 = vst [vmem:[%s3626_s16 + $0x1f30] sm:$0xff] %v2177_v13  ;;  %v2183_v25 = vsub.f32 0.0, %v1159_v22  ;;  %v1161_v27 = vld [vmem:[%s3611_s3 + $0x1f70] sm:$0xff]  ;;  %v1162_v28 = vld [vmem:[%s3611_s3 + $0x1f78] sm:$0xff]  ;;  %3202 = vst [vmem:[%s3626_s16 + $0x1f38] sm:$0xff] %v2178_v17  ;;  %v2184_v29 = vsub.f32 0.0, %v1160_v26 }
 0x23c   : > { %3203 = vst [vmem:[%s3626_s16 + $0x1f40] sm:$0xff] %v2179_v18  ;;  %3204 = vst [vmem:[%s3626_s16 + $0x1f48] sm:$0xff] %v2180_v19  ;;  %v2185_v30 = vsub.f32 0.0, %v1161_v27  ;;  %v2186_v31 = vsub.f32 0.0, %v1162_v28  ;;  %v1163_v32 = vld [vmem:[%s3611_s3 + $0x1f80] sm:$0xff]  ;;  %v1164_v33 = vld [vmem:[%s3611_s3 + $0x1f88] sm:$0xff] }
 0x23d   : > { %v1165_v34 = vld [vmem:[%s3611_s3 + $0x1f90] sm:$0xff]  ;;  %3205 = vst [vmem:[%s3626_s16 + $0x1f50] sm:$0xff] %v2181_v23  ;;  %3206 = vst [vmem:[%s3626_s16 + $0x1f58] sm:$0xff] %v2182_v24  ;;  %v2187_v35 = vsub.f32 0.0, %v1163_v32  ;;  %v2188_v36 = vsub.f32 0.0, %v1164_v33  ;;  %v1166_v38 = vld [vmem:[%s3611_s3 + $0x1f98] sm:$0xff] }
 0x23e   : > { %3207 = vst [vmem:[%s3626_s16 + $0x1f60] sm:$0xff] %v2183_v25  ;;  %v2189_v37 = vsub.f32 0.0, %v1165_v34  ;;  %v1167_v39 = vld [vmem:[%s3611_s3 + $0x1fa0] sm:$0xff]  ;;  %v1168_v40 = vld [vmem:[%s3611_s3 + $0x1fa8] sm:$0xff]  ;;  %3208 = vst [vmem:[%s3626_s16 + $0x1f68] sm:$0xff] %v2184_v29  ;;  %v2190_v41 = vsub.f32 0.0, %v1166_v38 }
 0x23f   : > { %3209 = vst [vmem:[%s3626_s16 + $0x1f70] sm:$0xff] %v2185_v30  ;;  %3210 = vst [vmem:[%s3626_s16 + $0x1f78] sm:$0xff] %v2186_v31  ;;  %v2191_v42 = vsub.f32 0.0, %v1167_v39  ;;  %v2192_v43 = vsub.f32 0.0, %v1168_v40  ;;  %v1169_v44 = vld [vmem:[%s3611_s3 + $0x1fb0] sm:$0xff]  ;;  %v1170_v45 = vld [vmem:[%s3611_s3 + $0x1fb8] sm:$0xff] }
 0x240   : > { %v1171_v46 = vld [vmem:[%s3611_s3 + $0x1fc0] sm:$0xff]  ;;  %3211 = vst [vmem:[%s3626_s16 + $0x1f80] sm:$0xff] %v2187_v35  ;;  %3212 = vst [vmem:[%s3626_s16 + $0x1f88] sm:$0xff] %v2188_v36  ;;  %v2193_v47 = vsub.f32 0.0, %v1169_v44  ;;  %v2194_v48 = vsub.f32 0.0, %v1170_v45  ;;  %v1172_v50 = vld [vmem:[%s3611_s3 + $0x1fc8] sm:$0xff] }
 0x241   : > { %3213 = vst [vmem:[%s3626_s16 + $0x1f90] sm:$0xff] %v2189_v37  ;;  %v2195_v49 = vsub.f32 0.0, %v1171_v46  ;;  %v1173_v51 = vld [vmem:[%s3611_s3 + $0x1fd0] sm:$0xff]  ;;  %v1174_v52 = vld [vmem:[%s3611_s3 + $0x1fd8] sm:$0xff]  ;;  %3214 = vst [vmem:[%s3626_s16 + $0x1f98] sm:$0xff] %v2190_v41  ;;  %v2196_v53 = vsub.f32 0.0, %v1172_v50 }
 0x242   : > { %3215 = vst [vmem:[%s3626_s16 + $0x1fa0] sm:$0xff] %v2191_v42  ;;  %3216 = vst [vmem:[%s3626_s16 + $0x1fa8] sm:$0xff] %v2192_v43  ;;  %v2197_v54 = vsub.f32 0.0, %v1173_v51  ;;  %v2198_v55 = vsub.f32 0.0, %v1174_v52  ;;  %v1175_v56 = vld [vmem:[%s3611_s3 + $0x1fe0] sm:$0xff]  ;;  %v1176_v57 = vld [vmem:[%s3611_s3 + $0x1fe8] sm:$0xff] }
 0x243   : > { %v1177_v58 = vld [vmem:[%s3611_s3 + $0x1ff0] sm:$0xff]  ;;  %3217 = vst [vmem:[%s3626_s16 + $0x1fb0] sm:$0xff] %v2193_v47  ;;  %3218 = vst [vmem:[%s3626_s16 + $0x1fb8] sm:$0xff] %v2194_v48  ;;  %v2199_v59 = vsub.f32 0.0, %v1175_v56  ;;  %v2200_v60 = vsub.f32 0.0, %v1176_v57  ;;  %v1178_v62 = vld [vmem:[%s3611_s3 + $0x1ff8] sm:$0xff] }
 0x244   : > { %3219 = vst [vmem:[%s3626_s16 + $0x1fc0] sm:$0xff] %v2195_v49  ;;  %v2201_v61 = vsub.f32 0.0, %v1177_v58  ;;  %3220 = vst [vmem:[%s3626_s16 + $0x1fc8] sm:$0xff] %v2196_v53  ;;  %v2202_v63 = vsub.f32 0.0, %v1178_v62  ;;  %3234 = sbr.rel (!%p3553_p9) target bundleno = 615 (0x267), region = 32  ;;  %s3236_s30 = ssub.s32 (%p3553_p9), 161, %s3338_s25 }
 0x245   : > { %3221 = vst [vmem:[%s3626_s16 + $0x1fd0] sm:$0xff] %v2197_v54  ;;  %3222 = vst [vmem:[%s3626_s16 + $0x1fd8] sm:$0xff] %v2198_v55  ;;  %p3237_p6 = scmp.lt.s32.totalorder (%p3553_p9), %s3236_s30, 32 }
 0x246   : > { %3223 = vst [vmem:[%s3626_s16 + $0x1fe0] sm:$0xff] %v2199_v59  ;;  %3224 = vst [vmem:[%s3626_s16 + $0x1fe8] sm:$0xff] %v2200_v60 }
 0x247   : > { %3225 = vst [vmem:[%s3626_s16 + $0x1ff0] sm:$0xff] %v2201_v61  ;;  %3226 = vst [vmem:[%s3626_s16 + $0x1ff8] sm:$0xff] %v2202_v63 }
 0x24b   : > { %s5742_s30 = smov (!%p3237_p6, %s3236_s30), 32 }
 0x24c   : > { %s5671_s2 = sshll.u32 %s5742_s30, 12 }
 0x24d   : > { %s3242_s4 = ssub.s32 131072, %s5671_s2 }
 0x24e   : > { %3243 = vsyncadd %s3228_s23, %s3242_s4  ;;  %p3341_p10 = scmp.ne.s32.totalorder %s5671_s2, 0  ;;  %s3353_s17 = sshll.u32 %s3530_s10, 17 }
 0x24f   : > { %s5681_s13 = scalar_lea.hbm %s5730_s1, %s3353_s17  ;;  %s3249_s14 = sshll.u32 %s3626_s16, 4  ;;  %s5684_s14 = int_to_ptr.vmem [resolvable:$true] %s3249_s14 }
 0x250   : > { %s3425_s19 = scalar_lea.vmem %s5684_s14, %s5671_s2  ;;  %s3496_s20 = smov [#allocation5]  }
 0x251   : > { %p3426_p9 = scmp.ne.s32.totalorder %s5684_s14, %s3425_s19  ;;  %s3429_s21 = sshll.u32 %s3496_s20, 4  ;;  %s3430_s21 = int_to_ptr.vmem [resolvable:$false] %s3429_s21 }
 0x252   : > { %s3431_s10 = scalar_lea.vmem %s3430_s21, 262144  ;;  %p3432_p12 = scmp.lt.s32.totalorder %s5684_s14, %s3430_s21 }
 0x253   : > { %p3427_p13 = pnand %p3426_p9, %p3341_p10  ;;  %p3433_p0 = scmp.lt.s32.totalorder %s3431_s10, %s3425_s19 }
 0x255   : > { %p3428_p11 = pneg %p3427_p13  ;;  %p3434_p1 = por %p3433_p0, %p3432_p12 }
 0x257   : > { %p3435_p3 = pnand %p3434_p1, %p3428_p11 }
 0x259   : > { %3438 = shalt.err (!%p3435_p3)
}
 0x25a   : > { %s3439_s22 = scalar_lea.hbm %s5681_s13, %s5671_s2  ;;  %s3443_s28 = scalar_lea.hbm %s5730_s1, 659456 }
 0x25b   : > { %p3440_p4 = scmp.ne.s32.totalorder %s5681_s13, %s3439_s22  ;;  %p3444_p7 = scmp.lt.u32.totalorder %s5681_s13, %s5730_s1 }
 0x25c   : > { %p3445_p8 = scmp.lt.u32.totalorder %s3443_s28, %s3439_s22  ;;  %p3447_p9 = scmp.lt.u32.totalorder %s3439_s22, %s5681_s13 }
 0x25d   : > { %p3441_p5 = pnand %p3440_p4, %p3341_p10 }
 0x25e   : > { %p3446_p6 = por %p3445_p8, %p3444_p7 }
 0x25f   : > { %p3442_p2 = pneg %p3441_p5 }
 0x260   : > { %p3448_p13 = por %p3447_p9, %p3446_p6 }
 0x262   : > { %p3449_p11 = pnand %p3448_p13, %p3442_p2 }
 0x264   : > { %3452 = shalt.err (!%p3449_p11)
}
 0x265   : > { %s3497_s16 = smov 4096   ;;  %s3498_s25 = smov 256  }
 0x266   : > { %3255 = dma.vmem_to_hbm [thread:$0]  (%p3341_p10), %s5684_s14, %s5671_s2, %s5681_s13, %s3228_s23, %s3497_s16, %s3497_s16, %s3498_s25  }
 0x267 PF: > { %p3360_p12 = scmp.ge.s32.totalorder %s3491_s9, 2  ;;  %s3264_s30 = sand.u32 1, %s3479_s6  }
 0x268   : > { %p5734_p0 = scmp.ne.s32.totalorder %s5733_s18, 0  ;;  %s3265_s4 = scalar_lea.sflag [#allocation4], %s3264_s30 }
 0x26a   : > { %p3357_p1 = pnand %p3360_p12, %p5734_p0 }
 0x26c   : > { %3474 = dma.done.wait (!%p3357_p1), %s3265_s4, 131072  }
 0x26d   : > { %3476 = vsyncadd (!%p3357_p1), %s3265_s4, 4294836224  ;;  %p14_p3 = scmp.ge.s32.totalorder %s3534_s12, 8   ;;  %s5735_s6 = smov %s3483_s7 }
 0x26e   : > { %s5736_s7 = smov %s3487_s8  ;;  %s5737_s8 = smov %s3546_s15 }
 0x26f   : > { %s5738_s9 = smov %s3534_s12  ;;  %16 = sbr.rel (!%p14_p3) target bundleno = 5 (0x5), region = 69 }
 0x276   :  { %3270 = vsyncpa [#allocation3], 1 }
 0x277   :  { %3272 = vsyncpa [#allocation3 + $0x1], 1 }
 0x278   :  { %3273 = vsyncpa [#allocation4], 1 }
 0x279   :  { %3275 = vsyncpa [#allocation4 + $0x1], 1 }

</bundles_post_ra>
